<compile_context>
chip_gen: v6e
topology: v6e:2x2x1
jax: 0.10.0
libtpu: 0.0.40
codegen_flags: <defaults>
</compile_context>

<pallas_src>
import math

import jax
import jax.numpy as jnp
from jax.experimental import pallas as pl
from jax.experimental.pallas import tpu as pltpu

# ---- module hyperparameters (nn.TransformerEncoderLayer defaults) ----------
D_MODEL = 64
NHEAD = 4
HEAD_DIM = D_MODEL // NHEAD
DFF = 2048               # default dim_feedforward of TransformerEncoderLayer
NUM_LAYERS = 2
DEC_HIDDEN = 128
LN_EPS = 1e-5
FF_CHUNK = 512           # DFF is processed in DFF // FF_CHUNK = 4 chunks
N_FF_CHUNKS = DFF // FF_CHUNK


def _layer_norm(x, g, b):
    mu = jnp.mean(x, axis=-1, keepdims=True)
    var = jnp.mean((x - mu) ** 2, axis=-1, keepdims=True)
    return (x - mu) * jax.lax.rsqrt(var + LN_EPS) * g + b


# =============================================================================
# Fused per-batch-element kernel: input proj + pos, 2 encoder layers, mean,
# decoder MLP. All weights live in VMEM; the activation slab is (S, D).
# =============================================================================
def _fused_forward_kernel(x_ref, posb_ref, wattn_ref, vecs_ref,
                          wf1_ref, bf1_ref, wf2_ref,
                          wd1_ref, wd2_ref, misc_ref, o_ref):
    D = D_MODEL
    S = posb_ref.shape[0]
    n_layers = wattn_ref.shape[0]
    n_ff_chunks = wf1_ref.shape[1]
    out_len = o_ref.shape[2]
    scale = 1.0 / math.sqrt(HEAD_DIM)

    # ---- input projection (Linear(1, D)) + positional embedding -------------
    # posb already contains pos_embedding + in_proj bias (prepared once).
    win = misc_ref[0:1, :D]                          # (1, D)
    h = x_ref[0] * win + posb_ref[...]               # (S, D) f32

    # ---- encoder layers (post-LN), statically unrolled -----------------------
    for l in range(n_layers):
        bq = vecs_ref[l, 0:1, :]
        bk = vecs_ref[l, 1:2, :]
        bv = vecs_ref[l, 2:3, :]
        bo = vecs_ref[l, 3:4, :]
        g1, be1 = vecs_ref[l, 4:5, :], vecs_ref[l, 5:6, :]
        bf2 = vecs_ref[l, 6:7, :]
        g2, be2 = vecs_ref[l, 7:8, :], vecs_ref[l, 8:9, :]

        # separate Q/K/V projections: three (S,D)x(D,D) bf16 MXU matmuls,
        # no lane slicing of a 192-wide qkv result.
        hb = h.astype(jnp.bfloat16)
        q = (jnp.dot(hb, wattn_ref[l, 0],
                     preferred_element_type=jnp.float32) + bq) * scale
        k = jnp.dot(hb, wattn_ref[l, 1],
                    preferred_element_type=jnp.float32) + bk
        v = jnp.dot(hb, wattn_ref[l, 2],
                    preferred_element_type=jnp.float32) + bv
        qb = q.astype(jnp.bfloat16)      # q is pre-scaled by 1/sqrt(head_dim)
        kb = k.astype(jnp.bfloat16)
        vb = v.astype(jnp.bfloat16)

        # per-head attention (4 unrolled iterations; no batch loop -- the batch
        # is the grid). bf16 x bf16 matmuls with f32 accumulation.
        heads = []
        for hh in range(NHEAD):
            sl = slice(hh * HEAD_DIM, (hh + 1) * HEAD_DIM)
            s = jax.lax.dot_general(qb[:, sl], kb[:, sl],
                                    (((1,), (1,)), ((), ())),
                                    preferred_element_type=jnp.float32)   # (S,S)
            s = s - jnp.max(s, axis=-1, keepdims=True)
            p = jnp.exp(s)
            # approx reciprocal runs on the EUP slot; deviation vs exact division
            # is ~1e-4 relative and covered by the test tolerances.
            p = p * pl.reciprocal(jnp.sum(p, axis=-1, keepdims=True), approx=True)
            heads.append(jnp.dot(p.astype(jnp.bfloat16), vb[:, sl],
                                 preferred_element_type=jnp.float32))     # (S,hd)

        # assemble heads into one (S, D) buffer -> a single Wo matmul per layer.
        attn = jnp.concatenate(heads, axis=-1).astype(jnp.bfloat16)       # (S, D)
        attn = jnp.dot(attn, wattn_ref[l, 3],
                       preferred_element_type=jnp.float32) + bo           # (S, D)

        # residual + LayerNorm 1 (post-norm)
        y = _layer_norm(h + attn, g1, be1)

        # feed-forward blocked over DFF (statically unrolled, 4 chunks of 512):
        # never materializes the full (S, DFF) f32 intermediate.
        yb = y.astype(jnp.bfloat16)
        ff = jnp.zeros((S, D), jnp.float32)
        for c in range(n_ff_chunks):
            f = jnp.dot(yb, wf1_ref[l, c],
                        preferred_element_type=jnp.float32) + bf1_ref[l, c]
            f = jnp.maximum(f, 0.0).astype(jnp.bfloat16)
            ff = ff + jnp.dot(f, wf2_ref[l, c],
                              preferred_element_type=jnp.float32)
        ff = ff + bf2

        # residual + LayerNorm 2
        h = _layer_norm(y + ff, g2, be2)

    # ---- mean over sequence (single sublane reduction) + decoder MLP ---------
    m = jnp.sum(h, axis=0, keepdims=True) * (1.0 / S)                     # (1, D)
    d = jnp.dot(m, wd1_ref[...], preferred_element_type=jnp.float32) \
        + misc_ref[1:2, :]
    d = jnp.maximum(d, 0.0)
    o_ref[0] = (jnp.dot(d, wd2_ref[...], preferred_element_type=jnp.float32)
                + misc_ref[2:3, :out_len])


# =============================================================================
# One-time parameter preparation (layout + dtype), done once, outside forward.
# PyTorch (out, in) weights -> (in, out); stacking/packing for few large DMAs;
# bf16 for the big matmul weights (f32 accumulation happens in-kernel).
# =============================================================================
def prepare_params(params):
    D = D_MODEL
    layers = params['layers']
    dp = params['decoder']
    out_len = dp['w2'].shape[0]
    assert out_len <= DEC_HIDDEN and dp['b1'].shape[0] == DEC_HIDDEN

    def attn_w(lp):                      # (4, D, D): wq, wk, wv, wo
        return jnp.stack([lp['in_w'][0:D].T, lp['in_w'][D:2 * D].T,
                          lp['in_w'][2 * D:3 * D].T, lp['out_w'].T])

    def vec_rows(lp):                    # (9, D): bq,bk,bv,bo,g1,be1,bf2,g2,be2
        return jnp.stack([lp['in_b'][0:D], lp['in_b'][D:2 * D],
                          lp['in_b'][2 * D:3 * D], lp['out_b'],
                          lp['ln1_g'], lp['ln1_b'],
                          lp['ff2_b'], lp['ln2_g'], lp['ln2_b']])

    def ff1_w(lp):                       # (n_ff, D, FF_CHUNK)
        return lp['ff1_w'].T.reshape(D, N_FF_CHUNKS, FF_CHUNK).transpose(1, 0, 2)

    def ff1_b(lp):                       # (n_ff, 1, FF_CHUNK)
        return lp['ff1_b'].reshape(N_FF_CHUNKS, 1, FF_CHUNK)

    def ff2_w(lp):                       # (n_ff, FF_CHUNK, D)
        return lp['ff2_w'].T.reshape(N_FF_CHUNKS, FF_CHUNK, D)

    stack = lambda fn, dt: jnp.stack([fn(lp) for lp in layers]).astype(dt)

    misc = jnp.stack([
        jnp.pad(params['in_proj_w'].reshape(-1), (0, DEC_HIDDEN - D)),  # win
        dp['b1'],                                                       # bd1
        jnp.pad(dp['b2'], (0, DEC_HIDDEN - out_len)),                   # bd2
    ]).astype(jnp.float32)                                              # (3, 128)

    return {
        # pos embedding combined with the input-projection bias -> no separate add
        'posb':   (params['pos'][0] + params['in_proj_b'][None, :]).astype(jnp.float32),
        'w_attn': stack(attn_w, jnp.bfloat16),      # (L, 4, D, D)
        'vecs':   stack(vec_rows, jnp.float32),     # (L, 9, D)
        'wf1':    stack(ff1_w, jnp.bfloat16),       # (L, n_ff, D, FF_CHUNK)
        'bf1':    stack(ff1_b, jnp.float32),        # (L, n_ff, 1, FF_CHUNK)
        'wf2':    stack(ff2_w, jnp.bfloat16),       # (L, n_ff, FF_CHUNK, D)
        'wd1':    dp['w1'].T.astype(jnp.float32),   # (D, 128)
        'wd2':    dp['w2'].T.astype(jnp.float32),   # (128, out_len)
        'misc':   misc,                             # (3, 128): win | bd1 | bd2
    }


# =============================================================================
# Forward pass: one pallas_call, grid over the batch ("parallel" for v7x 2 TCs)
# =============================================================================
@jax.jit
def transformer_forecast_pallas(x, prep):
    B, S, _ = x.shape
    out_len = prep['wd2'].shape[1]
    n_ff = prep['wf1'].shape[1]
    posb = prep['posb'][:S]                # slice pos table to runtime seq length

    out = pl.pallas_call(
        _fused_forward_kernel,
        grid=(B,),
        in_specs=[
            pl.BlockSpec((1, S, 1), lambda b: (b, 0, 0)),                         # x
            pl.BlockSpec((S, D_MODEL), lambda b: (0, 0)),                          # posb
            pl.BlockSpec((NUM_LAYERS, 4, D_MODEL, D_MODEL), lambda b: (0, 0, 0, 0)),   # w_attn
            pl.BlockSpec((NUM_LAYERS, 9, D_MODEL), lambda b: (0, 0, 0)),               # vecs
            pl.BlockSpec((NUM_LAYERS, n_ff, D_MODEL, FF_CHUNK), lambda b: (0, 0, 0, 0)),  # wf1
            pl.BlockSpec((NUM_LAYERS, n_ff, 1, FF_CHUNK), lambda b: (0, 0, 0, 0)),        # bf1
            pl.BlockSpec((NUM_LAYERS, n_ff, FF_CHUNK, D_MODEL), lambda b: (0, 0, 0, 0)),  # wf2
            pl.BlockSpec((D_MODEL, DEC_HIDDEN), lambda b: (0, 0)),                 # wd1
            pl.BlockSpec((DEC_HIDDEN, out_len), lambda b: (0, 0)),                 # wd2
            pl.BlockSpec((3, DEC_HIDDEN), lambda b: (0, 0)),                       # misc
        ],
        out_specs=pl.BlockSpec((1, 1, out_len), lambda b: (b, 0, 0)),
        out_shape=jax.ShapeDtypeStruct((B, 1, out_len), jnp.float32),
        compiler_params=pltpu.CompilerParams(
            dimension_semantics=("parallel",)),
    )(x, posb, prep['w_attn'], prep['vecs'], prep['wf1'], prep['bf1'],
      prep['wf2'], prep['wd1'], prep['wd2'], prep['misc'])
    return out[:, 0, :]


# =============================================================================
# Pure-JAX references for verification
# =============================================================================
def transformer_forecast_ref_prepared(x, prep):
    """Mirror of the kernel's math (same bf16 casts, same chunking) in pure JAX."""
    B, S, _ = x.shape
    D = D_MODEL
    scale = 1.0 / math.sqrt(HEAD_DIM)
    win = prep['misc'][0:1, :D]
    posb = prep['posb'][:S]
    bd1 = prep['misc'][1:2, :]
    out_len = prep['wd2'].shape[1]
    bd2 = prep['misc'][2:3, :out_len]

    def mm(a, w):
        return jnp.dot(a, w, preferred_element_type=jnp.float32)

    outs = []
    for b in range(B):
        h = x[b] * win + posb
        for l in range(NUM_LAYERS):
            hb = h.astype(jnp.bfloat16)
            q = (mm(hb, prep['w_attn'][l, 0]) + prep['vecs'][l, 0]) * scale
            k = mm(hb, prep['w_attn'][l, 1]) + prep['vecs'][l, 1]
            v = mm(hb, prep['w_attn'][l, 2]) + prep['vecs'][l, 2]
            qb, kb, vb = (t.astype(jnp.bfloat16) for t in (q, k, v))
            heads = []
            for hh in range(NHEAD):
                sl = slice(hh * HEAD_DIM, (hh + 1) * HEAD_DIM)
                s = mm(qb[:, sl], kb[:, sl].T)
                p = jax.nn.softmax(s, axis=-1)
                heads.append(mm(p.astype(jnp.bfloat16), vb[:, sl]))
            attn = mm(jnp.concatenate(heads, -1).astype(jnp.bfloat16),
                      prep['w_attn'][l, 3]) + prep['vecs'][l, 3]
            y = _layer_norm(h + attn, prep['vecs'][l, 4], prep['vecs'][l, 5])
            yb = y.astype(jnp.bfloat16)
            ff = jnp.zeros((S, D), jnp.float32)
            for c in range(prep['wf1'].shape[1]):
                f = mm(yb, prep['wf1'][l, c]) + prep['bf1'][l, c]
                ff = ff + mm(jnp.maximum(f, 0.0).astype(jnp.bfloat16),
                             prep['wf2'][l, c])
            ff = ff + prep['vecs'][l, 6]
            h = _layer_norm(y + ff, prep['vecs'][l, 7], prep['vecs'][l, 8])
        m = jnp.sum(h, axis=0, keepdims=True) * (1.0 / S)
        d = jnp.maximum(mm(m, prep['wd1']) + bd1, 0.0)
        outs.append(mm(d, prep['wd2']) + bd2)
    return jnp.concatenate(outs, axis=0)


def transformer_forecast_ref_f32(x, params):
    """Original PyTorch eval-mode semantics, full f32."""
    h = jnp.dot(x, params['in_proj_w'].T) + params['in_proj_b']
    h = h + params['pos'][:, :x.shape[1], :]
    for lp in params['layers']:
        B, S, D = h.shape
        qkv = jnp.dot(h, lp['in_w'].T) + lp['in_b']
        q, k, v = jnp.split(qkv, 3, axis=-1)
        sh = lambda t: t.reshape(B, S, NHEAD, HEAD_DIM).transpose(0, 2, 1, 3)
        q, k, v = sh(q), sh(k), sh(v)
        s = jnp.einsum('bhqd,bhkd->bhqk', q, k) / math.sqrt(HEAD_DIM)
        p = jax.nn.softmax(s, axis=-1)
        a = jnp.einsum('bhqk,bhkd->bhqd', p, v).transpose(0, 2, 1, 3).reshape(B, S, D)
        a = jnp.dot(a, lp['out_w'].T) + lp['out_b']
        h = _layer_norm(h + a, lp['ln1_g'], lp['ln1_b'])
        f = jnp.maximum(jnp.dot(h, lp['ff1_w'].T) + lp['ff1_b'], 0.0)
        f = jnp.dot(f, lp['ff2_w'].T) + lp['ff2_b']
        h = _layer_norm(h + f, lp['ln2_g'], lp['ln2_b'])
    m = h.mean(axis=1)
    dp = params['decoder']
    d = jnp.maximum(jnp.dot(m, dp['w1'].T) + dp['b1'], 0.0)
    return jnp.dot(d, dp['w2'].T) + dp['b2']


# =============================================================================
# Deterministic parameter construction (synthetic; shapes from __init__)
# =============================================================================
def make_params(key, input_len, output_len):
    ks = iter(jax.random.split(key, 64))
    n = lambda shape, s=0.05: (s * jax.random.normal(next(ks), shape)).astype(jnp.float32)
    params = {
        'in_proj_w': n((D_MODEL, 1)),
        'in_proj_b': n((D_MODEL,)),
        'pos': jax.random.normal(next(ks), (1, input_len, D_MODEL)).astype(jnp.float32),
        'layers': [],
        'decoder': {
            'w1': n((DEC_HIDDEN, D_MODEL)),
            'b1': n((DEC_HIDDEN,)),
            'w2': n((output_len, DEC_HIDDEN)),
            'b2': n((output_len,)),
        },
    }
    for _ in range(NUM_LAYERS):
        params['layers'].append({
            'in_w': n((3 * D_MODEL, D_MODEL)),
            'in_b': n((3 * D_MODEL,)),
            'out_w': n((D_MODEL, D_MODEL)),
            'out_b': n((D_MODEL,)),
            'ln1_g': jnp.ones((D_MODEL,), jnp.float32),
            'ln1_b': jnp.zeros((D_MODEL,), jnp.float32),
            'ff1_w': n((DFF, D_MODEL)),
            'ff1_b': n((DFF,)),
            'ff2_w': n((D_MODEL, DFF)),
            'ff2_b': n((D_MODEL,)),
            'ln2_g': jnp.ones((D_MODEL,), jnp.float32),
            'ln2_b': jnp.zeros((D_MODEL,), jnp.float32),
        })
    return params


if __name__ == "__main__":
    B, INPUT_LEN, OUTPUT_LEN = 2, 16, 8

    key = jax.random.PRNGKey(0)
    kx, kp = jax.random.split(key)
    x = jax.random.normal(kx, (B, INPUT_LEN, 1), dtype=jnp.float32)
    params = make_params(kp, INPUT_LEN, OUTPUT_LEN)
    prep = prepare_params(params)          # one-time layout / dtype preparation

    out = jax.block_until_ready(transformer_forecast_pallas(x, prep))
    assert out.shape == (B, OUTPUT_LEN), out.shape

    # Tight check: kernel vs pure-JAX replica of the same bf16 compute
    # (remaining gap: approx reciprocal in softmax + MXU accumulation order).
    ref_q = transformer_forecast_ref_prepared(x, prep)
    err_q = float(jnp.max(jnp.abs(out - ref_q)))
    assert err_q < 5e-3, f"prepared-ref mismatch: {err_q}"

    # Semantics check vs full-f32 PyTorch-style reference (tolerance covers the
    # bf16 weight/activation quantization applied as an optimization).
    ref_f = transformer_forecast_ref_f32(x, params)
    err_f = float(jnp.max(jnp.abs(out - ref_f)))
    assert err_f < 4e-2, f"f32-ref mismatch: {err_f}"

    print("KERNEL_OK")
</pallas_src>

<mosaic_0001>
module attributes {stable_mosaic.version = 11 : i64} {
  func.func @_fused_forward_kernel(%arg0: i32, %arg1: memref<1x16x1xf32, #tpu.memory_space<vmem>>, %arg2: memref<16x64xf32, #tpu.memory_space<vmem>>, %arg3: memref<2x4x64x64xbf16, #tpu.memory_space<vmem>>, %arg4: memref<2x9x64xf32, #tpu.memory_space<vmem>>, %arg5: memref<2x4x64x512xbf16, #tpu.memory_space<vmem>>, %arg6: memref<2x4x1x512xf32, #tpu.memory_space<vmem>>, %arg7: memref<2x4x512x64xbf16, #tpu.memory_space<vmem>>, %arg8: memref<64x128xf32, #tpu.memory_space<vmem>>, %arg9: memref<128x8xf32, #tpu.memory_space<vmem>>, %arg10: memref<3x128xf32, #tpu.memory_space<vmem>>, %arg11: memref<1x1x8xf32, #tpu.memory_space<vmem>>) attributes {dimension_semantics = [#tpu.dimension_semantics<parallel>], iteration_bounds = array<i64: 2>, scalar_prefetch = 0 : i64, scratch_operands = 0 : i64, tpu.core_type = #tpu.core_type<tc>, window_params = [{transform_indices = @transform_0, window_bounds = array<i64: 1, 16, 1>}, {pipeline_mode = #tpu.pipeline_mode<synchronous>, transform_indices = @transform_1, window_bounds = array<i64: 16, 64>}, {pipeline_mode = #tpu.pipeline_mode<synchronous>, transform_indices = @transform_2, window_bounds = array<i64: 2, 4, 64, 64>}, {pipeline_mode = #tpu.pipeline_mode<synchronous>, transform_indices = @transform_3, window_bounds = array<i64: 2, 9, 64>}, {pipeline_mode = #tpu.pipeline_mode<synchronous>, transform_indices = @transform_4, window_bounds = array<i64: 2, 4, 64, 512>}, {pipeline_mode = #tpu.pipeline_mode<synchronous>, transform_indices = @transform_5, window_bounds = array<i64: 2, 4, 1, 512>}, {pipeline_mode = #tpu.pipeline_mode<synchronous>, transform_indices = @transform_6, window_bounds = array<i64: 2, 4, 512, 64>}, {pipeline_mode = #tpu.pipeline_mode<synchronous>, transform_indices = @transform_7, window_bounds = array<i64: 64, 128>}, {pipeline_mode = #tpu.pipeline_mode<synchronous>, transform_indices = @transform_8, window_bounds = array<i64: 128, 8>}, {pipeline_mode = #tpu.pipeline_mode<synchronous>, transform_indices = @transform_9, window_bounds = array<i64: 3, 128>}, {transform_indices = @transform_10, window_bounds = array<i64: 1, 1, 8>}]} {
    %c0 = arith.constant 0 : index
    %c0_0 = arith.constant 0 : index
    %0 = vector.load %arg10[%c0, %c0_0] : memref<3x128xf32, #tpu.memory_space<vmem>>, vector<1x64xf32>
    %c0_1 = arith.constant 0 : index
    %c0_2 = arith.constant 0 : index
    %c0_3 = arith.constant 0 : index
    %1 = vector.load %arg1[%c0_1, %c0_2, %c0_3] : memref<1x16x1xf32, #tpu.memory_space<vmem>>, vector<1x16x1xf32>
    %2 = vector.shape_cast %1 : vector<1x16x1xf32> to vector<16x1xf32>
    %3 = vector.broadcast %2 : vector<16x1xf32> to vector<16x64xf32>
    %4 = vector.broadcast %0 : vector<1x64xf32> to vector<16x64xf32>
    %5 = arith.mulf %3, %4 : vector<16x64xf32>
    %c0_4 = arith.constant 0 : index
    %c0_5 = arith.constant 0 : index
    %6 = vector.load %arg2[%c0_4, %c0_5] : memref<16x64xf32, #tpu.memory_space<vmem>>, vector<16x64xf32>
    %7 = arith.addf %5, %6 : vector<16x64xf32>
    %c0_6 = arith.constant 0 : index
    %c0_7 = arith.constant 0 : index
    %c0_8 = arith.constant 0 : index
    %8 = vector.load %arg4[%c0_6, %c0_7, %c0_8] : memref<2x9x64xf32, #tpu.memory_space<vmem>>, vector<1x1x64xf32>
    %9 = vector.shape_cast %8 : vector<1x1x64xf32> to vector<1x64xf32>
    %c0_9 = arith.constant 0 : index
    %c1 = arith.constant 1 : index
    %c0_10 = arith.constant 0 : index
    %10 = vector.load %arg4[%c0_9, %c1, %c0_10] : memref<2x9x64xf32, #tpu.memory_space<vmem>>, vector<1x1x64xf32>
    %11 = vector.shape_cast %10 : vector<1x1x64xf32> to vector<1x64xf32>
    %c0_11 = arith.constant 0 : index
    %c2 = arith.constant 2 : index
    %c0_12 = arith.constant 0 : index
    %12 = vector.load %arg4[%c0_11, %c2, %c0_12] : memref<2x9x64xf32, #tpu.memory_space<vmem>>, vector<1x1x64xf32>
    %13 = vector.shape_cast %12 : vector<1x1x64xf32> to vector<1x64xf32>
    %c0_13 = arith.constant 0 : index
    %c3 = arith.constant 3 : index
    %c0_14 = arith.constant 0 : index
    %14 = vector.load %arg4[%c0_13, %c3, %c0_14] : memref<2x9x64xf32, #tpu.memory_space<vmem>>, vector<1x1x64xf32>
    %15 = vector.shape_cast %14 : vector<1x1x64xf32> to vector<1x64xf32>
    %c0_15 = arith.constant 0 : index
    %c4 = arith.constant 4 : index
    %c0_16 = arith.constant 0 : index
    %16 = vector.load %arg4[%c0_15, %c4, %c0_16] : memref<2x9x64xf32, #tpu.memory_space<vmem>>, vector<1x1x64xf32>
    %17 = vector.shape_cast %16 : vector<1x1x64xf32> to vector<1x64xf32>
    %c0_17 = arith.constant 0 : index
    %c5 = arith.constant 5 : index
    %c0_18 = arith.constant 0 : index
    %18 = vector.load %arg4[%c0_17, %c5, %c0_18] : memref<2x9x64xf32, #tpu.memory_space<vmem>>, vector<1x1x64xf32>
    %19 = vector.shape_cast %18 : vector<1x1x64xf32> to vector<1x64xf32>
    %c0_19 = arith.constant 0 : index
    %c6 = arith.constant 6 : index
    %c0_20 = arith.constant 0 : index
    %20 = vector.load %arg4[%c0_19, %c6, %c0_20] : memref<2x9x64xf32, #tpu.memory_space<vmem>>, vector<1x1x64xf32>
    %21 = vector.shape_cast %20 : vector<1x1x64xf32> to vector<1x64xf32>
    %c0_21 = arith.constant 0 : index
    %c7 = arith.constant 7 : index
    %c0_22 = arith.constant 0 : index
    %22 = vector.load %arg4[%c0_21, %c7, %c0_22] : memref<2x9x64xf32, #tpu.memory_space<vmem>>, vector<1x1x64xf32>
    %23 = vector.shape_cast %22 : vector<1x1x64xf32> to vector<1x64xf32>
    %c0_23 = arith.constant 0 : index
    %c8 = arith.constant 8 : index
    %c0_24 = arith.constant 0 : index
    %24 = vector.load %arg4[%c0_23, %c8, %c0_24] : memref<2x9x64xf32, #tpu.memory_space<vmem>>, vector<1x1x64xf32>
    %25 = vector.shape_cast %24 : vector<1x1x64xf32> to vector<1x64xf32>
    %26 = arith.truncf %7 : vector<16x64xf32> to vector<16x64xbf16>
    %c0_25 = arith.constant 0 : index
    %c0_26 = arith.constant 0 : index
    %c0_27 = arith.constant 0 : index
    %c0_28 = arith.constant 0 : index
    %27 = vector.load %arg3[%c0_25, %c0_26, %c0_27, %c0_28] : memref<2x4x64x64xbf16, #tpu.memory_space<vmem>>, vector<1x1x64x64xbf16>
    %28 = vector.shape_cast %27 : vector<1x1x64x64xbf16> to vector<64x64xbf16>
    %cst = arith.constant dense<0.000000e+00> : vector<16x64xf32>
    %29 = tpu.matmul %26, %28, %cst {dimension_numbers = #tpu.dot_dimension_numbers<[1], [0], [0], [1], [0, 0, 1, 1], [], []>} : vector<16x64xbf16>, vector<64x64xbf16>, vector<16x64xf32> -> vector<16x64xf32>
    %30 = vector.broadcast %9 : vector<1x64xf32> to vector<16x64xf32>
    %31 = arith.addf %29, %30 : vector<16x64xf32>
    %cst_29 = arith.constant 2.500000e-01 : f32
    %32 = vector.broadcast %cst_29 : f32 to vector<16x64xf32>
    %33 = arith.mulf %31, %32 : vector<16x64xf32>
    %c0_30 = arith.constant 0 : index
    %c1_31 = arith.constant 1 : index
    %c0_32 = arith.constant 0 : index
    %c0_33 = arith.constant 0 : index
    %34 = vector.load %arg3[%c0_30, %c1_31, %c0_32, %c0_33] : memref<2x4x64x64xbf16, #tpu.memory_space<vmem>>, vector<1x1x64x64xbf16>
    %35 = vector.shape_cast %34 : vector<1x1x64x64xbf16> to vector<64x64xbf16>
    %cst_34 = arith.constant dense<0.000000e+00> : vector<16x64xf32>
    %36 = tpu.matmul %26, %35, %cst_34 {dimension_numbers = #tpu.dot_dimension_numbers<[1], [0], [0], [1], [0, 0, 1, 1], [], []>} : vector<16x64xbf16>, vector<64x64xbf16>, vector<16x64xf32> -> vector<16x64xf32>
    %37 = vector.broadcast %11 : vector<1x64xf32> to vector<16x64xf32>
    %38 = arith.addf %36, %37 : vector<16x64xf32>
    %c0_35 = arith.constant 0 : index
    %c2_36 = arith.constant 2 : index
    %c0_37 = arith.constant 0 : index
    %c0_38 = arith.constant 0 : index
    %39 = vector.load %arg3[%c0_35, %c2_36, %c0_37, %c0_38] : memref<2x4x64x64xbf16, #tpu.memory_space<vmem>>, vector<1x1x64x64xbf16>
    %40 = vector.shape_cast %39 : vector<1x1x64x64xbf16> to vector<64x64xbf16>
    %cst_39 = arith.constant dense<0.000000e+00> : vector<16x64xf32>
    %41 = tpu.matmul %26, %40, %cst_39 {dimension_numbers = #tpu.dot_dimension_numbers<[1], [0], [0], [1], [0, 0, 1, 1], [], []>} : vector<16x64xbf16>, vector<64x64xbf16>, vector<16x64xf32> -> vector<16x64xf32>
    %42 = vector.broadcast %13 : vector<1x64xf32> to vector<16x64xf32>
    %43 = arith.addf %41, %42 : vector<16x64xf32>
    %44 = arith.truncf %33 : vector<16x64xf32> to vector<16x64xbf16>
    %45 = arith.truncf %38 : vector<16x64xf32> to vector<16x64xbf16>
    %46 = arith.truncf %43 : vector<16x64xf32> to vector<16x64xbf16>
    %47 = vector.extract_strided_slice %44 {offsets = [0, 0], sizes = [16, 16], strides = [1, 1]} : vector<16x64xbf16> to vector<16x16xbf16>
    %48 = vector.extract_strided_slice %45 {offsets = [0, 0], sizes = [16, 16], strides = [1, 1]} : vector<16x64xbf16> to vector<16x16xbf16>
    %cst_40 = arith.constant dense<0.000000e+00> : vector<16x16xf32>
    %49 = tpu.matmul %47, %48, %cst_40 {dimension_numbers = #tpu.dot_dimension_numbers<[1], [1], [0], [0], [0, 0, 1, 0], [], []>} : vector<16x16xbf16>, vector<16x16xbf16>, vector<16x16xf32> -> vector<16x16xf32>
    %cst_41 = arith.constant dense<0xFF800000> : vector<16xf32>
    %50 = vector.multi_reduction <maximumf>, %49, %cst_41 [1] : vector<16x16xf32> to vector<16xf32>
    %51 = vector.shape_cast %50 : vector<16xf32> to vector<16x1xf32>
    %52 = vector.broadcast %51 : vector<16x1xf32> to vector<16x16xf32>
    %53 = arith.subf %49, %52 : vector<16x16xf32>
    %54 = math.exp %53 : vector<16x16xf32>
    %cst_42 = arith.constant dense<0.000000e+00> : vector<16xf32>
    %55 = vector.multi_reduction <add>, %54, %cst_42 [1] : vector<16x16xf32> to vector<16xf32>
    %56 = vector.shape_cast %55 : vector<16xf32> to vector<16x1xf32>
    %57 = tpu.reciprocal %56 {approx = true} : vector<16x1xf32> -> vector<16x1xf32>
    %58 = vector.broadcast %57 : vector<16x1xf32> to vector<16x16xf32>
    %59 = arith.mulf %54, %58 : vector<16x16xf32>
    %60 = arith.truncf %59 : vector<16x16xf32> to vector<16x16xbf16>
    %61 = vector.extract_strided_slice %46 {offsets = [0, 0], sizes = [16, 16], strides = [1, 1]} : vector<16x64xbf16> to vector<16x16xbf16>
    %cst_43 = arith.constant dense<0.000000e+00> : vector<16x16xf32>
    %62 = tpu.matmul %60, %61, %cst_43 {dimension_numbers = #tpu.dot_dimension_numbers<[1], [0], [0], [1], [0, 0, 1, 1], [], []>} : vector<16x16xbf16>, vector<16x16xbf16>, vector<16x16xf32> -> vector<16x16xf32>
    %63 = vector.extract_strided_slice %44 {offsets = [0, 16], sizes = [16, 16], strides = [1, 1]} : vector<16x64xbf16> to vector<16x16xbf16>
    %64 = vector.extract_strided_slice %45 {offsets = [0, 16], sizes = [16, 16], strides = [1, 1]} : vector<16x64xbf16> to vector<16x16xbf16>
    %cst_44 = arith.constant dense<0.000000e+00> : vector<16x16xf32>
    %65 = tpu.matmul %63, %64, %cst_44 {dimension_numbers = #tpu.dot_dimension_numbers<[1], [1], [0], [0], [0, 0, 1, 0], [], []>} : vector<16x16xbf16>, vector<16x16xbf16>, vector<16x16xf32> -> vector<16x16xf32>
    %cst_45 = arith.constant dense<0xFF800000> : vector<16xf32>
    %66 = vector.multi_reduction <maximumf>, %65, %cst_45 [1] : vector<16x16xf32> to vector<16xf32>
    %67 = vector.shape_cast %66 : vector<16xf32> to vector<16x1xf32>
    %68 = vector.broadcast %67 : vector<16x1xf32> to vector<16x16xf32>
    %69 = arith.subf %65, %68 : vector<16x16xf32>
    %70 = math.exp %69 : vector<16x16xf32>
    %cst_46 = arith.constant dense<0.000000e+00> : vector<16xf32>
    %71 = vector.multi_reduction <add>, %70, %cst_46 [1] : vector<16x16xf32> to vector<16xf32>
    %72 = vector.shape_cast %71 : vector<16xf32> to vector<16x1xf32>
    %73 = tpu.reciprocal %72 {approx = true} : vector<16x1xf32> -> vector<16x1xf32>
    %74 = vector.broadcast %73 : vector<16x1xf32> to vector<16x16xf32>
    %75 = arith.mulf %70, %74 : vector<16x16xf32>
    %76 = arith.truncf %75 : vector<16x16xf32> to vector<16x16xbf16>
    %77 = vector.extract_strided_slice %46 {offsets = [0, 16], sizes = [16, 16], strides = [1, 1]} : vector<16x64xbf16> to vector<16x16xbf16>
    %cst_47 = arith.constant dense<0.000000e+00> : vector<16x16xf32>
    %78 = tpu.matmul %76, %77, %cst_47 {dimension_numbers = #tpu.dot_dimension_numbers<[1], [0], [0], [1], [0, 0, 1, 1], [], []>} : vector<16x16xbf16>, vector<16x16xbf16>, vector<16x16xf32> -> vector<16x16xf32>
    %79 = vector.extract_strided_slice %44 {offsets = [0, 32], sizes = [16, 16], strides = [1, 1]} : vector<16x64xbf16> to vector<16x16xbf16>
    %80 = vector.extract_strided_slice %45 {offsets = [0, 32], sizes = [16, 16], strides = [1, 1]} : vector<16x64xbf16> to vector<16x16xbf16>
    %cst_48 = arith.constant dense<0.000000e+00> : vector<16x16xf32>
    %81 = tpu.matmul %79, %80, %cst_48 {dimension_numbers = #tpu.dot_dimension_numbers<[1], [1], [0], [0], [0, 0, 1, 0], [], []>} : vector<16x16xbf16>, vector<16x16xbf16>, vector<16x16xf32> -> vector<16x16xf32>
    %cst_49 = arith.constant dense<0xFF800000> : vector<16xf32>
    %82 = vector.multi_reduction <maximumf>, %81, %cst_49 [1] : vector<16x16xf32> to vector<16xf32>
    %83 = vector.shape_cast %82 : vector<16xf32> to vector<16x1xf32>
    %84 = vector.broadcast %83 : vector<16x1xf32> to vector<16x16xf32>
    %85 = arith.subf %81, %84 : vector<16x16xf32>
    %86 = math.exp %85 : vector<16x16xf32>
    %cst_50 = arith.constant dense<0.000000e+00> : vector<16xf32>
    %87 = vector.multi_reduction <add>, %86, %cst_50 [1] : vector<16x16xf32> to vector<16xf32>
    %88 = vector.shape_cast %87 : vector<16xf32> to vector<16x1xf32>
    %89 = tpu.reciprocal %88 {approx = true} : vector<16x1xf32> -> vector<16x1xf32>
    %90 = vector.broadcast %89 : vector<16x1xf32> to vector<16x16xf32>
    %91 = arith.mulf %86, %90 : vector<16x16xf32>
    %92 = arith.truncf %91 : vector<16x16xf32> to vector<16x16xbf16>
    %93 = vector.extract_strided_slice %46 {offsets = [0, 32], sizes = [16, 16], strides = [1, 1]} : vector<16x64xbf16> to vector<16x16xbf16>
    %cst_51 = arith.constant dense<0.000000e+00> : vector<16x16xf32>
    %94 = tpu.matmul %92, %93, %cst_51 {dimension_numbers = #tpu.dot_dimension_numbers<[1], [0], [0], [1], [0, 0, 1, 1], [], []>} : vector<16x16xbf16>, vector<16x16xbf16>, vector<16x16xf32> -> vector<16x16xf32>
    %95 = vector.extract_strided_slice %44 {offsets = [0, 48], sizes = [16, 16], strides = [1, 1]} : vector<16x64xbf16> to vector<16x16xbf16>
    %96 = vector.extract_strided_slice %45 {offsets = [0, 48], sizes = [16, 16], strides = [1, 1]} : vector<16x64xbf16> to vector<16x16xbf16>
    %cst_52 = arith.constant dense<0.000000e+00> : vector<16x16xf32>
    %97 = tpu.matmul %95, %96, %cst_52 {dimension_numbers = #tpu.dot_dimension_numbers<[1], [1], [0], [0], [0, 0, 1, 0], [], []>} : vector<16x16xbf16>, vector<16x16xbf16>, vector<16x16xf32> -> vector<16x16xf32>
    %cst_53 = arith.constant dense<0xFF800000> : vector<16xf32>
    %98 = vector.multi_reduction <maximumf>, %97, %cst_53 [1] : vector<16x16xf32> to vector<16xf32>
    %99 = vector.shape_cast %98 : vector<16xf32> to vector<16x1xf32>
    %100 = vector.broadcast %99 : vector<16x1xf32> to vector<16x16xf32>
    %101 = arith.subf %97, %100 : vector<16x16xf32>
    %102 = math.exp %101 : vector<16x16xf32>
    %cst_54 = arith.constant dense<0.000000e+00> : vector<16xf32>
    %103 = vector.multi_reduction <add>, %102, %cst_54 [1] : vector<16x16xf32> to vector<16xf32>
    %104 = vector.shape_cast %103 : vector<16xf32> to vector<16x1xf32>
    %105 = tpu.reciprocal %104 {approx = true} : vector<16x1xf32> -> vector<16x1xf32>
    %106 = vector.broadcast %105 : vector<16x1xf32> to vector<16x16xf32>
    %107 = arith.mulf %102, %106 : vector<16x16xf32>
    %108 = arith.truncf %107 : vector<16x16xf32> to vector<16x16xbf16>
    %109 = vector.extract_strided_slice %46 {offsets = [0, 48], sizes = [16, 16], strides = [1, 1]} : vector<16x64xbf16> to vector<16x16xbf16>
    %cst_55 = arith.constant dense<0.000000e+00> : vector<16x16xf32>
    %110 = tpu.matmul %108, %109, %cst_55 {dimension_numbers = #tpu.dot_dimension_numbers<[1], [0], [0], [1], [0, 0, 1, 1], [], []>} : vector<16x16xbf16>, vector<16x16xbf16>, vector<16x16xf32> -> vector<16x16xf32>
    %111 = tpu.concatenate %62, %78, %94, %110 in 1 : vector<16x16xf32>, vector<16x16xf32>, vector<16x16xf32>, vector<16x16xf32> -> vector<16x64xf32>
    %112 = arith.truncf %111 : vector<16x64xf32> to vector<16x64xbf16>
    %c0_56 = arith.constant 0 : index
    %c3_57 = arith.constant 3 : index
    %c0_58 = arith.constant 0 : index
    %c0_59 = arith.constant 0 : index
    %113 = vector.load %arg3[%c0_56, %c3_57, %c0_58, %c0_59] : memref<2x4x64x64xbf16, #tpu.memory_space<vmem>>, vector<1x1x64x64xbf16>
    %114 = vector.shape_cast %113 : vector<1x1x64x64xbf16> to vector<64x64xbf16>
    %cst_60 = arith.constant dense<0.000000e+00> : vector<16x64xf32>
    %115 = tpu.matmul %112, %114, %cst_60 {dimension_numbers = #tpu.dot_dimension_numbers<[1], [0], [0], [1], [0, 0, 1, 1], [], []>} : vector<16x64xbf16>, vector<64x64xbf16>, vector<16x64xf32> -> vector<16x64xf32>
    %116 = vector.broadcast %15 : vector<1x64xf32> to vector<16x64xf32>
    %117 = arith.addf %115, %116 : vector<16x64xf32>
    %118 = arith.addf %7, %117 : vector<16x64xf32>
    %cst_61 = arith.constant dense<0.000000e+00> : vector<16xf32>
    %119 = vector.multi_reduction <add>, %118, %cst_61 [1] : vector<16x64xf32> to vector<16xf32>
    %120 = vector.shape_cast %119 : vector<16xf32> to vector<16x1xf32>
    %cst_62 = arith.constant 6.400000e+01 : f32
    %121 = vector.broadcast %cst_62 : f32 to vector<16x1xf32>
    %122 = arith.divf %120, %121 : vector<16x1xf32>
    %123 = vector.broadcast %122 : vector<16x1xf32> to vector<16x64xf32>
    %124 = arith.subf %118, %123 : vector<16x64xf32>
    %125 = arith.mulf %124, %124 : vector<16x64xf32>
    %cst_63 = arith.constant dense<0.000000e+00> : vector<16xf32>
    %126 = vector.multi_reduction <add>, %125, %cst_63 [1] : vector<16x64xf32> to vector<16xf32>
    %127 = vector.shape_cast %126 : vector<16xf32> to vector<16x1xf32>
    %cst_64 = arith.constant 6.400000e+01 : f32
    %128 = vector.broadcast %cst_64 : f32 to vector<16x1xf32>
    %129 = arith.divf %127, %128 : vector<16x1xf32>
    %130 = vector.broadcast %122 : vector<16x1xf32> to vector<16x64xf32>
    %131 = arith.subf %118, %130 : vector<16x64xf32>
    %cst_65 = arith.constant 9.99999974E-6 : f32
    %132 = vector.broadcast %cst_65 : f32 to vector<16x1xf32>
    %133 = arith.addf %129, %132 : vector<16x1xf32>
    %134 = math.rsqrt %133 : vector<16x1xf32>
    %135 = vector.broadcast %134 : vector<16x1xf32> to vector<16x64xf32>
    %136 = arith.mulf %131, %135 : vector<16x64xf32>
    %137 = vector.broadcast %17 : vector<1x64xf32> to vector<16x64xf32>
    %138 = arith.mulf %136, %137 : vector<16x64xf32>
    %139 = vector.broadcast %19 : vector<1x64xf32> to vector<16x64xf32>
    %140 = arith.addf %138, %139 : vector<16x64xf32>
    %141 = arith.truncf %140 : vector<16x64xf32> to vector<16x64xbf16>
    %cst_66 = arith.constant 0.000000e+00 : f32
    %142 = vector.broadcast %cst_66 : f32 to vector<16x64xf32>
    %c0_67 = arith.constant 0 : index
    %c0_68 = arith.constant 0 : index
    %c0_69 = arith.constant 0 : index
    %c0_70 = arith.constant 0 : index
    %143 = vector.load %arg5[%c0_67, %c0_68, %c0_69, %c0_70] : memref<2x4x64x512xbf16, #tpu.memory_space<vmem>>, vector<1x1x64x512xbf16>
    %144 = vector.shape_cast %143 : vector<1x1x64x512xbf16> to vector<64x512xbf16>
    %cst_71 = arith.constant dense<0.000000e+00> : vector<16x512xf32>
    %145 = tpu.matmul %141, %144, %cst_71 {dimension_numbers = #tpu.dot_dimension_numbers<[1], [0], [0], [1], [0, 0, 1, 1], [], []>} : vector<16x64xbf16>, vector<64x512xbf16>, vector<16x512xf32> -> vector<16x512xf32>
    %c0_72 = arith.constant 0 : index
    %c0_73 = arith.constant 0 : index
    %c0_74 = arith.constant 0 : index
    %c0_75 = arith.constant 0 : index
    %146 = vector.load %arg6[%c0_72, %c0_73, %c0_74, %c0_75] : memref<2x4x1x512xf32, #tpu.memory_space<vmem>>, vector<1x1x1x512xf32>
    %147 = vector.shape_cast %146 : vector<1x1x1x512xf32> to vector<1x512xf32>
    %148 = vector.broadcast %147 : vector<1x512xf32> to vector<16x512xf32>
    %149 = arith.addf %145, %148 : vector<16x512xf32>
    %cst_76 = arith.constant 0.000000e+00 : f32
    %150 = vector.broadcast %cst_76 : f32 to vector<16x512xf32>
    %151 = arith.maximumf %149, %150 : vector<16x512xf32>
    %152 = arith.truncf %151 : vector<16x512xf32> to vector<16x512xbf16>
    %c0_77 = arith.constant 0 : index
    %c0_78 = arith.constant 0 : index
    %c0_79 = arith.constant 0 : index
    %c0_80 = arith.constant 0 : index
    %153 = vector.load %arg7[%c0_77, %c0_78, %c0_79, %c0_80] : memref<2x4x512x64xbf16, #tpu.memory_space<vmem>>, vector<1x1x512x64xbf16>
    %154 = vector.shape_cast %153 : vector<1x1x512x64xbf16> to vector<512x64xbf16>
    %cst_81 = arith.constant dense<0.000000e+00> : vector<16x64xf32>
    %155 = tpu.matmul %152, %154, %cst_81 {dimension_numbers = #tpu.dot_dimension_numbers<[1], [0], [0], [1], [0, 0, 1, 1], [], []>} : vector<16x512xbf16>, vector<512x64xbf16>, vector<16x64xf32> -> vector<16x64xf32>
    %156 = arith.addf %142, %155 : vector<16x64xf32>
    %c0_82 = arith.constant 0 : index
    %c1_83 = arith.constant 1 : index
    %c0_84 = arith.constant 0 : index
    %c0_85 = arith.constant 0 : index
    %157 = vector.load %arg5[%c0_82, %c1_83, %c0_84, %c0_85] : memref<2x4x64x512xbf16, #tpu.memory_space<vmem>>, vector<1x1x64x512xbf16>
    %158 = vector.shape_cast %157 : vector<1x1x64x512xbf16> to vector<64x512xbf16>
    %cst_86 = arith.constant dense<0.000000e+00> : vector<16x512xf32>
    %159 = tpu.matmul %141, %158, %cst_86 {dimension_numbers = #tpu.dot_dimension_numbers<[1], [0], [0], [1], [0, 0, 1, 1], [], []>} : vector<16x64xbf16>, vector<64x512xbf16>, vector<16x512xf32> -> vector<16x512xf32>
    %c0_87 = arith.constant 0 : index
    %c1_88 = arith.constant 1 : index
    %c0_89 = arith.constant 0 : index
    %c0_90 = arith.constant 0 : index
    %160 = vector.load %arg6[%c0_87, %c1_88, %c0_89, %c0_90] : memref<2x4x1x512xf32, #tpu.memory_space<vmem>>, vector<1x1x1x512xf32>
    %161 = vector.shape_cast %160 : vector<1x1x1x512xf32> to vector<1x512xf32>
    %162 = vector.broadcast %161 : vector<1x512xf32> to vector<16x512xf32>
    %163 = arith.addf %159, %162 : vector<16x512xf32>
    %cst_91 = arith.constant 0.000000e+00 : f32
    %164 = vector.broadcast %cst_91 : f32 to vector<16x512xf32>
    %165 = arith.maximumf %163, %164 : vector<16x512xf32>
    %166 = arith.truncf %165 : vector<16x512xf32> to vector<16x512xbf16>
    %c0_92 = arith.constant 0 : index
    %c1_93 = arith.constant 1 : index
    %c0_94 = arith.constant 0 : index
    %c0_95 = arith.constant 0 : index
    %167 = vector.load %arg7[%c0_92, %c1_93, %c0_94, %c0_95] : memref<2x4x512x64xbf16, #tpu.memory_space<vmem>>, vector<1x1x512x64xbf16>
    %168 = vector.shape_cast %167 : vector<1x1x512x64xbf16> to vector<512x64xbf16>
    %cst_96 = arith.constant dense<0.000000e+00> : vector<16x64xf32>
    %169 = tpu.matmul %166, %168, %cst_96 {dimension_numbers = #tpu.dot_dimension_numbers<[1], [0], [0], [1], [0, 0, 1, 1], [], []>} : vector<16x512xbf16>, vector<512x64xbf16>, vector<16x64xf32> -> vector<16x64xf32>
    %170 = arith.addf %156, %169 : vector<16x64xf32>
    %c0_97 = arith.constant 0 : index
    %c2_98 = arith.constant 2 : index
    %c0_99 = arith.constant 0 : index
    %c0_100 = arith.constant 0 : index
    %171 = vector.load %arg5[%c0_97, %c2_98, %c0_99, %c0_100] : memref<2x4x64x512xbf16, #tpu.memory_space<vmem>>, vector<1x1x64x512xbf16>
    %172 = vector.shape_cast %171 : vector<1x1x64x512xbf16> to vector<64x512xbf16>
    %cst_101 = arith.constant dense<0.000000e+00> : vector<16x512xf32>
    %173 = tpu.matmul %141, %172, %cst_101 {dimension_numbers = #tpu.dot_dimension_numbers<[1], [0], [0], [1], [0, 0, 1, 1], [], []>} : vector<16x64xbf16>, vector<64x512xbf16>, vector<16x512xf32> -> vector<16x512xf32>
    %c0_102 = arith.constant 0 : index
    %c2_103 = arith.constant 2 : index
    %c0_104 = arith.constant 0 : index
    %c0_105 = arith.constant 0 : index
    %174 = vector.load %arg6[%c0_102, %c2_103, %c0_104, %c0_105] : memref<2x4x1x512xf32, #tpu.memory_space<vmem>>, vector<1x1x1x512xf32>
    %175 = vector.shape_cast %174 : vector<1x1x1x512xf32> to vector<1x512xf32>
    %176 = vector.broadcast %175 : vector<1x512xf32> to vector<16x512xf32>
    %177 = arith.addf %173, %176 : vector<16x512xf32>
    %cst_106 = arith.constant 0.000000e+00 : f32
    %178 = vector.broadcast %cst_106 : f32 to vector<16x512xf32>
    %179 = arith.maximumf %177, %178 : vector<16x512xf32>
    %180 = arith.truncf %179 : vector<16x512xf32> to vector<16x512xbf16>
    %c0_107 = arith.constant 0 : index
    %c2_108 = arith.constant 2 : index
    %c0_109 = arith.constant 0 : index
    %c0_110 = arith.constant 0 : index
    %181 = vector.load %arg7[%c0_107, %c2_108, %c0_109, %c0_110] : memref<2x4x512x64xbf16, #tpu.memory_space<vmem>>, vector<1x1x512x64xbf16>
    %182 = vector.shape_cast %181 : vector<1x1x512x64xbf16> to vector<512x64xbf16>
    %cst_111 = arith.constant dense<0.000000e+00> : vector<16x64xf32>
    %183 = tpu.matmul %180, %182, %cst_111 {dimension_numbers = #tpu.dot_dimension_numbers<[1], [0], [0], [1], [0, 0, 1, 1], [], []>} : vector<16x512xbf16>, vector<512x64xbf16>, vector<16x64xf32> -> vector<16x64xf32>
    %184 = arith.addf %170, %183 : vector<16x64xf32>
    %c0_112 = arith.constant 0 : index
    %c3_113 = arith.constant 3 : index
    %c0_114 = arith.constant 0 : index
    %c0_115 = arith.constant 0 : index
    %185 = vector.load %arg5[%c0_112, %c3_113, %c0_114, %c0_115] : memref<2x4x64x512xbf16, #tpu.memory_space<vmem>>, vector<1x1x64x512xbf16>
    %186 = vector.shape_cast %185 : vector<1x1x64x512xbf16> to vector<64x512xbf16>
    %cst_116 = arith.constant dense<0.000000e+00> : vector<16x512xf32>
    %187 = tpu.matmul %141, %186, %cst_116 {dimension_numbers = #tpu.dot_dimension_numbers<[1], [0], [0], [1], [0, 0, 1, 1], [], []>} : vector<16x64xbf16>, vector<64x512xbf16>, vector<16x512xf32> -> vector<16x512xf32>
    %c0_117 = arith.constant 0 : index
    %c3_118 = arith.constant 3 : index
    %c0_119 = arith.constant 0 : index
    %c0_120 = arith.constant 0 : index
    %188 = vector.load %arg6[%c0_117, %c3_118, %c0_119, %c0_120] : memref<2x4x1x512xf32, #tpu.memory_space<vmem>>, vector<1x1x1x512xf32>
    %189 = vector.shape_cast %188 : vector<1x1x1x512xf32> to vector<1x512xf32>
    %190 = vector.broadcast %189 : vector<1x512xf32> to vector<16x512xf32>
    %191 = arith.addf %187, %190 : vector<16x512xf32>
    %cst_121 = arith.constant 0.000000e+00 : f32
    %192 = vector.broadcast %cst_121 : f32 to vector<16x512xf32>
    %193 = arith.maximumf %191, %192 : vector<16x512xf32>
    %194 = arith.truncf %193 : vector<16x512xf32> to vector<16x512xbf16>
    %c0_122 = arith.constant 0 : index
    %c3_123 = arith.constant 3 : index
    %c0_124 = arith.constant 0 : index
    %c0_125 = arith.constant 0 : index
    %195 = vector.load %arg7[%c0_122, %c3_123, %c0_124, %c0_125] : memref<2x4x512x64xbf16, #tpu.memory_space<vmem>>, vector<1x1x512x64xbf16>
    %196 = vector.shape_cast %195 : vector<1x1x512x64xbf16> to vector<512x64xbf16>
    %cst_126 = arith.constant dense<0.000000e+00> : vector<16x64xf32>
    %197 = tpu.matmul %194, %196, %cst_126 {dimension_numbers = #tpu.dot_dimension_numbers<[1], [0], [0], [1], [0, 0, 1, 1], [], []>} : vector<16x512xbf16>, vector<512x64xbf16>, vector<16x64xf32> -> vector<16x64xf32>
    %198 = arith.addf %184, %197 : vector<16x64xf32>
    %199 = vector.broadcast %21 : vector<1x64xf32> to vector<16x64xf32>
    %200 = arith.addf %198, %199 : vector<16x64xf32>
    %201 = arith.addf %140, %200 : vector<16x64xf32>
    %cst_127 = arith.constant dense<0.000000e+00> : vector<16xf32>
    %202 = vector.multi_reduction <add>, %201, %cst_127 [1] : vector<16x64xf32> to vector<16xf32>
    %203 = vector.shape_cast %202 : vector<16xf32> to vector<16x1xf32>
    %cst_128 = arith.constant 6.400000e+01 : f32
    %204 = vector.broadcast %cst_128 : f32 to vector<16x1xf32>
    %205 = arith.divf %203, %204 : vector<16x1xf32>
    %206 = vector.broadcast %205 : vector<16x1xf32> to vector<16x64xf32>
    %207 = arith.subf %201, %206 : vector<16x64xf32>
    %208 = arith.mulf %207, %207 : vector<16x64xf32>
    %cst_129 = arith.constant dense<0.000000e+00> : vector<16xf32>
    %209 = vector.multi_reduction <add>, %208, %cst_129 [1] : vector<16x64xf32> to vector<16xf32>
    %210 = vector.shape_cast %209 : vector<16xf32> to vector<16x1xf32>
    %cst_130 = arith.constant 6.400000e+01 : f32
    %211 = vector.broadcast %cst_130 : f32 to vector<16x1xf32>
    %212 = arith.divf %210, %211 : vector<16x1xf32>
    %213 = vector.broadcast %205 : vector<16x1xf32> to vector<16x64xf32>
    %214 = arith.subf %201, %213 : vector<16x64xf32>
    %cst_131 = arith.constant 9.99999974E-6 : f32
    %215 = vector.broadcast %cst_131 : f32 to vector<16x1xf32>
    %216 = arith.addf %212, %215 : vector<16x1xf32>
    %217 = math.rsqrt %216 : vector<16x1xf32>
    %218 = vector.broadcast %217 : vector<16x1xf32> to vector<16x64xf32>
    %219 = arith.mulf %214, %218 : vector<16x64xf32>
    %220 = vector.broadcast %23 : vector<1x64xf32> to vector<16x64xf32>
    %221 = arith.mulf %219, %220 : vector<16x64xf32>
    %222 = vector.broadcast %25 : vector<1x64xf32> to vector<16x64xf32>
    %223 = arith.addf %221, %222 : vector<16x64xf32>
    %c1_132 = arith.constant 1 : index
    %c0_133 = arith.constant 0 : index
    %c0_134 = arith.constant 0 : index
    %224 = vector.load %arg4[%c1_132, %c0_133, %c0_134] : memref<2x9x64xf32, #tpu.memory_space<vmem>>, vector<1x1x64xf32>
    %225 = vector.shape_cast %224 : vector<1x1x64xf32> to vector<1x64xf32>
    %c1_135 = arith.constant 1 : index
    %c1_136 = arith.constant 1 : index
    %c0_137 = arith.constant 0 : index
    %226 = vector.load %arg4[%c1_135, %c1_136, %c0_137] : memref<2x9x64xf32, #tpu.memory_space<vmem>>, vector<1x1x64xf32>
    %227 = vector.shape_cast %226 : vector<1x1x64xf32> to vector<1x64xf32>
    %c1_138 = arith.constant 1 : index
    %c2_139 = arith.constant 2 : index
    %c0_140 = arith.constant 0 : index
    %228 = vector.load %arg4[%c1_138, %c2_139, %c0_140] : memref<2x9x64xf32, #tpu.memory_space<vmem>>, vector<1x1x64xf32>
    %229 = vector.shape_cast %228 : vector<1x1x64xf32> to vector<1x64xf32>
    %c1_141 = arith.constant 1 : index
    %c3_142 = arith.constant 3 : index
    %c0_143 = arith.constant 0 : index
    %230 = vector.load %arg4[%c1_141, %c3_142, %c0_143] : memref<2x9x64xf32, #tpu.memory_space<vmem>>, vector<1x1x64xf32>
    %231 = vector.shape_cast %230 : vector<1x1x64xf32> to vector<1x64xf32>
    %c1_144 = arith.constant 1 : index
    %c4_145 = arith.constant 4 : index
    %c0_146 = arith.constant 0 : index
    %232 = vector.load %arg4[%c1_144, %c4_145, %c0_146] : memref<2x9x64xf32, #tpu.memory_space<vmem>>, vector<1x1x64xf32>
    %233 = vector.shape_cast %232 : vector<1x1x64xf32> to vector<1x64xf32>
    %c1_147 = arith.constant 1 : index
    %c5_148 = arith.constant 5 : index
    %c0_149 = arith.constant 0 : index
    %234 = vector.load %arg4[%c1_147, %c5_148, %c0_149] : memref<2x9x64xf32, #tpu.memory_space<vmem>>, vector<1x1x64xf32>
    %235 = vector.shape_cast %234 : vector<1x1x64xf32> to vector<1x64xf32>
    %c1_150 = arith.constant 1 : index
    %c6_151 = arith.constant 6 : index
    %c0_152 = arith.constant 0 : index
    %236 = vector.load %arg4[%c1_150, %c6_151, %c0_152] : memref<2x9x64xf32, #tpu.memory_space<vmem>>, vector<1x1x64xf32>
    %237 = vector.shape_cast %236 : vector<1x1x64xf32> to vector<1x64xf32>
    %c1_153 = arith.constant 1 : index
    %c7_154 = arith.constant 7 : index
    %c0_155 = arith.constant 0 : index
    %238 = vector.load %arg4[%c1_153, %c7_154, %c0_155] : memref<2x9x64xf32, #tpu.memory_space<vmem>>, vector<1x1x64xf32>
    %239 = vector.shape_cast %238 : vector<1x1x64xf32> to vector<1x64xf32>
    %c1_156 = arith.constant 1 : index
    %c8_157 = arith.constant 8 : index
    %c0_158 = arith.constant 0 : index
    %240 = vector.load %arg4[%c1_156, %c8_157, %c0_158] : memref<2x9x64xf32, #tpu.memory_space<vmem>>, vector<1x1x64xf32>
    %241 = vector.shape_cast %240 : vector<1x1x64xf32> to vector<1x64xf32>
    %242 = arith.truncf %223 : vector<16x64xf32> to vector<16x64xbf16>
    %c1_159 = arith.constant 1 : index
    %c0_160 = arith.constant 0 : index
    %c0_161 = arith.constant 0 : index
    %c0_162 = arith.constant 0 : index
    %243 = vector.load %arg3[%c1_159, %c0_160, %c0_161, %c0_162] : memref<2x4x64x64xbf16, #tpu.memory_space<vmem>>, vector<1x1x64x64xbf16>
    %244 = vector.shape_cast %243 : vector<1x1x64x64xbf16> to vector<64x64xbf16>
    %cst_163 = arith.constant dense<0.000000e+00> : vector<16x64xf32>
    %245 = tpu.matmul %242, %244, %cst_163 {dimension_numbers = #tpu.dot_dimension_numbers<[1], [0], [0], [1], [0, 0, 1, 1], [], []>} : vector<16x64xbf16>, vector<64x64xbf16>, vector<16x64xf32> -> vector<16x64xf32>
    %246 = vector.broadcast %225 : vector<1x64xf32> to vector<16x64xf32>
    %247 = arith.addf %245, %246 : vector<16x64xf32>
    %cst_164 = arith.constant 2.500000e-01 : f32
    %248 = vector.broadcast %cst_164 : f32 to vector<16x64xf32>
    %249 = arith.mulf %247, %248 : vector<16x64xf32>
    %c1_165 = arith.constant 1 : index
    %c1_166 = arith.constant 1 : index
    %c0_167 = arith.constant 0 : index
    %c0_168 = arith.constant 0 : index
    %250 = vector.load %arg3[%c1_165, %c1_166, %c0_167, %c0_168] : memref<2x4x64x64xbf16, #tpu.memory_space<vmem>>, vector<1x1x64x64xbf16>
    %251 = vector.shape_cast %250 : vector<1x1x64x64xbf16> to vector<64x64xbf16>
    %cst_169 = arith.constant dense<0.000000e+00> : vector<16x64xf32>
    %252 = tpu.matmul %242, %251, %cst_169 {dimension_numbers = #tpu.dot_dimension_numbers<[1], [0], [0], [1], [0, 0, 1, 1], [], []>} : vector<16x64xbf16>, vector<64x64xbf16>, vector<16x64xf32> -> vector<16x64xf32>
    %253 = vector.broadcast %227 : vector<1x64xf32> to vector<16x64xf32>
    %254 = arith.addf %252, %253 : vector<16x64xf32>
    %c1_170 = arith.constant 1 : index
    %c2_171 = arith.constant 2 : index
    %c0_172 = arith.constant 0 : index
    %c0_173 = arith.constant 0 : index
    %255 = vector.load %arg3[%c1_170, %c2_171, %c0_172, %c0_173] : memref<2x4x64x64xbf16, #tpu.memory_space<vmem>>, vector<1x1x64x64xbf16>
    %256 = vector.shape_cast %255 : vector<1x1x64x64xbf16> to vector<64x64xbf16>
    %cst_174 = arith.constant dense<0.000000e+00> : vector<16x64xf32>
    %257 = tpu.matmul %242, %256, %cst_174 {dimension_numbers = #tpu.dot_dimension_numbers<[1], [0], [0], [1], [0, 0, 1, 1], [], []>} : vector<16x64xbf16>, vector<64x64xbf16>, vector<16x64xf32> -> vector<16x64xf32>
    %258 = vector.broadcast %229 : vector<1x64xf32> to vector<16x64xf32>
    %259 = arith.addf %257, %258 : vector<16x64xf32>
    %260 = arith.truncf %249 : vector<16x64xf32> to vector<16x64xbf16>
    %261 = arith.truncf %254 : vector<16x64xf32> to vector<16x64xbf16>
    %262 = arith.truncf %259 : vector<16x64xf32> to vector<16x64xbf16>
    %263 = vector.extract_strided_slice %260 {offsets = [0, 0], sizes = [16, 16], strides = [1, 1]} : vector<16x64xbf16> to vector<16x16xbf16>
    %264 = vector.extract_strided_slice %261 {offsets = [0, 0], sizes = [16, 16], strides = [1, 1]} : vector<16x64xbf16> to vector<16x16xbf16>
    %cst_175 = arith.constant dense<0.000000e+00> : vector<16x16xf32>
    %265 = tpu.matmul %263, %264, %cst_175 {dimension_numbers = #tpu.dot_dimension_numbers<[1], [1], [0], [0], [0, 0, 1, 0], [], []>} : vector<16x16xbf16>, vector<16x16xbf16>, vector<16x16xf32> -> vector<16x16xf32>
    %cst_176 = arith.constant dense<0xFF800000> : vector<16xf32>
    %266 = vector.multi_reduction <maximumf>, %265, %cst_176 [1] : vector<16x16xf32> to vector<16xf32>
    %267 = vector.shape_cast %266 : vector<16xf32> to vector<16x1xf32>
    %268 = vector.broadcast %267 : vector<16x1xf32> to vector<16x16xf32>
    %269 = arith.subf %265, %268 : vector<16x16xf32>
    %270 = math.exp %269 : vector<16x16xf32>
    %cst_177 = arith.constant dense<0.000000e+00> : vector<16xf32>
    %271 = vector.multi_reduction <add>, %270, %cst_177 [1] : vector<16x16xf32> to vector<16xf32>
    %272 = vector.shape_cast %271 : vector<16xf32> to vector<16x1xf32>
    %273 = tpu.reciprocal %272 {approx = true} : vector<16x1xf32> -> vector<16x1xf32>
    %274 = vector.broadcast %273 : vector<16x1xf32> to vector<16x16xf32>
    %275 = arith.mulf %270, %274 : vector<16x16xf32>
    %276 = arith.truncf %275 : vector<16x16xf32> to vector<16x16xbf16>
    %277 = vector.extract_strided_slice %262 {offsets = [0, 0], sizes = [16, 16], strides = [1, 1]} : vector<16x64xbf16> to vector<16x16xbf16>
    %cst_178 = arith.constant dense<0.000000e+00> : vector<16x16xf32>
    %278 = tpu.matmul %276, %277, %cst_178 {dimension_numbers = #tpu.dot_dimension_numbers<[1], [0], [0], [1], [0, 0, 1, 1], [], []>} : vector<16x16xbf16>, vector<16x16xbf16>, vector<16x16xf32> -> vector<16x16xf32>
    %279 = vector.extract_strided_slice %260 {offsets = [0, 16], sizes = [16, 16], strides = [1, 1]} : vector<16x64xbf16> to vector<16x16xbf16>
    %280 = vector.extract_strided_slice %261 {offsets = [0, 16], sizes = [16, 16], strides = [1, 1]} : vector<16x64xbf16> to vector<16x16xbf16>
    %cst_179 = arith.constant dense<0.000000e+00> : vector<16x16xf32>
    %281 = tpu.matmul %279, %280, %cst_179 {dimension_numbers = #tpu.dot_dimension_numbers<[1], [1], [0], [0], [0, 0, 1, 0], [], []>} : vector<16x16xbf16>, vector<16x16xbf16>, vector<16x16xf32> -> vector<16x16xf32>
    %cst_180 = arith.constant dense<0xFF800000> : vector<16xf32>
    %282 = vector.multi_reduction <maximumf>, %281, %cst_180 [1] : vector<16x16xf32> to vector<16xf32>
    %283 = vector.shape_cast %282 : vector<16xf32> to vector<16x1xf32>
    %284 = vector.broadcast %283 : vector<16x1xf32> to vector<16x16xf32>
    %285 = arith.subf %281, %284 : vector<16x16xf32>
    %286 = math.exp %285 : vector<16x16xf32>
    %cst_181 = arith.constant dense<0.000000e+00> : vector<16xf32>
    %287 = vector.multi_reduction <add>, %286, %cst_181 [1] : vector<16x16xf32> to vector<16xf32>
    %288 = vector.shape_cast %287 : vector<16xf32> to vector<16x1xf32>
    %289 = tpu.reciprocal %288 {approx = true} : vector<16x1xf32> -> vector<16x1xf32>
    %290 = vector.broadcast %289 : vector<16x1xf32> to vector<16x16xf32>
    %291 = arith.mulf %286, %290 : vector<16x16xf32>
    %292 = arith.truncf %291 : vector<16x16xf32> to vector<16x16xbf16>
    %293 = vector.extract_strided_slice %262 {offsets = [0, 16], sizes = [16, 16], strides = [1, 1]} : vector<16x64xbf16> to vector<16x16xbf16>
    %cst_182 = arith.constant dense<0.000000e+00> : vector<16x16xf32>
    %294 = tpu.matmul %292, %293, %cst_182 {dimension_numbers = #tpu.dot_dimension_numbers<[1], [0], [0], [1], [0, 0, 1, 1], [], []>} : vector<16x16xbf16>, vector<16x16xbf16>, vector<16x16xf32> -> vector<16x16xf32>
    %295 = vector.extract_strided_slice %260 {offsets = [0, 32], sizes = [16, 16], strides = [1, 1]} : vector<16x64xbf16> to vector<16x16xbf16>
    %296 = vector.extract_strided_slice %261 {offsets = [0, 32], sizes = [16, 16], strides = [1, 1]} : vector<16x64xbf16> to vector<16x16xbf16>
    %cst_183 = arith.constant dense<0.000000e+00> : vector<16x16xf32>
    %297 = tpu.matmul %295, %296, %cst_183 {dimension_numbers = #tpu.dot_dimension_numbers<[1], [1], [0], [0], [0, 0, 1, 0], [], []>} : vector<16x16xbf16>, vector<16x16xbf16>, vector<16x16xf32> -> vector<16x16xf32>
    %cst_184 = arith.constant dense<0xFF800000> : vector<16xf32>
    %298 = vector.multi_reduction <maximumf>, %297, %cst_184 [1] : vector<16x16xf32> to vector<16xf32>
    %299 = vector.shape_cast %298 : vector<16xf32> to vector<16x1xf32>
    %300 = vector.broadcast %299 : vector<16x1xf32> to vector<16x16xf32>
    %301 = arith.subf %297, %300 : vector<16x16xf32>
    %302 = math.exp %301 : vector<16x16xf32>
    %cst_185 = arith.constant dense<0.000000e+00> : vector<16xf32>
    %303 = vector.multi_reduction <add>, %302, %cst_185 [1] : vector<16x16xf32> to vector<16xf32>
    %304 = vector.shape_cast %303 : vector<16xf32> to vector<16x1xf32>
    %305 = tpu.reciprocal %304 {approx = true} : vector<16x1xf32> -> vector<16x1xf32>
    %306 = vector.broadcast %305 : vector<16x1xf32> to vector<16x16xf32>
    %307 = arith.mulf %302, %306 : vector<16x16xf32>
    %308 = arith.truncf %307 : vector<16x16xf32> to vector<16x16xbf16>
    %309 = vector.extract_strided_slice %262 {offsets = [0, 32], sizes = [16, 16], strides = [1, 1]} : vector<16x64xbf16> to vector<16x16xbf16>
    %cst_186 = arith.constant dense<0.000000e+00> : vector<16x16xf32>
    %310 = tpu.matmul %308, %309, %cst_186 {dimension_numbers = #tpu.dot_dimension_numbers<[1], [0], [0], [1], [0, 0, 1, 1], [], []>} : vector<16x16xbf16>, vector<16x16xbf16>, vector<16x16xf32> -> vector<16x16xf32>
    %311 = vector.extract_strided_slice %260 {offsets = [0, 48], sizes = [16, 16], strides = [1, 1]} : vector<16x64xbf16> to vector<16x16xbf16>
    %312 = vector.extract_strided_slice %261 {offsets = [0, 48], sizes = [16, 16], strides = [1, 1]} : vector<16x64xbf16> to vector<16x16xbf16>
    %cst_187 = arith.constant dense<0.000000e+00> : vector<16x16xf32>
    %313 = tpu.matmul %311, %312, %cst_187 {dimension_numbers = #tpu.dot_dimension_numbers<[1], [1], [0], [0], [0, 0, 1, 0], [], []>} : vector<16x16xbf16>, vector<16x16xbf16>, vector<16x16xf32> -> vector<16x16xf32>
    %cst_188 = arith.constant dense<0xFF800000> : vector<16xf32>
    %314 = vector.multi_reduction <maximumf>, %313, %cst_188 [1] : vector<16x16xf32> to vector<16xf32>
    %315 = vector.shape_cast %314 : vector<16xf32> to vector<16x1xf32>
    %316 = vector.broadcast %315 : vector<16x1xf32> to vector<16x16xf32>
    %317 = arith.subf %313, %316 : vector<16x16xf32>
    %318 = math.exp %317 : vector<16x16xf32>
    %cst_189 = arith.constant dense<0.000000e+00> : vector<16xf32>
    %319 = vector.multi_reduction <add>, %318, %cst_189 [1] : vector<16x16xf32> to vector<16xf32>
    %320 = vector.shape_cast %319 : vector<16xf32> to vector<16x1xf32>
    %321 = tpu.reciprocal %320 {approx = true} : vector<16x1xf32> -> vector<16x1xf32>
    %322 = vector.broadcast %321 : vector<16x1xf32> to vector<16x16xf32>
    %323 = arith.mulf %318, %322 : vector<16x16xf32>
    %324 = arith.truncf %323 : vector<16x16xf32> to vector<16x16xbf16>
    %325 = vector.extract_strided_slice %262 {offsets = [0, 48], sizes = [16, 16], strides = [1, 1]} : vector<16x64xbf16> to vector<16x16xbf16>
    %cst_190 = arith.constant dense<0.000000e+00> : vector<16x16xf32>
    %326 = tpu.matmul %324, %325, %cst_190 {dimension_numbers = #tpu.dot_dimension_numbers<[1], [0], [0], [1], [0, 0, 1, 1], [], []>} : vector<16x16xbf16>, vector<16x16xbf16>, vector<16x16xf32> -> vector<16x16xf32>
    %327 = tpu.concatenate %278, %294, %310, %326 in 1 : vector<16x16xf32>, vector<16x16xf32>, vector<16x16xf32>, vector<16x16xf32> -> vector<16x64xf32>
    %328 = arith.truncf %327 : vector<16x64xf32> to vector<16x64xbf16>
    %c1_191 = arith.constant 1 : index
    %c3_192 = arith.constant 3 : index
    %c0_193 = arith.constant 0 : index
    %c0_194 = arith.constant 0 : index
    %329 = vector.load %arg3[%c1_191, %c3_192, %c0_193, %c0_194] : memref<2x4x64x64xbf16, #tpu.memory_space<vmem>>, vector<1x1x64x64xbf16>
    %330 = vector.shape_cast %329 : vector<1x1x64x64xbf16> to vector<64x64xbf16>
    %cst_195 = arith.constant dense<0.000000e+00> : vector<16x64xf32>
    %331 = tpu.matmul %328, %330, %cst_195 {dimension_numbers = #tpu.dot_dimension_numbers<[1], [0], [0], [1], [0, 0, 1, 1], [], []>} : vector<16x64xbf16>, vector<64x64xbf16>, vector<16x64xf32> -> vector<16x64xf32>
    %332 = vector.broadcast %231 : vector<1x64xf32> to vector<16x64xf32>
    %333 = arith.addf %331, %332 : vector<16x64xf32>
    %334 = arith.addf %223, %333 : vector<16x64xf32>
    %cst_196 = arith.constant dense<0.000000e+00> : vector<16xf32>
    %335 = vector.multi_reduction <add>, %334, %cst_196 [1] : vector<16x64xf32> to vector<16xf32>
    %336 = vector.shape_cast %335 : vector<16xf32> to vector<16x1xf32>
    %cst_197 = arith.constant 6.400000e+01 : f32
    %337 = vector.broadcast %cst_197 : f32 to vector<16x1xf32>
    %338 = arith.divf %336, %337 : vector<16x1xf32>
    %339 = vector.broadcast %338 : vector<16x1xf32> to vector<16x64xf32>
    %340 = arith.subf %334, %339 : vector<16x64xf32>
    %341 = arith.mulf %340, %340 : vector<16x64xf32>
    %cst_198 = arith.constant dense<0.000000e+00> : vector<16xf32>
    %342 = vector.multi_reduction <add>, %341, %cst_198 [1] : vector<16x64xf32> to vector<16xf32>
    %343 = vector.shape_cast %342 : vector<16xf32> to vector<16x1xf32>
    %cst_199 = arith.constant 6.400000e+01 : f32
    %344 = vector.broadcast %cst_199 : f32 to vector<16x1xf32>
    %345 = arith.divf %343, %344 : vector<16x1xf32>
    %346 = vector.broadcast %338 : vector<16x1xf32> to vector<16x64xf32>
    %347 = arith.subf %334, %346 : vector<16x64xf32>
    %cst_200 = arith.constant 9.99999974E-6 : f32
    %348 = vector.broadcast %cst_200 : f32 to vector<16x1xf32>
    %349 = arith.addf %345, %348 : vector<16x1xf32>
    %350 = math.rsqrt %349 : vector<16x1xf32>
    %351 = vector.broadcast %350 : vector<16x1xf32> to vector<16x64xf32>
    %352 = arith.mulf %347, %351 : vector<16x64xf32>
    %353 = vector.broadcast %233 : vector<1x64xf32> to vector<16x64xf32>
    %354 = arith.mulf %352, %353 : vector<16x64xf32>
    %355 = vector.broadcast %235 : vector<1x64xf32> to vector<16x64xf32>
    %356 = arith.addf %354, %355 : vector<16x64xf32>
    %357 = arith.truncf %356 : vector<16x64xf32> to vector<16x64xbf16>
    %cst_201 = arith.constant 0.000000e+00 : f32
    %358 = vector.broadcast %cst_201 : f32 to vector<16x64xf32>
    %c1_202 = arith.constant 1 : index
    %c0_203 = arith.constant 0 : index
    %c0_204 = arith.constant 0 : index
    %c0_205 = arith.constant 0 : index
    %359 = vector.load %arg5[%c1_202, %c0_203, %c0_204, %c0_205] : memref<2x4x64x512xbf16, #tpu.memory_space<vmem>>, vector<1x1x64x512xbf16>
    %360 = vector.shape_cast %359 : vector<1x1x64x512xbf16> to vector<64x512xbf16>
    %cst_206 = arith.constant dense<0.000000e+00> : vector<16x512xf32>
    %361 = tpu.matmul %357, %360, %cst_206 {dimension_numbers = #tpu.dot_dimension_numbers<[1], [0], [0], [1], [0, 0, 1, 1], [], []>} : vector<16x64xbf16>, vector<64x512xbf16>, vector<16x512xf32> -> vector<16x512xf32>
    %c1_207 = arith.constant 1 : index
    %c0_208 = arith.constant 0 : index
    %c0_209 = arith.constant 0 : index
    %c0_210 = arith.constant 0 : index
    %362 = vector.load %arg6[%c1_207, %c0_208, %c0_209, %c0_210] : memref<2x4x1x512xf32, #tpu.memory_space<vmem>>, vector<1x1x1x512xf32>
    %363 = vector.shape_cast %362 : vector<1x1x1x512xf32> to vector<1x512xf32>
    %364 = vector.broadcast %363 : vector<1x512xf32> to vector<16x512xf32>
    %365 = arith.addf %361, %364 : vector<16x512xf32>
    %cst_211 = arith.constant 0.000000e+00 : f32
    %366 = vector.broadcast %cst_211 : f32 to vector<16x512xf32>
    %367 = arith.maximumf %365, %366 : vector<16x512xf32>
    %368 = arith.truncf %367 : vector<16x512xf32> to vector<16x512xbf16>
    %c1_212 = arith.constant 1 : index
    %c0_213 = arith.constant 0 : index
    %c0_214 = arith.constant 0 : index
    %c0_215 = arith.constant 0 : index
    %369 = vector.load %arg7[%c1_212, %c0_213, %c0_214, %c0_215] : memref<2x4x512x64xbf16, #tpu.memory_space<vmem>>, vector<1x1x512x64xbf16>
    %370 = vector.shape_cast %369 : vector<1x1x512x64xbf16> to vector<512x64xbf16>
    %cst_216 = arith.constant dense<0.000000e+00> : vector<16x64xf32>
    %371 = tpu.matmul %368, %370, %cst_216 {dimension_numbers = #tpu.dot_dimension_numbers<[1], [0], [0], [1], [0, 0, 1, 1], [], []>} : vector<16x512xbf16>, vector<512x64xbf16>, vector<16x64xf32> -> vector<16x64xf32>
    %372 = arith.addf %358, %371 : vector<16x64xf32>
    %c1_217 = arith.constant 1 : index
    %c1_218 = arith.constant 1 : index
    %c0_219 = arith.constant 0 : index
    %c0_220 = arith.constant 0 : index
    %373 = vector.load %arg5[%c1_217, %c1_218, %c0_219, %c0_220] : memref<2x4x64x512xbf16, #tpu.memory_space<vmem>>, vector<1x1x64x512xbf16>
    %374 = vector.shape_cast %373 : vector<1x1x64x512xbf16> to vector<64x512xbf16>
    %cst_221 = arith.constant dense<0.000000e+00> : vector<16x512xf32>
    %375 = tpu.matmul %357, %374, %cst_221 {dimension_numbers = #tpu.dot_dimension_numbers<[1], [0], [0], [1], [0, 0, 1, 1], [], []>} : vector<16x64xbf16>, vector<64x512xbf16>, vector<16x512xf32> -> vector<16x512xf32>
    %c1_222 = arith.constant 1 : index
    %c1_223 = arith.constant 1 : index
    %c0_224 = arith.constant 0 : index
    %c0_225 = arith.constant 0 : index
    %376 = vector.load %arg6[%c1_222, %c1_223, %c0_224, %c0_225] : memref<2x4x1x512xf32, #tpu.memory_space<vmem>>, vector<1x1x1x512xf32>
    %377 = vector.shape_cast %376 : vector<1x1x1x512xf32> to vector<1x512xf32>
    %378 = vector.broadcast %377 : vector<1x512xf32> to vector<16x512xf32>
    %379 = arith.addf %375, %378 : vector<16x512xf32>
    %cst_226 = arith.constant 0.000000e+00 : f32
    %380 = vector.broadcast %cst_226 : f32 to vector<16x512xf32>
    %381 = arith.maximumf %379, %380 : vector<16x512xf32>
    %382 = arith.truncf %381 : vector<16x512xf32> to vector<16x512xbf16>
    %c1_227 = arith.constant 1 : index
    %c1_228 = arith.constant 1 : index
    %c0_229 = arith.constant 0 : index
    %c0_230 = arith.constant 0 : index
    %383 = vector.load %arg7[%c1_227, %c1_228, %c0_229, %c0_230] : memref<2x4x512x64xbf16, #tpu.memory_space<vmem>>, vector<1x1x512x64xbf16>
    %384 = vector.shape_cast %383 : vector<1x1x512x64xbf16> to vector<512x64xbf16>
    %cst_231 = arith.constant dense<0.000000e+00> : vector<16x64xf32>
    %385 = tpu.matmul %382, %384, %cst_231 {dimension_numbers = #tpu.dot_dimension_numbers<[1], [0], [0], [1], [0, 0, 1, 1], [], []>} : vector<16x512xbf16>, vector<512x64xbf16>, vector<16x64xf32> -> vector<16x64xf32>
    %386 = arith.addf %372, %385 : vector<16x64xf32>
    %c1_232 = arith.constant 1 : index
    %c2_233 = arith.constant 2 : index
    %c0_234 = arith.constant 0 : index
    %c0_235 = arith.constant 0 : index
    %387 = vector.load %arg5[%c1_232, %c2_233, %c0_234, %c0_235] : memref<2x4x64x512xbf16, #tpu.memory_space<vmem>>, vector<1x1x64x512xbf16>
    %388 = vector.shape_cast %387 : vector<1x1x64x512xbf16> to vector<64x512xbf16>
    %cst_236 = arith.constant dense<0.000000e+00> : vector<16x512xf32>
    %389 = tpu.matmul %357, %388, %cst_236 {dimension_numbers = #tpu.dot_dimension_numbers<[1], [0], [0], [1], [0, 0, 1, 1], [], []>} : vector<16x64xbf16>, vector<64x512xbf16>, vector<16x512xf32> -> vector<16x512xf32>
    %c1_237 = arith.constant 1 : index
    %c2_238 = arith.constant 2 : index
    %c0_239 = arith.constant 0 : index
    %c0_240 = arith.constant 0 : index
    %390 = vector.load %arg6[%c1_237, %c2_238, %c0_239, %c0_240] : memref<2x4x1x512xf32, #tpu.memory_space<vmem>>, vector<1x1x1x512xf32>
    %391 = vector.shape_cast %390 : vector<1x1x1x512xf32> to vector<1x512xf32>
    %392 = vector.broadcast %391 : vector<1x512xf32> to vector<16x512xf32>
    %393 = arith.addf %389, %392 : vector<16x512xf32>
    %cst_241 = arith.constant 0.000000e+00 : f32
    %394 = vector.broadcast %cst_241 : f32 to vector<16x512xf32>
    %395 = arith.maximumf %393, %394 : vector<16x512xf32>
    %396 = arith.truncf %395 : vector<16x512xf32> to vector<16x512xbf16>
    %c1_242 = arith.constant 1 : index
    %c2_243 = arith.constant 2 : index
    %c0_244 = arith.constant 0 : index
    %c0_245 = arith.constant 0 : index
    %397 = vector.load %arg7[%c1_242, %c2_243, %c0_244, %c0_245] : memref<2x4x512x64xbf16, #tpu.memory_space<vmem>>, vector<1x1x512x64xbf16>
    %398 = vector.shape_cast %397 : vector<1x1x512x64xbf16> to vector<512x64xbf16>
    %cst_246 = arith.constant dense<0.000000e+00> : vector<16x64xf32>
    %399 = tpu.matmul %396, %398, %cst_246 {dimension_numbers = #tpu.dot_dimension_numbers<[1], [0], [0], [1], [0, 0, 1, 1], [], []>} : vector<16x512xbf16>, vector<512x64xbf16>, vector<16x64xf32> -> vector<16x64xf32>
    %400 = arith.addf %386, %399 : vector<16x64xf32>
    %c1_247 = arith.constant 1 : index
    %c3_248 = arith.constant 3 : index
    %c0_249 = arith.constant 0 : index
    %c0_250 = arith.constant 0 : index
    %401 = vector.load %arg5[%c1_247, %c3_248, %c0_249, %c0_250] : memref<2x4x64x512xbf16, #tpu.memory_space<vmem>>, vector<1x1x64x512xbf16>
    %402 = vector.shape_cast %401 : vector<1x1x64x512xbf16> to vector<64x512xbf16>
    %cst_251 = arith.constant dense<0.000000e+00> : vector<16x512xf32>
    %403 = tpu.matmul %357, %402, %cst_251 {dimension_numbers = #tpu.dot_dimension_numbers<[1], [0], [0], [1], [0, 0, 1, 1], [], []>} : vector<16x64xbf16>, vector<64x512xbf16>, vector<16x512xf32> -> vector<16x512xf32>
    %c1_252 = arith.constant 1 : index
    %c3_253 = arith.constant 3 : index
    %c0_254 = arith.constant 0 : index
    %c0_255 = arith.constant 0 : index
    %404 = vector.load %arg6[%c1_252, %c3_253, %c0_254, %c0_255] : memref<2x4x1x512xf32, #tpu.memory_space<vmem>>, vector<1x1x1x512xf32>
    %405 = vector.shape_cast %404 : vector<1x1x1x512xf32> to vector<1x512xf32>
    %406 = vector.broadcast %405 : vector<1x512xf32> to vector<16x512xf32>
    %407 = arith.addf %403, %406 : vector<16x512xf32>
    %cst_256 = arith.constant 0.000000e+00 : f32
    %408 = vector.broadcast %cst_256 : f32 to vector<16x512xf32>
    %409 = arith.maximumf %407, %408 : vector<16x512xf32>
    %410 = arith.truncf %409 : vector<16x512xf32> to vector<16x512xbf16>
    %c1_257 = arith.constant 1 : index
    %c3_258 = arith.constant 3 : index
    %c0_259 = arith.constant 0 : index
    %c0_260 = arith.constant 0 : index
    %411 = vector.load %arg7[%c1_257, %c3_258, %c0_259, %c0_260] : memref<2x4x512x64xbf16, #tpu.memory_space<vmem>>, vector<1x1x512x64xbf16>
    %412 = vector.shape_cast %411 : vector<1x1x512x64xbf16> to vector<512x64xbf16>
    %cst_261 = arith.constant dense<0.000000e+00> : vector<16x64xf32>
    %413 = tpu.matmul %410, %412, %cst_261 {dimension_numbers = #tpu.dot_dimension_numbers<[1], [0], [0], [1], [0, 0, 1, 1], [], []>} : vector<16x512xbf16>, vector<512x64xbf16>, vector<16x64xf32> -> vector<16x64xf32>
    %414 = arith.addf %400, %413 : vector<16x64xf32>
    %415 = vector.broadcast %237 : vector<1x64xf32> to vector<16x64xf32>
    %416 = arith.addf %414, %415 : vector<16x64xf32>
    %417 = arith.addf %356, %416 : vector<16x64xf32>
    %cst_262 = arith.constant dense<0.000000e+00> : vector<16xf32>
    %418 = vector.multi_reduction <add>, %417, %cst_262 [1] : vector<16x64xf32> to vector<16xf32>
    %419 = vector.shape_cast %418 : vector<16xf32> to vector<16x1xf32>
    %cst_263 = arith.constant 6.400000e+01 : f32
    %420 = vector.broadcast %cst_263 : f32 to vector<16x1xf32>
    %421 = arith.divf %419, %420 : vector<16x1xf32>
    %422 = vector.broadcast %421 : vector<16x1xf32> to vector<16x64xf32>
    %423 = arith.subf %417, %422 : vector<16x64xf32>
    %424 = arith.mulf %423, %423 : vector<16x64xf32>
    %cst_264 = arith.constant dense<0.000000e+00> : vector<16xf32>
    %425 = vector.multi_reduction <add>, %424, %cst_264 [1] : vector<16x64xf32> to vector<16xf32>
    %426 = vector.shape_cast %425 : vector<16xf32> to vector<16x1xf32>
    %cst_265 = arith.constant 6.400000e+01 : f32
    %427 = vector.broadcast %cst_265 : f32 to vector<16x1xf32>
    %428 = arith.divf %426, %427 : vector<16x1xf32>
    %429 = vector.broadcast %421 : vector<16x1xf32> to vector<16x64xf32>
    %430 = arith.subf %417, %429 : vector<16x64xf32>
    %cst_266 = arith.constant 9.99999974E-6 : f32
    %431 = vector.broadcast %cst_266 : f32 to vector<16x1xf32>
    %432 = arith.addf %428, %431 : vector<16x1xf32>
    %433 = math.rsqrt %432 : vector<16x1xf32>
    %434 = vector.broadcast %433 : vector<16x1xf32> to vector<16x64xf32>
    %435 = arith.mulf %430, %434 : vector<16x64xf32>
    %436 = vector.broadcast %239 : vector<1x64xf32> to vector<16x64xf32>
    %437 = arith.mulf %435, %436 : vector<16x64xf32>
    %438 = vector.broadcast %241 : vector<1x64xf32> to vector<16x64xf32>
    %439 = arith.addf %437, %438 : vector<16x64xf32>
    %cst_267 = arith.constant dense<0.000000e+00> : vector<64xf32>
    %440 = vector.multi_reduction <add>, %439, %cst_267 [0] : vector<16x64xf32> to vector<64xf32>
    %441 = vector.shape_cast %440 : vector<64xf32> to vector<1x64xf32>
    %cst_268 = arith.constant 6.250000e-02 : f32
    %442 = vector.broadcast %cst_268 : f32 to vector<1x64xf32>
    %443 = arith.mulf %441, %442 : vector<1x64xf32>
    %c0_269 = arith.constant 0 : index
    %c0_270 = arith.constant 0 : index
    %444 = vector.load %arg8[%c0_269, %c0_270] : memref<64x128xf32, #tpu.memory_space<vmem>>, vector<64x128xf32>
    %cst_271 = arith.constant dense<0.000000e+00> : vector<1x128xf32>
    %445 = tpu.matmul %443, %444, %cst_271 {dimension_numbers = #tpu.dot_dimension_numbers<[1], [0], [0], [1], [0, 0, 1, 1], [], []>} : vector<1x64xf32>, vector<64x128xf32>, vector<1x128xf32> -> vector<1x128xf32>
    %c1_272 = arith.constant 1 : index
    %c0_273 = arith.constant 0 : index
    %446 = vector.load %arg10[%c1_272, %c0_273] : memref<3x128xf32, #tpu.memory_space<vmem>>, vector<1x128xf32>
    %447 = arith.addf %445, %446 : vector<1x128xf32>
    %cst_274 = arith.constant 0.000000e+00 : f32
    %448 = vector.broadcast %cst_274 : f32 to vector<1x128xf32>
    %449 = arith.maximumf %447, %448 : vector<1x128xf32>
    %c0_275 = arith.constant 0 : index
    %c0_276 = arith.constant 0 : index
    %450 = vector.load %arg9[%c0_275, %c0_276] : memref<128x8xf32, #tpu.memory_space<vmem>>, vector<128x8xf32>
    %cst_277 = arith.constant dense<0.000000e+00> : vector<1x8xf32>
    %451 = tpu.matmul %449, %450, %cst_277 {dimension_numbers = #tpu.dot_dimension_numbers<[1], [0], [0], [1], [0, 0, 1, 1], [], []>} : vector<1x128xf32>, vector<128x8xf32>, vector<1x8xf32> -> vector<1x8xf32>
    %c2_278 = arith.constant 2 : index
    %c0_279 = arith.constant 0 : index
    %452 = vector.load %arg10[%c2_278, %c0_279] : memref<3x128xf32, #tpu.memory_space<vmem>>, vector<1x8xf32>
    %453 = arith.addf %451, %452 : vector<1x8xf32>
    %c0_280 = arith.constant 0 : index
    %c0_281 = arith.constant 0 : index
    %c0_282 = arith.constant 0 : index
    %454 = vector.load %arg11[%c0_280, %c0_281, %c0_282] : memref<1x1x8xf32, #tpu.memory_space<vmem>>, vector<1x1x8xf32>
    %455 = vector.shape_cast %454 : vector<1x1x8xf32> to vector<1x8xf32>
    %456 = vector.shape_cast %453 : vector<1x8xf32> to vector<1x1x8xf32>
    tpu.vector_store %arg11[%c0_280, %c0_281, %c0_282], %456 {strides = array<i32>} : memref<1x1x8xf32, #tpu.memory_space<vmem>>, vector<1x1x8xf32>,
    return
  }
  func.func @transform_0(%arg0: i32) -> (i32, i32, i32) {
    %c0_i32 = arith.constant 0 : i32
    %c0_i32_0 = arith.constant 0 : i32
    %c0_i32_1 = arith.constant 0 : i32
    return %arg0, %c0_i32, %c0_i32_0 : i32, i32, i32
  }
  func.func @transform_1(%arg0: i32) -> (i32, i32) {
    %c0_i32 = arith.constant 0 : i32
    %c0_i32_0 = arith.constant 0 : i32
    %c0_i32_1 = arith.constant 0 : i32
    return %c0_i32, %c0_i32_0 : i32, i32
  }
  func.func @transform_2(%arg0: i32) -> (i32, i32, i32, i32) {
    %c0_i32 = arith.constant 0 : i32
    %c0_i32_0 = arith.constant 0 : i32
    %c0_i32_1 = arith.constant 0 : i32
    %c0_i32_2 = arith.constant 0 : i32
    %c0_i32_3 = arith.constant 0 : i32
    return %c0_i32, %c0_i32_0, %c0_i32_1, %c0_i32_2 : i32, i32, i32, i32
  }
  func.func @transform_3(%arg0: i32) -> (i32, i32, i32) {
    %c0_i32 = arith.constant 0 : i32
    %c0_i32_0 = arith.constant 0 : i32
    %c0_i32_1 = arith.constant 0 : i32
    %c0_i32_2 = arith.constant 0 : i32
    return %c0_i32, %c0_i32_0, %c0_i32_1 : i32, i32, i32
  }
  func.func @transform_4(%arg0: i32) -> (i32, i32, i32, i32) {
    %c0_i32 = arith.constant 0 : i32
    %c0_i32_0 = arith.constant 0 : i32
    %c0_i32_1 = arith.constant 0 : i32
    %c0_i32_2 = arith.constant 0 : i32
    %c0_i32_3 = arith.constant 0 : i32
    return %c0_i32, %c0_i32_0, %c0_i32_1, %c0_i32_2 : i32, i32, i32, i32
  }
  func.func @transform_5(%arg0: i32) -> (i32, i32, i32, i32) {
    %c0_i32 = arith.constant 0 : i32
    %c0_i32_0 = arith.constant 0 : i32
    %c0_i32_1 = arith.constant 0 : i32
    %c0_i32_2 = arith.constant 0 : i32
    %c0_i32_3 = arith.constant 0 : i32
    return %c0_i32, %c0_i32_0, %c0_i32_1, %c0_i32_2 : i32, i32, i32, i32
  }
  func.func @transform_6(%arg0: i32) -> (i32, i32, i32, i32) {
    %c0_i32 = arith.constant 0 : i32
    %c0_i32_0 = arith.constant 0 : i32
    %c0_i32_1 = arith.constant 0 : i32
    %c0_i32_2 = arith.constant 0 : i32
    %c0_i32_3 = arith.constant 0 : i32
    return %c0_i32, %c0_i32_0, %c0_i32_1, %c0_i32_2 : i32, i32, i32, i32
  }
  func.func @transform_7(%arg0: i32) -> (i32, i32) {
    %c0_i32 = arith.constant 0 : i32
    %c0_i32_0 = arith.constant 0 : i32
    %c0_i32_1 = arith.constant 0 : i32
    return %c0_i32, %c0_i32_0 : i32, i32
  }
  func.func @transform_8(%arg0: i32) -> (i32, i32) {
    %c0_i32 = arith.constant 0 : i32
    %c0_i32_0 = arith.constant 0 : i32
    %c0_i32_1 = arith.constant 0 : i32
    return %c0_i32, %c0_i32_0 : i32, i32
  }
  func.func @transform_9(%arg0: i32) -> (i32, i32) {
    %c0_i32 = arith.constant 0 : i32
    %c0_i32_0 = arith.constant 0 : i32
    %c0_i32_1 = arith.constant 0 : i32
    return %c0_i32, %c0_i32_0 : i32, i32
  }
  func.func @transform_10(%arg0: i32) -> (i32, i32, i32) {
    %c0_i32 = arith.constant 0 : i32
    %c0_i32_0 = arith.constant 0 : i32
    %c0_i32_1 = arith.constant 0 : i32
    return %arg0, %c0_i32, %c0_i32_0 : i32, i32, i32
  }
}

</mosaic_0001>

<bundles_post_ra>
// kernel: transformer_forecast_pallas.1
= control target key start
LH: loop header
LB: loop body
LE: loop exit
PB: predicated region body
PF: predicated region fallthrough
CT: control target
= control target key end

     0   :  { %15 = vsyncpa [#allocation3], 0  ;;  %s11489_s0 = inlined_call_operand.vmem [shape: f32[2,16,1], index: 0, kind: input, shape index: {}]   ;;  %s11490_s1 = inlined_call_operand.vmem [shape: f32[16,64], index: 1, kind: input, shape index: {}]   ;;  %s11491_s2 = inlined_call_operand.vmem [shape: bf16[2,4,64,64], index: 2, kind: input, shape index: {}]   ;;  %s11492_s3 = inlined_call_operand.vmem [shape: f32[2,9,64], index: 3, kind: input, shape index: {}]   ;;  %s11493_s4 = inlined_call_operand.vmem [shape: bf16[2,4,64,512], index: 4, kind: input, shape index: {}]   ;;  %s11494_s5 = inlined_call_operand.vmem [shape: f32[2,4,1,512], index: 5, kind: input, shape index: {}]   ;;  %s11495_s6 = inlined_call_operand.vmem [shape: bf16[2,4,512,64], index: 6, kind: input, shape index: {}]   ;;  %s11496_s7 = inlined_call_operand.vmem [shape: f32[64,128], index: 7, kind: input, shape index: {}]   ;;  %s11497_s8 = inlined_call_operand.vmem [shape: f32[128,8], index: 8, kind: input, shape index: {}]   ;;  %s11498_s9 = inlined_call_operand.vmem [shape: f32[3,128], index: 9, kind: input, shape index: {}]   ;;  %s11499_s10 = inlined_call_operand.hbm [shape: f32[2,1,8], index: 10, kind: output, shape index: {}]  }
   0x1   :  { %17 = vsyncpa [#allocation3 + $0x1], 0  ;;  %s9545_s13 = smov 0   ;;  %s9547_s14 = smov 0  }
   0x2   :  { %s9549_s15 = smov 0   ;;  %s9551_s16 = smov 0  }
   0x3 LB: > { %s9566_s17 = sadd.s32 4294967295, %s9478_s16   ;;  %s6965_s18 = sadd.s32 4294967294, %s9478_s16   ;;  %s9478_s16 = sphi %s9551_s16, %s11517_s16   ;;  %s9474_s15 = sphi %s9549_s15, %s11516_s15   ;;  %s9470_s14 = sphi %s9547_s14, %s11515_s14   ;;  %s9466_s13 = sphi %s9545_s13, %s11514_s13  }
   0x4   : > { %s9570_s19 = sadd.s32 1, %s9478_s16   ;;  %s245_s20 = sadd.s32 1, %s9474_s15 }
   0x5   : > { %s242_s21 = ssub.s32 %s9478_s16, %s9570_s19  ;;  %p255_p0 = scmp.ne.s32.totalorder %s9474_s15, %s9470_s14 }
   0x6   : > { %p243_p1 = scmp.eq.s32.totalorder %s242_s21, 0  ;;  %p256_p2 = scmp.eq.s32.totalorder %s9566_s17, 1 }
   0x7   : > { %p261_p3 = scmp.ne.s32.totalorder %s9470_s14, %s9466_s13  ;;  %p262_p4 = scmp.eq.s32.totalorder %s6965_s18, 1 }
   0x8   : > { %s9581_s22 = scalar_select %p243_p1, %s9474_s15, %s245_s20  }
   0x9   : > { %p9583_p5 = por %p256_p2, %p255_p0  ;;  %p9587_p6 = por %p262_p4, %p261_p3 }
   0xa   : > { %p6968_p7 = scmp.ge.s32.totalorder %s9478_s16, 1  ;;  %p315_p8 = scmp.lt.s32.totalorder %s9478_s16, 3 }
   0xc   : > { %p316_p9 = pnand %p6968_p7, %p315_p8 }
   0xd   : > { %p352_p10 = scmp.lt.s32.totalorder (!%p316_p9), %s9566_s17, 1  ;;  %s11505_s11 = smov (!%p316_p9), 96  }
   0xe   : > { %319 = sbr.rel (%p316_p9) target bundleno = 6390 (0x18f6), region = 60  ;;  %s11503_s21 = smov (!%p316_p9), 80  }
   0xf   : > { %s11502_s18 = smov (!%p316_p9), 16   ;;  %s11500_s28 = smov (!%p316_p9), 48  }
  0x10   : > { %s11509_s30 = smov (!%p316_p9), 96   ;;  %s11510_s20 = smov (!%p316_p9), 80  }
  0x11   : > { %s11512_s25 = smov (!%p316_p9), 32   ;;  %s11513_s29 = smov (!%p316_p9), 48  }
  0x13   : > { %v8858_v0 = vld [vmem:[%s11491_s2 + $0x18] sm:$0xff]   ;;  %v9480_v1 = vmov 0   ;;  %v9481_v2 = vmov 0.0   ;;  %s353_s27 = scalar_select %p352_p10, %s9566_s17, 1  ;;  %v8860_v4 = vld [vmem:[%s11491_s2 + $0x10] sm:$0xff]   ;;  %v8862_v7 = vld [vmem:[%s11491_s2 + $0x8] sm:$0xff]  }
  0x14   : > { %8827 = vset.pattern.permute.xlu0 %v9480_v1  ;;  %8533 = vmatprep.subr.bf16.mxu1 %v9481_v2  ;;  %v8859_v3 = vld [vmem:[%s11491_s2 + $0x58] sm:$0xff]   ;;  %v8861_v5 = vld [vmem:[%s11491_s2 + $0x50] sm:$0xff]   ;;  %v8863_v9 = vld [vmem:[%s11491_s2 + $0x48] sm:$0xff]   ;;  %vm9482_vm0 = vmmov 0   ;;  %vm427_vm1 = vcmask 523264   ;;  %vm633_vm2 = vcmask 130048  }
  0x15   : > { %8534 = vmatpush3.bf16.msra.mxu1 %v8858_v0  ;;  %8557 = vmatprep.subr.bf16.mxu0 %v9481_v2  ;;  %s8082_s12 = sshll.u32 %s353_s27, 4  ;;  %v8864_v10 = vld [vmem:[%s11491_s2] sm:$0xff]   ;;  %v378_v15 = vld [vmem:[%s11490_s1 + $0x8] sm:$0xff]  ;;  %v8866_v19 = vld [vmem:[%s11491_s2 + $0x38] sm:$0xff]   ;;  %vm1140_vm3 = vcmask 261120   ;;  %vm1143_vm4 = vcmask 392192  }
  0x16   : > { %8535 = vmatprep.subr.bf16.mxu1 %v9481_v2  ;;  %8558 = vmatpush3.bf16.msra.mxu0 %v8859_v3  ;;  %s356_s26 = scalar_lea.vmem %s11489_s0, %s8082_s12  ;;  %v8865_v11 = vld [vmem:[%s11491_s2 + $0x40] sm:$0xff]   ;;  %v8867_v23 = vld [vmem:[%s11491_s2 + $0x30] sm:$0xff]   ;;  %v8868_v24 = vld [vmem:[%s11491_s2 + $0x28] sm:$0xff]   ;;  %s9484_s12 = smov 112   ;;  %vm6895_vm5 = vcmask 57344  }
  0x17   : > { %8559 = vmatprep.subr.bf16.mxu0 %v9481_v2  ;;  %v359_v6 = vld [vmem:[%s356_s26] sm:$0xff]  ;;  %v360_v8 = vld [vmem:[%s356_s26 + $0x8] sm:$0xff]  ;;  %8541 = vmatprep.mubr.msk.bf16.mxu1 %vm9482_vm0, %v9481_v2  ;;  %s11501_s26 = smov 32  }
  0x18   : > { %363 = vperm.xlu0 %8827, %v359_v6   ;;  %8565 = vmatprep.mubr.msk.bf16.mxu0 %vm9482_vm0, %v9481_v2  ;;  %v6971_v12 = vld [vmem:[%s11498_s9] ss:$0 sm:$0xff]  ;;  %v6986_v36 = vld [vmem:[%s11492_s3 + $0x1] ss:$0 sm:$0xff]  ;;  %v7000_v48 = vld [vmem:[%s11492_s3 + $0x2] ss:$0 sm:$0xff] }
  0x19   : > { %8536 = vmatpush3.bf16.msra.mxu1 %v8860_v4  ;;  %v377_v14 = vld [vmem:[%s11490_s1] sm:$0xff] }
  0x1a   : > { %8537 = vmatprep.subr.bf16.mxu1 %v9481_v2  ;;  %8560 = vmatpush3.bf16.msra.mxu0 %v8861_v5  ;;  %v8869_v25 = vld [vmem:[%s11491_s2 + $0x20] sm:$0xff]  }
  0x1b   : > { %8561 = vmatprep.subr.bf16.mxu0 %v9481_v2  ;;  %v6972_v35 = vld [vmem:[%s11492_s3] ss:$0 sm:$0xff] }
  0x1c   : > { %368 = vperm.xlu0 %8827, %v360_v8  }
  0x1d   : > { %8538 = vmatpush3.bf16.msra.mxu1 %v8862_v7 }
  0x1e   : > { %8539 = vmatprep.subr.bf16.mxu1 %v9481_v2  ;;  %8562 = vmatpush3.bf16.msra.mxu0 %v8863_v9 }
  0x1f   : > { %8563 = vmatprep.subr.bf16.mxu0 %v9481_v2 }
  0x21   : > { %8540 = vmatpush3.bf16.msra.mxu1 %v8864_v10 }
  0x22   : > { %8545 = vmatprep.subr.bf16.mxu1 %v9481_v2  ;;  %8564 = vmatpush3.bf16.msra.mxu0 %v8865_v11 }
  0x23   : > { %8581 = vmatprep.subr.bf16.mxu0 %v9481_v2 }
  0x93   : > { %v364_v13 = vpop.permute.xlu0 %363 }
  0x94   : > { %v375_v16 = vmul.f32 %v6971_v12, %v364_v13 }
  0x96   : > { %v9649_v20 = vadd.f32 %v377_v14, %v375_v16 }
  0x97   : > { %v369_v17 = vpop.permute.xlu0 %368 }
  0x98   : > { %v376_v18 = vmul.f32 %v6971_v12, %v369_v17 }
  0x9a   : > { %v9651_v21 = vadd.f32 %v378_v15, %v376_v18 }
  0x9c   : > { %v390_v22 = vpack.c.bf16 %v9651_v21, %v9649_v20 }
  0x9e   : > { %8542 = vmatmul.mubr.msk.bf16.vlgmr.msra.gmra.mxu1 %vm427_vm1, %v390_v22  ;;  %8566 = vmatmul.mubr.msk.bf16.vlgmr.msra.gmra.mxu0 %vm427_vm1, %v390_v22 }
  0x9f   : > { %8546 = vmatpush3.bf16.msra.mxu1 %v8866_v19  ;;  %8553 = vmatprep.mubr.msk.bf16.mxu1 %vm9482_vm0, %v9481_v2 }
  0xa0   : > { %8547 = vmatprep.subr.bf16.mxu1 %v9481_v2  ;;  %8583 = vmatprep.mubr.msk.bf16.mxu0 %vm9482_vm0, %v9481_v2 }
  0xa3   : > { %8548 = vmatpush3.bf16.msra.mxu1 %v8867_v23 }
  0xa4   : > { %8549 = vmatprep.subr.bf16.mxu1 %v9481_v2 }
  0xa7   : > { %8550 = vmatpush3.bf16.msra.mxu1 %v8868_v24 }
  0xa8   : > { %8551 = vmatprep.subr.bf16.mxu1 %v9481_v2 }
  0xab   : > { %8552 = vmatpush3.bf16.msra.mxu1 %v8869_v25 }
  0xac   : > { %8569 = vmatprep.subr.bf16.mxu1 %v9481_v2 }
  0xae   : > { %8554 = vmatmul.mubr.msk.bf16.vlgmr.msra.gmra.mxu1 %vm427_vm1, %v390_v22 }
  0xaf   : > { %8571 = vmatprep.mubr.msk.bf16.mxu1 %vm9482_vm0, %v9481_v2 }
 0x15e   : > { %v465_v26 = vpop.f32.mrf.mxu1  ;;  %v623_v27 = vpop.f32.mrf.mxu0 }
 0x15f   : > { %v466_v40 = vadd.f32 %v6972_v35, %v465_v26  ;;  %v624_v51 = vadd.f32 %v7000_v48, %v623_v27 }
 0x160   : > { %v8543_v28 = vpop.f32.mrf.mxu1  ;;  %v8567_v29 = vpop.f32.mrf.mxu0 }
 0x161   : > { %v472_v46 = vmul.f32 0.25, %v466_v40 }
 0x162   : > { %v468_v30 = vpop.f32.mrf.mxu1  ;;  %v626_v31 = vpop.f32.mrf.mxu0 }
 0x163   : > { %v469_v38 = vadd.f32 %v6972_v35, %v468_v30  ;;  %v627_v50 = vadd.f32 %v7000_v48, %v626_v31 }
 0x164   : > { %v8544_v32 = vpop.f32.mrf.mxu1  ;;  %v8568_v33 = vpop.f32.mrf.mxu0 }
 0x165   : > { %v473_v44 = vmul.f32 0.25, %v469_v38  ;;  %v9692_v52 = vpack.c.bf16 %v627_v50, %v624_v51 }
 0x167   : > { %v630_v49 = vpack.c.bf16 %v473_v44, %v472_v46 }
 0x16e   : > { %v545_v34 = vpop.f32.mrf.mxu1 }
 0x16f   : > { %v546_v41 = vadd.f32 %v6986_v36, %v545_v34 }
 0x170   : > { %v8555_v37 = vpop.f32.mrf.mxu1 }
 0x172   : > { %v548_v39 = vpop.f32.mrf.mxu1 }
 0x173   : > { %v549_v42 = vadd.f32 %v6986_v36, %v548_v39 }
 0x174   : > { %v8556_v43 = vpop.f32.mrf.mxu1 }
 0x175   : > { %v631_v45 = vpack.c.bf16 %v549_v42, %v546_v41 }
 0x177   : > { %874 = vrot.lane.b32.xlu0 %v631_v45, %s11505_s11  ;;  %752 = vrot.lane.b32.xlu1 %v631_v45, %s9484_s12  ;;  %v638_v47 = vsel %vm633_vm2, %v631_v45, 0 }
 0x178   : > { %8570 = vmatpush3.bf16.xpose.msra.mxu1 %v638_v47 }
 0x179   : > { %8575 = vmatprep.subr.bf16.mxu1 %v9481_v2 }
 0x17b   : > { %995 = vrot.lane.b32.xlu0 %v631_v45, %s11503_s21  ;;  %749 = vrot.lane.b32.xlu1 %v630_v49, %s9484_s12 }
 0x17f   : > { %872 = vrot.lane.b32.xlu1 %v630_v49, %s11505_s11  ;;  %8572 = vmatmul.mubr.msk.bf16.vlgmr.msra.gmra.mxu1 %vm633_vm2, %v630_v49 }
 0x180   : > { %8576 = vmatpush3.bf16.msra.mxu1 %v9692_v52  ;;  %8577 = vmatprep.mubr.msk.bf16.mxu1 %vm9482_vm0, %v9481_v2 }
 0x181   : > { %8587 = vmatprep.subr.bf16.mxu1 %v9481_v2 }
 0x183   : > { %993 = vrot.lane.b32.xlu1 %v630_v49, %s11503_s21 }
 0x1e9   : > { %v753_v53 = vpop.permute.xlu1 %752  ;;  %v875_v55 = vpop.permute.xlu0 %874 }
 0x1ea   : > { %v758_v54 = vsel %vm633_vm2, %v753_v53, 0  ;;  %v880_v57 = vsel %vm633_vm2, %v875_v55, 0 }
 0x1eb   : > { %8582 = vmatpush3.bf16.xpose.msra.mxu0 %v758_v54 }
 0x1ec   : > { %8593 = vmatprep.subr.bf16.mxu0 %v9481_v2 }
 0x1ed   : > { %v750_v56 = vpop.permute.xlu1 %749  ;;  %v996_v58 = vpop.permute.xlu0 %995 }
 0x1ee   : > { %v1001_v60 = vsel %vm633_vm2, %v996_v58, 0 }
 0x1f1   : > { %v873_v59 = vpop.permute.xlu1 %872 }
 0x1f2   : > { %8584 = vmatmul.mubr.msk.bf16.vlgmr.msra.gmra.mxu0 %vm633_vm2, %v750_v56 }
 0x1f3   : > { %8594 = vmatpush3.bf16.xpose.msra.mxu0 %v880_v57  ;;  %8595 = vmatprep.mubr.msk.bf16.mxu0 %vm9482_vm0, %v9481_v2 }
 0x1f4   : > { %8605 = vmatprep.subr.bf16.mxu0 %v9481_v2 }
 0x1f5   : > { %v994_v61 = vpop.permute.xlu1 %993 }
 0x1fa   : > { %8596 = vmatmul.mubr.msk.bf16.vlgmr.msra.gmra.mxu0 %vm633_vm2, %v873_v59 }
 0x1fb   : > { %8606 = vmatpush3.bf16.xpose.msra.mxu0 %v1001_v60  ;;  %8607 = vmatprep.mubr.msk.bf16.mxu0 %vm9482_vm0, %v9481_v2 }
 0x1fc   : > { %8617 = vmatprep.subr.bf16.mxu0 %v9481_v2 }
 0x202   : > { %8608 = vmatmul.mubr.msk.bf16.vlgmr.msra.gmra.mxu0 %vm633_vm2, %v994_v61 }
 0x203   : > { %8625 = vmatprep.mubr.msk.bf16.mxu0 %vm9482_vm0, %v9481_v2 }
 0x23f   : > { %v674_v62 = vpop.f32.mrf.mxu1 }
 0x240   : > { %v681_v63 = vsel %vm633_vm2, %v674_v62, -inf }
 0x241   : > { %682 = vmax.xlane.f32.xlu0 %v681_v63  ;;  %v8573_v0 = vpop.f32.mrf.mxu1 }
 0x243   : > { %v677_v3 = vpop.f32.mrf.mxu1 }
 0x244   : > { %v684_v4 = vsel %vm633_vm2, %v677_v3, -inf }
 0x245   : > { %685 = vmax.xlane.f32.xlu1 %v684_v4  ;;  %v8574_v5 = vpop.f32.mrf.mxu1 }
 0x2b2   : > { %v794_v6 = vpop.f32.mrf.mxu0 }
 0x2b3   : > { %v801_v7 = vsel %vm633_vm2, %v794_v6, -inf }
 0x2b4   : > { %v8585_v8 = vpop.f32.mrf.mxu0  ;;  %802 = vmax.xlane.f32.xlu0 %v801_v7 }
 0x2b6   : > { %v797_v9 = vpop.f32.mrf.mxu0 }
 0x2b7   : > { %v804_v10 = vsel %vm633_vm2, %v797_v9, -inf }
 0x2b8   : > { %v8586_v11 = vpop.f32.mrf.mxu0  ;;  %805 = vmax.xlane.f32.xlu0 %v804_v10 }
 0x2ba   : > { %v916_v12 = vpop.f32.mrf.mxu0 }
 0x2bb   : > { %v923_v13 = vsel %vm633_vm2, %v916_v12, -inf }
 0x2bc   : > { %v8597_v14 = vpop.f32.mrf.mxu0  ;;  %924 = vmax.xlane.f32.xlu1 %v923_v13 }
 0x2be   : > { %v919_v15 = vpop.f32.mrf.mxu0 }
 0x2bf   : > { %v926_v16 = vsel %vm633_vm2, %v919_v15, -inf }
 0x2c0   : > { %v8598_v17 = vpop.f32.mrf.mxu0  ;;  %927 = vmax.xlane.f32.xlu0 %v926_v16 }
 0x2c2   : > { %v1037_v18 = vpop.f32.mrf.mxu0 }
 0x2c3   : > { %v1044_v19 = vsel %vm633_vm2, %v1037_v18, -inf }
 0x2c4   : > { %v8609_v22 = vpop.f32.mrf.mxu0  ;;  %1045 = vmax.xlane.f32.xlu1 %v1044_v19 }
 0x2c6   : > { %v1040_v23 = vpop.f32.mrf.mxu0 }
 0x2c7   : > { %v1047_v24 = vsel %vm633_vm2, %v1040_v23, -inf }
 0x2c8   : > { %v8610_v25 = vpop.f32.mrf.mxu0  ;;  %1048 = vmax.xlane.f32.xlu0 %v1047_v24 }
 0x2ca   : > { %v683_v26 = vpop.xlane.xlu0 %682 }
 0x2cb   : > { %v687_v27 = vsub.f32 %v674_v62, %v683_v26 }
 0x2cd   : > { %v689_v28 = vmul.f32 1.442695, %v687_v27 }
 0x2ce   : > { %v686_v29 = vpop.xlane.xlu1 %685 }
 0x2cf   : > { %9338 = vpow2.f32 %v689_v28  ;;  %v688_v30 = vsub.f32 %v677_v3, %v686_v29 }
 0x2d1   : > { %v691_v31 = vmul.f32 1.442695, %v688_v30 }
 0x2d3   : > { %9340 = vpow2.f32 %v691_v31 }
 0x2dc   : > { %v9339_v32 = vpop.eup %9338 }
 0x2dd   : > { %v693_v33 = vsel %vm633_vm2, %v9339_v32, 0.0 }
 0x2de   : > { %694 = vadd.xlane.f32.xlu1 %v693_v33 }
 0x2e0   : > { %v9341_v34 = vpop.eup %9340 }
 0x2e1   : > { %v696_v35 = vsel %vm633_vm2, %v9341_v34, 0.0 }
 0x2e2   : > { %697 = vadd.xlane.f32.xlu0 %v696_v35 }
 0x2ef   : > { %825 = vrot.lane.b32.xlu1 %v9692_v52, %s9484_s12 }
 0x33d   : > { %v803_v36 = vpop.xlane.xlu0 %802 }
 0x33e   : > { %v807_v37 = vsub.f32 %v794_v6, %v803_v36 }
 0x340   : > { %v809_v38 = vmul.f32 1.442695, %v807_v37 }
 0x341   : > { %v806_v39 = vpop.xlane.xlu0 %805 }
 0x342   : > { %9342 = vpow2.f32 %v809_v38  ;;  %v808_v40 = vsub.f32 %v797_v9, %v806_v39 }
 0x344   : > { %v811_v41 = vmul.f32 1.442695, %v808_v40 }
 0x345   : > { %v925_v42 = vpop.xlane.xlu1 %924 }
 0x346   : > { %9344 = vpow2.f32 %v811_v41  ;;  %v929_v43 = vsub.f32 %v916_v12, %v925_v42  ;;  %v8870_v41 = vld [vmem:[%s11491_s2 + $0x78] sm:$0xff]  }
 0x347   : > { %8618 = vmatpush3.bf16.msra.mxu0 %v8870_v41  ;;  %v8880_v41 = vld [vmem:[%s11493_s4 + $0x40] ss:$16 sps:$4 sm:$0xff]  }
 0x348   : > { %v931_v44 = vmul.f32 1.442695, %v929_v43  ;;  %8619 = vmatprep.subr.bf16.mxu0 %v9481_v2 }
 0x349   : > { %v928_v45 = vpop.xlane.xlu0 %927 }
 0x34a   : > { %9346 = vpow2.f32 %v931_v44  ;;  %v930_v46 = vsub.f32 %v919_v15, %v928_v45  ;;  %v8871_v44 = vld [vmem:[%s11491_s2 + $0x70] sm:$0xff]  }
 0x34b   : > { %8620 = vmatpush3.bf16.msra.mxu0 %v8871_v44  ;;  %v8891_v44 = vld [vmem:[%s11493_s4 + $0x2c] ss:$16 sps:$4 sm:$0xff]  }
 0x34c   : > { %v933_v47 = vmul.f32 1.442695, %v930_v46  ;;  %8621 = vmatprep.subr.bf16.mxu0 %v9481_v2 }
 0x34d   : > { %v1046_v48 = vpop.xlane.xlu1 %1045 }
 0x34e   : > { %9348 = vpow2.f32 %v933_v47  ;;  %v1050_v49 = vsub.f32 %v1037_v18, %v1046_v48  ;;  %v8872_v47 = vld [vmem:[%s11491_s2 + $0x68] sm:$0xff]  }
 0x34f   : > { %v9343_v50 = vpop.eup %9342  ;;  %8622 = vmatpush3.bf16.msra.mxu0 %v8872_v47  ;;  %v8894_v47 = vld [vmem:[%s11493_s4 + $0x4] ss:$16 sps:$4 sm:$0xff]  }
 0x350   : > { %v1052_v51 = vmul.f32 1.442695, %v1050_v49  ;;  %v813_v53 = vsel %vm633_vm2, %v9343_v50, 0.0  ;;  %8623 = vmatprep.subr.bf16.mxu0 %v9481_v2 }
 0x351   : > { %v1049_v54 = vpop.xlane.xlu0 %1048  ;;  %814 = vadd.xlane.f32.xlu1 %v813_v53 }
 0x352   : > { %9350 = vpow2.f32 %v1052_v51  ;;  %v1051_v55 = vsub.f32 %v1040_v23, %v1049_v54  ;;  %v8873_v51 = vld [vmem:[%s11491_s2 + $0x60] sm:$0xff]  }
 0x353   : > { %v9345_v56 = vpop.eup %9344  ;;  %8624 = vmatpush3.bf16.msra.mxu0 %v8873_v51  ;;  %v8900_v51 = vld [vmem:[%s11493_s4 + $0xe4] ss:$16 sps:$4 sm:$0xff]  }
 0x354   : > { %v1054_v57 = vmul.f32 1.442695, %v1051_v55  ;;  %v816_v58 = vsel %vm633_vm2, %v9345_v56, 0.0 }
 0x355   : > { %817 = vadd.xlane.f32.xlu0 %v816_v58 }
 0x356   : > { %9352 = vpow2.f32 %v1054_v57 }
 0x357   : > { %v9347_v59 = vpop.eup %9346 }
 0x358   : > { %v935_v60 = vsel %vm633_vm2, %v9347_v59, 0.0 }
 0x359   : > { %936 = vadd.xlane.f32.xlu1 %v935_v60 }
 0x35b   : > { %v9349_v61 = vpop.eup %9348 }
 0x35c   : > { %v938_v62 = vsel %vm633_vm2, %v9349_v61, 0.0 }
 0x35d   : > { %939 = vadd.xlane.f32.xlu0 %v938_v62 }
 0x35f   : > { %v9351_v63 = vpop.eup %9350 }
 0x360   : > { %v1056_v0 = vsel %vm633_vm2, %v9351_v63, 0.0 }
 0x361   : > { %1057 = vadd.xlane.f32.xlu1 %v1056_v0 }
 0x363   : > { %v9353_v3 = vpop.eup %9352 }
 0x364   : > { %v1059_v4 = vsel %vm633_vm2, %v9353_v3, 0.0 }
 0x365   : > { %1060 = vadd.xlane.f32.xlu0 %v1059_v4 }
 0x367   : > { %v695_v5 = vpop.xlane.xlu1 %694 }
 0x368   : > { %9354 = vrcp.f32 %v695_v5 }
 0x36b   : > { %v698_v6 = vpop.xlane.xlu0 %697  ;;  %v826_v12 = vpop.permute.xlu1 %825 }
 0x36c   : > { %9356 = vrcp.f32 %v698_v6 }
 0x372   : > { %1067 = vrot.lane.b32.xlu1 %v9692_v52, %s11503_s21  ;;  %s11511_s21 = smov 16  }
 0x375   : > { %v9355_v7 = vpop.eup %9354 }
 0x376   : > { %v701_v9 = vmul.f32 %v9355_v7, %v9339_v32 }
 0x379   : > { %v9357_v8 = vpop.eup %9356 }
 0x37a   : > { %v702_v10 = vmul.f32 %v9357_v8, %v9341_v34 }
 0x37b   : > { %946 = vrot.lane.b32.xlu0 %v9692_v52, %s11505_s11 }
 0x37c   : > { %v703_v11 = vpack.c.bf16 %v702_v10, %v701_v9 }
 0x37e   : > { %8578 = vmatmul.mubr.msk.bf16.vlgmr.msra.gmra.mxu1 %vm633_vm2, %v703_v11 }
 0x37f   : > { %8588 = vmatpush3.bf16.msra.mxu1 %v826_v12  ;;  %8589 = vmatprep.mubr.msk.bf16.mxu1 %vm9482_vm0, %v9481_v2 }
 0x380   : > { %8599 = vmatprep.subr.bf16.mxu1 %v9481_v2 }
 0x3da   : > { %v815_v13 = vpop.xlane.xlu1 %814 }
 0x3db   : > { %9358 = vrcp.f32 %v815_v13 }
 0x3de   : > { %v818_v14 = vpop.xlane.xlu0 %817 }
 0x3df   : > { %9360 = vrcp.f32 %v818_v14 }
 0x3e2   : > { %v937_v15 = vpop.xlane.xlu1 %936 }
 0x3e3   : > { %9362 = vrcp.f32 %v937_v15  ;;  %v7022_v15 = vld [vmem:[%s11492_s3 + $0x3] ss:$0 sm:$0xff] }
 0x3e6   : > { %v940_v16 = vpop.xlane.xlu0 %939 }
 0x3e7   : > { %9364 = vrcp.f32 %v940_v16 }
 0x3e8   : > { %v9359_v17 = vpop.eup %9358 }
 0x3e9   : > { %v821_v19 = vmul.f32 %v9359_v17, %v9343_v50 }
 0x3ea   : > { %v1058_v52 = vpop.xlane.xlu1 %1057 }
 0x3eb   : > { %9366 = vrcp.f32 %v1058_v52 }
 0x3ec   : > { %v9361_v18 = vpop.eup %9360 }
 0x3ed   : > { %v822_v22 = vmul.f32 %v9361_v18, %v9345_v56 }
 0x3ee   : > { %v1061_v23 = vpop.xlane.xlu0 %1060  ;;  %v1068_v31 = vpop.permute.xlu1 %1067 }
 0x3ef   : > { %9368 = vrcp.f32 %v1061_v23  ;;  %v823_v24 = vpack.c.bf16 %v822_v22, %v821_v19 }
 0x3f0   : > { %v9363_v25 = vpop.eup %9362 }
 0x3f1   : > { %8590 = vmatmul.mubr.msk.bf16.vlgmr.msra.gmra.mxu1 %vm633_vm2, %v823_v24  ;;  %v943_v28 = vmul.f32 %v9363_v25, %v9347_v59 }
 0x3f2   : > { %v947_v26 = vpop.permute.xlu0 %946  ;;  %8601 = vmatprep.mubr.msk.bf16.mxu1 %vm9482_vm0, %v9481_v2 }
 0x3f3   : > { %8600 = vmatpush3.bf16.msra.mxu1 %v947_v26 }
 0x3f4   : > { %v9365_v27 = vpop.eup %9364  ;;  %8611 = vmatprep.subr.bf16.mxu1 %v9481_v2 }
 0x3f5   : > { %v944_v29 = vmul.f32 %v9365_v27, %v9349_v61 }
 0x3f7   : > { %v945_v30 = vpack.c.bf16 %v944_v29, %v943_v28 }
 0x3f8   : > { %v9367_v32 = vpop.eup %9366 }
 0x3f9   : > { %8602 = vmatmul.mubr.msk.bf16.vlgmr.msra.gmra.mxu1 %vm633_vm2, %v945_v30  ;;  %v1064_v34 = vmul.f32 %v9367_v32, %v9351_v63 }
 0x3fa   : > { %8612 = vmatpush3.bf16.msra.mxu1 %v1068_v31  ;;  %8613 = vmatprep.mubr.msk.bf16.mxu1 %vm9482_vm0, %v9481_v2 }
 0x3fc   : > { %v9369_v33 = vpop.eup %9368 }
 0x3fd   : > { %v1065_v35 = vmul.f32 %v9369_v33, %v9353_v3 }
 0x3ff   : > { %v1066_v36 = vpack.c.bf16 %v1065_v35, %v1064_v34 }
 0x401   : > { %8614 = vmatmul.mubr.msk.bf16.vlgmr.msra.gmra.mxu1 %vm633_vm2, %v1066_v36  ;;  %v8879_v36 = vld [vmem:[%s11493_s4 + $0x6c] ss:$16 sps:$4 sm:$0xff]  }
 0x402   : > { %1423 = vmatprep.mubr.bf16.mxu1 %v9480_v1  ;;  %1442 = vmatprep.subr.bf16.mxu0 %v8879_v36  ;;  %v8936_v36 = vld [vmem:[%s11495_s6 + $0x120] sm:$0xff]  }
 0x43e   : > { %v741_v37 = vpop.f32.mrf.mxu1 }
 0x440   : > { %v8579_v38 = vpop.f32.mrf.mxu1 }
 0x441   : > { %v8877_v38 = vld [vmem:[%s11493_s4 + $0x68] ss:$16 sps:$4 sm:$0xff]  }
 0x442   : > { %v744_v39 = vpop.f32.mrf.mxu1 }
 0x444   : > { %v8580_v40 = vpop.f32.mrf.mxu1 }
 0x445   : > { %v8885_v40 = vld [vmem:[%s11493_s4 + $0x4c] ss:$16 sps:$4 sm:$0xff]  }
 0x4b1   : > { %v865_v42 = vpop.f32.mrf.mxu1 }
 0x4b3   : > { %v8591_v43 = vpop.f32.mrf.mxu1 }
 0x4b4   : > { %v8888_v43 = vld [vmem:[%s11493_s4 + $0x24] ss:$16 sps:$4 sm:$0xff]  }
 0x4b5   : > { %v868_v45 = vpop.f32.mrf.mxu1 }
 0x4b6   : > { %v8828_v46 = vpack.i.bf16 %v868_v45, %v865_v42  ;;  %v8883_v42 = vld [vmem:[%s11493_s4 + $0x48] ss:$16 sps:$4 sm:$0xff]   ;;  %v8886_v45 = vld [vmem:[%s11493_s4 + $0x20] ss:$16 sps:$4 sm:$0xff]  }
 0x4b7   : > { %v8592_v48 = vpop.f32.mrf.mxu1 }
 0x4b8   : > { %8829 = vrot.lane.b32.xlu1 %v8828_v46, %s11502_s18  ;;  %v8889_v46 = vld [vmem:[%s11493_s4 + $0x28] ss:$16 sps:$4 sm:$0xff]   ;;  %v8897_v48 = vld [vmem:[%s11493_s4 + $0xc] ss:$16 sps:$4 sm:$0xff]   ;;  %s350_s18 = sand.u32 1, %s9470_s14  }
 0x4b9   : > { %v986_v49 = vpop.f32.mrf.mxu1 }
 0x4bb   : > { %v8603_v50 = vpop.f32.mrf.mxu1 }
 0x4bc   : > { %v8895_v50 = vld [vmem:[%s11493_s4 + $0x8] ss:$16 sps:$4 sm:$0xff]  }
 0x4bd   : > { %v989_v53 = vpop.f32.mrf.mxu1 }
 0x4be   : > { %v8833_v54 = vpack.i.bf16 %v989_v53, %v986_v49  ;;  %v8892_v49 = vld [vmem:[%s11493_s4] ss:$16 sps:$4 sm:$0xff]   ;;  %v8903_v53 = vld [vmem:[%s11493_s4 + $0xec] ss:$16 sps:$4 sm:$0xff]  }
 0x4bf   : > { %v8604_v55 = vpop.f32.mrf.mxu1 }
 0x4c0   : > { %8834 = vrot.lane.b32.xlu0 %v8833_v54, %s11501_s26 }
 0x4c1   : > { %v1107_v56 = vpop.f32.mrf.mxu1 }
 0x4c3   : > { %v8615_v57 = vpop.f32.mrf.mxu1 }
 0x4c5   : > { %v1110_v58 = vpop.f32.mrf.mxu1 }
 0x4c6   : > { %v8838_v59 = vpack.i.bf16 %v1110_v58, %v1107_v56 }
 0x4c7   : > { %v8616_v60 = vpop.f32.mrf.mxu1 }
 0x4c8   : > { %8839 = vrot.lane.b32.xlu1 %v8838_v59, %s11500_s28  ;;  %s6898_s28 = scalar_lea.sflag [#allocation3], %s350_s18 }
 0x52a   : > { %v8830_v61 = vpop.permute.xlu1 %8829 }
 0x52b   : > { %v8832_v63 = vunpack.i.h.bf16 %v8830_v61  ;;  %v8831_v0 = vunpack.i.l.bf16 %v8830_v61 }
 0x52d   : > { %v1139_v6 = vsel %vm633_vm2, %v744_v39, %v8832_v63  ;;  %v1138_v7 = vsel %vm633_vm2, %v741_v37, %v8831_v0  ;;  %v8874_v37 = vld [vmem:[%s11493_s4 + $0x60] ss:$16 sps:$4 sm:$0xff]   ;;  %v8882_v39 = vld [vmem:[%s11493_s4 + $0x44] ss:$16 sps:$4 sm:$0xff]  }
 0x532   : > { %v8835_v62 = vpop.permute.xlu0 %8834 }
 0x533   : > { %v8837_v3 = vunpack.i.h.bf16 %v8835_v62  ;;  %v8836_v4 = vunpack.i.l.bf16 %v8835_v62  ;;  %v7028_v62 = vld [vmem:[%s11492_s3 + $0x4] ss:$0 sm:$0xff] }
 0x535   : > { %v1142_v10 = vsel %vm1140_vm3, %v1139_v6, %v8837_v3  ;;  %v1141_v11 = vsel %vm1140_vm3, %v1138_v7, %v8836_v4  ;;  %v7029_v4 = vld [vmem:[%s11492_s3 + $0x5] ss:$0 sm:$0xff] }
 0x53a   : > { %v8840_v5 = vpop.permute.xlu1 %8839 }
 0x53b   : > { %v8842_v8 = vunpack.i.h.bf16 %v8840_v5  ;;  %v8841_v9 = vunpack.i.l.bf16 %v8840_v5 }
 0x53d   : > { %v1145_v12 = vsel %vm1143_vm4, %v1142_v10, %v8842_v8  ;;  %v1144_v13 = vsel %vm1143_vm4, %v1141_v11, %v8841_v9  ;;  %v8898_v8 = vld [vmem:[%s11493_s4 + $0xe0] ss:$16 sps:$4 sm:$0xff]   ;;  %v8901_v9 = vld [vmem:[%s11493_s4 + $0xe8] ss:$16 sps:$4 sm:$0xff]   ;;  %v8906_v11 = vld [vmem:[%s11493_s4 + $0xc4] ss:$16 sps:$4 sm:$0xff]  }
 0x53e   : > { %v1146_v14 = vpack.c.bf16 %v1145_v12, %v1144_v13  ;;  %v8909_v12 = vld [vmem:[%s11493_s4 + $0xcc] ss:$16 sps:$4 sm:$0xff]   ;;  %v8904_v13 = vld [vmem:[%s11493_s4 + $0xc0] ss:$16 sps:$4 sm:$0xff]  }
 0x540   : > { %8626 = vmatmul.mubr.msk.bf16.vlgmr.msra.gmra.mxu0 %vm427_vm1, %v1146_v14  ;;  %v8907_v14 = vld [vmem:[%s11493_s4 + $0xc8] ss:$16 sps:$4 sm:$0xff]  }
 0x541   : > { %1466 = vmatprep.mubr.bf16.mxu0 %v9480_v1  ;;  %1443 = vmatpush1.bf16.msra.mxu0 %v8877_v38  ;;  %v8938_v38 = vld [vmem:[%s11495_s6 + $0x158] sm:$0xff]  }
 0x542   : > { %1444 = vmatprep.subr.bf16.mxu0 %v8885_v40  ;;  %v8940_v40 = vld [vmem:[%s11495_s6 + $0x118] sm:$0xff]  }
 0x545   : > { %1445 = vmatpush1.bf16.msra.mxu0 %v8883_v42  ;;  %v8942_v42 = vld [vmem:[%s11495_s6 + $0x150] sm:$0xff]  }
 0x546   : > { %1446 = vmatprep.subr.bf16.mxu0 %v8891_v44  ;;  %v8944_v44 = vld [vmem:[%s11495_s6 + $0x110] sm:$0xff]  }
 0x549   : > { %1447 = vmatpush1.bf16.msra.mxu0 %v8889_v46  ;;  %v8946_v46 = vld [vmem:[%s11495_s6 + $0x148] sm:$0xff]  }
 0x54a   : > { %1448 = vmatprep.subr.bf16.mxu0 %v8897_v48  ;;  %v8948_v48 = vld [vmem:[%s11495_s6 + $0x108] sm:$0xff]  }
 0x54d   : > { %1449 = vmatpush1.bf16.msra.mxu0 %v8895_v50  ;;  %v8950_v50 = vld [vmem:[%s11495_s6 + $0x140] sm:$0xff]  }
 0x54e   : > { %1724 = vmatprep.subr.bf16.mxu0 %v8903_v53  ;;  %v8952_v53 = vld [vmem:[%s11495_s6 + $0x100] sm:$0xff]  }
 0x600   : > { %v1221_v16 = vpop.f32.mrf.mxu0 }
 0x601   : > { %v1222_v17 = vadd.f32 %v7022_v15, %v1221_v16  ;;  %v8915_v16 = vld [vmem:[%s11493_s4 + $0xac] ss:$16 sps:$4 sm:$0xff]  }
 0x602   : > { %v8627_v52 = vpop.f32.mrf.mxu0 }
 0x603   : > { %v1228_v18 = vadd.f32 %v1222_v17, %v9649_v20  ;;  %v8910_v17 = vld [vmem:[%s11493_s4 + $0xa0] ss:$16 sps:$4 sm:$0xff]   ;;  %v8913_v52 = vld [vmem:[%s11493_s4 + $0xa8] ss:$16 sps:$4 sm:$0xff]  }
 0x604   : > { %v1224_v19 = vpop.f32.mrf.mxu0 }
 0x605   : > { %v1225_v22 = vadd.f32 %v7022_v15, %v1224_v19  ;;  %v1230_v23 = vsel %vm427_vm1, %v1228_v18, 0.0  ;;  %v8912_v15 = vld [vmem:[%s11493_s4 + $0xa4] ss:$16 sps:$4 sm:$0xff]   ;;  %v8921_v19 = vld [vmem:[%s11493_s4 + $0x8c] ss:$16 sps:$4 sm:$0xff]  }
 0x606   : > { %1231 = vadd.xlane.f32.xlu0 %v1230_v23  ;;  %v8628_v24 = vpop.f32.mrf.mxu0  ;;  %v8919_v23 = vld [vmem:[%s11493_s4 + $0x88] ss:$16 sps:$4 sm:$0xff]  }
 0x607   : > { %v1229_v25 = vadd.f32 %v1225_v22, %v9651_v21  ;;  %v8876_v21 = vld [vmem:[%s11493_s4 + $0x64] ss:$16 sps:$4 sm:$0xff]   ;;  %v8916_v22 = vld [vmem:[%s11493_s4 + $0x80] ss:$16 sps:$4 sm:$0xff]   ;;  %v8922_v24 = vld [vmem:[%s11495_s6 + $0x178] sm:$0xff]  }
 0x608   : > { %1399 = vmatprep.subr.bf16.mxu1 %v8876_v21  ;;  %v8935_v21 = vld [vmem:[%s11495_s6 + $0x1e0] sm:$0xff]  }
 0x609   : > { %v1233_v26 = vsel %vm427_vm1, %v1229_v25, 0.0  ;;  %1400 = vmatpush1.bf16.msra.mxu1 %v8874_v37  ;;  %v8937_v37 = vld [vmem:[%s11495_s6 + $0x1a0] sm:$0xff]  }
 0x60a   : > { %1234 = vadd.xlane.f32.xlu1 %v1233_v26  ;;  %1401 = vmatprep.subr.bf16.mxu1 %v8882_v39  ;;  %v8924_v26 = vld [vmem:[%s11495_s6 + $0x138] sm:$0xff]  }
 0x60b   : > { %v8939_v39 = vld [vmem:[%s11495_s6 + $0x1d8] sm:$0xff]  }
 0x60d   : > { %1402 = vmatpush1.bf16.msra.mxu1 %v8880_v41  ;;  %v8941_v41 = vld [vmem:[%s11495_s6 + $0x198] sm:$0xff]  }
 0x60e   : > { %1403 = vmatprep.subr.bf16.mxu1 %v8888_v43  ;;  %v8943_v43 = vld [vmem:[%s11495_s6 + $0x1d0] sm:$0xff]  }
 0x611   : > { %1404 = vmatpush1.bf16.msra.mxu1 %v8886_v45  ;;  %v8945_v45 = vld [vmem:[%s11495_s6 + $0x190] sm:$0xff]  }
 0x612   : > { %1405 = vmatprep.subr.bf16.mxu1 %v8894_v47  ;;  %v8947_v47 = vld [vmem:[%s11495_s6 + $0x1c8] sm:$0xff]  }
 0x615   : > { %1406 = vmatpush1.bf16.msra.mxu1 %v8892_v49  ;;  %v8949_v49 = vld [vmem:[%s11495_s6 + $0x188] sm:$0xff]  }
 0x616   : > { %1681 = vmatprep.subr.bf16.mxu1 %v8900_v51  ;;  %v8951_v51 = vld [vmem:[%s11495_s6 + $0x1c0] sm:$0xff]  }
 0x68f   : > { %v1232_v27 = vpop.xlane.xlu0 %1231 }
 0x690   : > { %v1237_v28 = vmul.f32 0.015625, %v1232_v27  ;;  %v8925_v27 = vld [vmem:[%s11495_s6 + $0x1b8] sm:$0xff]  }
 0x692   : > { %v1239_v29 = vsub.f32 %v1228_v18, %v1237_v28  ;;  %v8918_v18 = vld [vmem:[%s11493_s4 + $0x84] ss:$16 sps:$4 sm:$0xff]  }
 0x693   : > { %v1235_v30 = vpop.xlane.xlu1 %1234  ;;  %v8926_v28 = vld [vmem:[%s11495_s6 + $0x170] sm:$0xff]  }
 0x694   : > { %v1238_v31 = vmul.f32 0.015625, %v1235_v30  ;;  %v1241_v32 = vmul.f32 %v1239_v29, %v1239_v29  ;;  %v8928_v30 = vld [vmem:[%s11495_s6 + $0x130] sm:$0xff]  }
 0x696   : > { %v1240_v33 = vsub.f32 %v1229_v25, %v1238_v31  ;;  %v1243_v20 = vsel %vm427_vm1, %v1241_v32, 0.0  ;;  %v8923_v25 = vld [vmem:[%s11495_s6 + $0x1f8] sm:$0xff]   ;;  %v8929_v31 = vld [vmem:[%s11495_s6 + $0x1b0] sm:$0xff]   ;;  %v8930_v32 = vld [vmem:[%s11495_s6 + $0x168] sm:$0xff]  }
 0x697   : > { %1244 = vadd.xlane.f32.xlu0 %v1243_v20  ;;  %v8932_v20 = vld [vmem:[%s11495_s6 + $0x128] sm:$0xff]  }
 0x698   : > { %v1242_v34 = vmul.f32 %v1240_v33, %v1240_v33 }
 0x69a   : > { %v1246_v35 = vsel %vm427_vm1, %v1242_v34, 0.0  ;;  %v8933_v34 = vld [vmem:[%s11495_s6 + $0x1a8] sm:$0xff]  }
 0x69b   : > { %1247 = vadd.xlane.f32.xlu0 %v1246_v35  ;;  %v8934_v35 = vld [vmem:[%s11495_s6 + $0x160] sm:$0xff]  }
 0x720   : > { %v1245_v54 = vpop.xlane.xlu0 %1244 }
 0x721   : > { %v1249_v55 = vmul.f32 0.015625, %v1245_v54  ;;  %v8953_v54 = vld [vmem:[%s11495_s6 + $0x180] sm:$0xff]  }
 0x723   : > { %v1251_v56 = vadd.f32 1e-05, %v1249_v55  ;;  %v8954_v55 = vld [vmem:[%s11495_s6 + $0x78] sm:$0xff]  }
 0x724   : > { %v1248_v57 = vpop.xlane.xlu0 %1247 }
 0x725   : > { %9370 = vrsqrt.f32 %v1251_v56  ;;  %v1250_v58 = vmul.f32 0.015625, %v1248_v57  ;;  %v8955_v56 = vld [vmem:[%s11495_s6 + $0xf8] sm:$0xff]  }
 0x727   : > { %v1252_v59 = vadd.f32 1e-05, %v1250_v58 }
 0x729   : > { %9372 = vrsqrt.f32 %v1252_v59 }
 0x732   : > { %v9371_v60 = vpop.eup %9370 }
 0x733   : > { %v1255_v61 = vmul.f32 %v9371_v60, %v1239_v29  ;;  %v8927_v29 = vld [vmem:[%s11495_s6 + $0x1f0] sm:$0xff]  }
 0x735   : > { %v1261_v0 = vmul.f32 %v7028_v62, %v1255_v61  ;;  %v1288_v61 = vlaneseq }
 0x736   : > { %v9373_v63 = vpop.eup %9372 }
 0x737   : > { %v1256_v3 = vmul.f32 %v9373_v63, %v1240_v33  ;;  %v9846_v6 = vadd.f32 %v7029_v4, %v1261_v0  ;;  %v8931_v33 = vld [vmem:[%s11495_s6 + $0x1e8] sm:$0xff]   ;;  %v1289_v0 = vshrl.u32 %v1288_v61, 7  ;;  %v8959_v61 = vld [vmem:[%s11495_s6 + $0xf0] sm:$0xff]  }
 0x739   : > { %v1262_v5 = vmul.f32 %v7028_v62, %v1256_v3 }
 0x73b   : > { %v9848_v7 = vadd.f32 %v7029_v4, %v1262_v5  ;;  %v10016_v5 = vsub.s32 1, %v1289_v0 }
 0x73d   : > { %v9858_v10 = vpack.c.bf16 %v9848_v7, %v9846_v6 }
 0x73f   : > { %7046 = vmatmul.mubr.msk.bf16.vlgmr.msra.gmra.mxu1 %vm427_vm1, %v9858_v10  ;;  %7047 = vmatmul.mubr.msk.bf16.vlgmr.msra.gmra.mxu0 %vm427_vm1, %v9858_v10 }
 0x740   : > { %1682 = vmatpush1.bf16.msra.mxu1 %v8898_v8  ;;  %1725 = vmatpush1.bf16.msra.mxu0 %v8901_v9  ;;  %v10018_v8 = vsub.s32 3, %v1289_v0  ;;  %v7064_v9 = vld [vmem:[%s11494_s5 + $0x4] sm:$0xf] }
 0x741   : > { %1683 = vmatprep.subr.bf16.mxu1 %v8906_v11  ;;  %1726 = vmatprep.subr.bf16.mxu0 %v8909_v12  ;;  %v10023_v11 = vsub.s32 0, %v1289_v0  ;;  %v10025_v12 = vsub.s32 2, %v1289_v0 }
 0x742   : > { %1705 = vmatprep.mubr.bf16.mxu1 %v9480_v1  ;;  %1748 = vmatprep.mubr.bf16.mxu0 %v9480_v1 }
 0x744   : > { %1684 = vmatpush1.bf16.msra.mxu1 %v8904_v13  ;;  %1727 = vmatpush1.bf16.msra.mxu0 %v8907_v14 }
 0x745   : > { %1685 = vmatprep.subr.bf16.mxu1 %v8912_v15  ;;  %1728 = vmatprep.subr.bf16.mxu0 %v8915_v16  ;;  %v1580_v15 = vrot.slane %v7064_v9, %v10016_v5  ;;  %v1588_v16 = vrot.slane %v7064_v9, %v10018_v8 }
 0x748   : > { %1686 = vmatpush1.bf16.msra.mxu1 %v8910_v17  ;;  %1729 = vmatpush1.bf16.msra.mxu0 %v8913_v52  ;;  %v1576_v17 = vrot.slane %v7064_v9, %v10023_v11  ;;  %v1584_v52 = vrot.slane %v7064_v9, %v10025_v12  ;;  %v8961_v9 = vld [vmem:[%s11495_s6 + $0xb0] sm:$0xff]  }
 0x749   : > { %1687 = vmatprep.subr.bf16.mxu1 %v8918_v18  ;;  %1730 = vmatprep.subr.bf16.mxu0 %v8921_v19 }
 0x74c   : > { %1688 = vmatpush1.bf16.msra.mxu1 %v8916_v22  ;;  %1731 = vmatpush1.bf16.msra.mxu0 %v8919_v23  ;;  %v10034_v22 = vld [vmem:[%s11494_s5] sm:$0xf] }
 0x74d   : > { %8119 = vmatprep.subr.bf16.mxu1 %v8922_v24  ;;  %8141 = vmatprep.subr.bf16.mxu0 %v8923_v25  ;;  %v1295_v23 = vrot.slane %v10034_v22, %v10016_v5  ;;  %v1303_v24 = vrot.slane %v10034_v22, %v10018_v8 }
 0x74f   : > { %7081 = vmatmul.mubr.msk.bf16.vlgmr.msra.gmra.mxu1 %vm427_vm1, %v9858_v10  ;;  %7082 = vmatmul.mubr.msk.bf16.vlgmr.msra.gmra.mxu0 %vm427_vm1, %v9858_v10 }
 0x750   : > { %8120 = vmatpush3.bf16.msra.mxu1 %v8924_v26  ;;  %8142 = vmatpush3.bf16.msra.mxu0 %v8925_v27 }
 0x751   : > { %8121 = vmatprep.subr.bf16.mxu1 %v8926_v28  ;;  %8143 = vmatprep.subr.bf16.mxu0 %v8927_v29 }
 0x754   : > { %8122 = vmatpush3.bf16.msra.mxu1 %v8928_v30  ;;  %8144 = vmatpush3.bf16.msra.mxu0 %v8929_v31 }
 0x755   : > { %8123 = vmatprep.subr.bf16.mxu1 %v8930_v32  ;;  %8145 = vmatprep.subr.bf16.mxu0 %v8931_v33 }
 0x758   : > { %8124 = vmatpush3.bf16.msra.mxu1 %v8932_v20  ;;  %8146 = vmatpush3.bf16.msra.mxu0 %v8933_v34 }
 0x759   : > { %8125 = vmatprep.subr.bf16.mxu1 %v8934_v35  ;;  %8147 = vmatprep.subr.bf16.mxu0 %v8935_v21 }
 0x75c   : > { %8126 = vmatpush3.bf16.msra.mxu1 %v8936_v36  ;;  %8148 = vmatpush3.bf16.msra.mxu0 %v8937_v37 }
 0x75d   : > { %8127 = vmatprep.subr.bf16.mxu1 %v8938_v38  ;;  %8149 = vmatprep.subr.bf16.mxu0 %v8939_v39 }
 0x760   : > { %8128 = vmatpush3.bf16.msra.mxu1 %v8940_v40  ;;  %8150 = vmatpush3.bf16.msra.mxu0 %v8941_v41 }
 0x761   : > { %8129 = vmatprep.subr.bf16.mxu1 %v8942_v42  ;;  %8151 = vmatprep.subr.bf16.mxu0 %v8943_v43 }
 0x764   : > { %8130 = vmatpush3.bf16.msra.mxu1 %v8944_v44  ;;  %8152 = vmatpush3.bf16.msra.mxu0 %v8945_v45 }
 0x765   : > { %8131 = vmatprep.subr.bf16.mxu1 %v8946_v46  ;;  %8153 = vmatprep.subr.bf16.mxu0 %v8947_v47 }
 0x768   : > { %8132 = vmatpush3.bf16.msra.mxu1 %v8948_v48  ;;  %8154 = vmatpush3.bf16.msra.mxu0 %v8949_v49 }
 0x769   : > { %8133 = vmatprep.subr.bf16.mxu1 %v8950_v50  ;;  %8155 = vmatprep.subr.bf16.mxu0 %v8951_v51  ;;  %v8956_v51 = vld [vmem:[%s11495_s6 + $0x38] sm:$0xff]  }
 0x76c   : > { %8134 = vmatpush3.bf16.msra.mxu1 %v8952_v53  ;;  %8156 = vmatpush3.bf16.msra.mxu0 %v8953_v54  ;;  %v8957_v53 = vld [vmem:[%s11495_s6 + $0xb8] sm:$0xff]  }
 0x76d   : > { %8163 = vmatprep.subr.bf16.mxu1 %v8954_v55  ;;  %8185 = vmatprep.subr.bf16.mxu0 %v8955_v56 }
 0x7ff   : > { %v10008_v57 = vpop.f32.mrf.mxu1  ;;  %v10010_v58 = vpop.f32.mrf.mxu0 }
 0x801   : > { %v1427_v59 = vpop.f32.mrf.mxu1  ;;  %v1470_v60 = vpop.f32.mrf.mxu0 }
 0x802   : > { %v1428_v37 = vadd.f32 %v1427_v59, %v1295_v23  ;;  %v1471_v38 = vadd.f32 %v1470_v60, %v1303_v24  ;;  %v8958_v60 = vld [vmem:[%s11495_s6 + $0x70] sm:$0xff]  }
 0x803   : > { %v10012_v62 = vpop.f32.mrf.mxu1  ;;  %v10014_v63 = vpop.f32.mrf.mxu0 }
 0x804   : > { %v1478_v54 = vmax.f32 %v1428_v37, 0.0  ;;  %v1480_v55 = vmax.f32 %v1471_v38, 0.0  ;;  %v8983_v37 = vld [vmem:[%s11495_s6 + $0xc0] sm:$0xff]  }
 0x805   : > { %v1431_v3 = vpop.f32.mrf.mxu1  ;;  %v1474_v4 = vpop.f32.mrf.mxu0 }
 0x806   : > { %v1432_v31 = vadd.f32 %v1431_v3, %v1295_v23  ;;  %v1475_v32 = vadd.f32 %v1474_v4, %v1303_v24  ;;  %v8960_v4 = vld [vmem:[%s11495_s6 + $0x30] sm:$0xff]   ;;  %v8970_v23 = vld [vmem:[%s11495_s6 + $0x58] sm:$0xff]  }
 0x807   : > { %v8971_v24 = vld [vmem:[%s11495_s6 + $0xd8] sm:$0xff]  }
 0x808   : > { %v1482_v45 = vmax.f32 %v1432_v31, 0.0  ;;  %v1484_v46 = vmax.f32 %v1475_v32, 0.0  ;;  %v8978_v31 = vld [vmem:[%s11495_s6 + $0x48] sm:$0xff]  }
 0x809   : > { %v8979_v32 = vld [vmem:[%s11495_s6 + $0xc8] sm:$0xff]  }
 0x80a   : > { %v1486_v0 = vpack.c.bf16 %v1482_v45, %v1478_v54  ;;  %v1488_v3 = vpack.c.bf16 %v1484_v46, %v1480_v55  ;;  %v8989_v45 = vld [vmem:[%s11493_s4 + $0x168] ss:$16 sps:$4 sm:$0xff]   ;;  %v9003_v54 = vld [vmem:[%s11493_s4 + $0x12c] ss:$16 sps:$4 sm:$0xff]   ;;  %v8998_v55 = vld [vmem:[%s11493_s4 + $0x120] ss:$16 sps:$4 sm:$0xff]  }
 0x80f   : > { %v1707_v13 = vpop.f32.mrf.mxu1  ;;  %v1750_v14 = vpop.f32.mrf.mxu0 }
 0x810   : > { %v1708_v33 = vadd.f32 %v1707_v13, %v1576_v17  ;;  %v1751_v20 = vadd.f32 %v1750_v14, %v1584_v52  ;;  %v8962_v13 = vld [vmem:[%s11495_s6 + $0x68] sm:$0xff]  }
 0x811   : > { %v1709_v18 = vpop.f32.mrf.mxu1  ;;  %v1752_v19 = vpop.f32.mrf.mxu0  ;;  %v8963_v14 = vld [vmem:[%s11495_s6 + $0xe8] sm:$0xff]  }
 0x812   : > { %v1710_v27 = vadd.f32 %v1709_v18, %v1580_v15  ;;  %v1753_v28 = vadd.f32 %v1752_v19, %v1588_v16  ;;  %v1759_v47 = vmax.f32 %v1708_v33, 0.0  ;;  %v1761_v48 = vmax.f32 %v1751_v20, 0.0  ;;  %v8968_v18 = vld [vmem:[%s11495_s6 + $0x20] sm:$0xff]  }
 0x813   : > { %v1711_v25 = vpop.f32.mrf.mxu1  ;;  %v1754_v26 = vpop.f32.mrf.mxu0  ;;  %v8969_v19 = vld [vmem:[%s11495_s6 + $0xa0] sm:$0xff]   ;;  %v1291_v33 = vrot.slane %v10034_v22, %v10023_v11  ;;  %v1299_v20 = vrot.slane %v10034_v22, %v10025_v12 }
 0x814   : > { %v1712_v29 = vadd.f32 %v1711_v25, %v1576_v17  ;;  %v1755_v30 = vadd.f32 %v1754_v26, %v1584_v52  ;;  %v1760_v41 = vmax.f32 %v1710_v27, 0.0  ;;  %v1762_v42 = vmax.f32 %v1753_v28, 0.0  ;;  %v8966_v17 = vld [vmem:[%s11495_s6 + $0x60] sm:$0xff]   ;;  %v8972_v25 = vld [vmem:[%s11495_s6 + $0x18] sm:$0xff]   ;;  %v8974_v27 = vld [vmem:[%s11495_s6 + $0x50] sm:$0xff]  }
 0x815   : > { %v1713_v34 = vpop.f32.mrf.mxu1  ;;  %v1756_v35 = vpop.f32.mrf.mxu0  ;;  %v8967_v52 = vld [vmem:[%s11495_s6 + $0xe0] sm:$0xff]   ;;  %v8973_v26 = vld [vmem:[%s11495_s6 + $0x98] sm:$0xff]   ;;  %v8975_v28 = vld [vmem:[%s11495_s6 + $0xd0] sm:$0xff]   ;;  %v1426_v38 = vadd.f32 %v10008_v57, %v1291_v33 }
 0x816   : > { %v1714_v21 = vadd.f32 %v1713_v34, %v1580_v15  ;;  %v1757_v36 = vadd.f32 %v1756_v35, %v1588_v16  ;;  %v1763_v39 = vmax.f32 %v1712_v29, 0.0  ;;  %v1765_v40 = vmax.f32 %v1755_v30, 0.0  ;;  %v8964_v15 = vld [vmem:[%s11495_s6 + $0x28] sm:$0xff]   ;;  %v8976_v29 = vld [vmem:[%s11495_s6 + $0x10] sm:$0xff]   ;;  %v8982_v22 = vld [vmem:[%s11495_s6 + $0x40] sm:$0xff]  }
 0x817   : > { %v8965_v16 = vld [vmem:[%s11495_s6 + $0xa8] sm:$0xff]   ;;  %v8977_v30 = vld [vmem:[%s11495_s6 + $0x90] sm:$0xff]  }
 0x818   : > { %v1764_v43 = vmax.f32 %v1714_v21, 0.0  ;;  %v1766_v44 = vmax.f32 %v1757_v36, 0.0  ;;  %v1767_v56 = vpack.c.bf16 %v1763_v39, %v1759_v47  ;;  %v1769_v59 = vpack.c.bf16 %v1765_v40, %v1761_v48  ;;  %v8980_v34 = vld [vmem:[%s11495_s6 + $0x8] sm:$0xff]   ;;  %v8988_v57 = vld [vmem:[%s11493_s4 + $0x164] ss:$16 sps:$4 sm:$0xff]  }
 0x819   : > { %v8981_v35 = vld [vmem:[%s11495_s6 + $0x88] sm:$0xff]   ;;  %v1430_v21 = vadd.f32 %v10012_v62, %v1291_v33  ;;  %v1473_v36 = vadd.f32 %v10014_v63, %v1299_v20  ;;  %v1469_v39 = vadd.f32 %v10010_v58, %v1299_v20  ;;  %v8984_v62 = vld [vmem:[%s11495_s6] sm:$0xff]   ;;  %v9031_v33 = vld [vmem:[%s11495_s6 + $0x2d0] sm:$0xff]  }
 0x81a   : > { %v1768_v49 = vpack.c.bf16 %v1764_v43, %v1760_v41  ;;  %v1770_v50 = vpack.c.bf16 %v1766_v44, %v1762_v42  ;;  %v8985_v63 = vld [vmem:[%s11495_s6 + $0x80] sm:$0xff]   ;;  %v8991_v58 = vld [vmem:[%s11493_s4 + $0x16c] ss:$16 sps:$4 sm:$0xff]   ;;  %v1477_v42 = vmax.f32 %v1426_v38, 0.0  ;;  %v9032_v20 = vld [vmem:[%s11495_s6 + $0x210] sm:$0xff]  }
 0x81b   : > { %v1481_v40 = vmax.f32 %v1430_v21, 0.0  ;;  %v1483_v41 = vmax.f32 %v1473_v36, 0.0  ;;  %v1479_v43 = vmax.f32 %v1469_v39, 0.0  ;;  %v8986_v44 = vld [vmem:[%s11493_s4 + $0x160] ss:$16 sps:$4 sm:$0xff]   ;;  %v9035_v21 = vld [vmem:[%s11495_s6 + $0x2c8] sm:$0xff]  }
 0x81c   : > { %2060 = vmatprep.mubr.bf16.mxu1 %v1768_v49  ;;  %2101 = vmatprep.mubr.bf16.mxu0 %v1770_v50  ;;  %v8994_v48 = vld [vmem:[%s11493_s4 + $0x144] ss:$16 sps:$4 sm:$0xff]   ;;  %v8997_v49 = vld [vmem:[%s11493_s4 + $0x14c] ss:$16 sps:$4 sm:$0xff]   ;;  %v8992_v50 = vld [vmem:[%s11493_s4 + $0x140] ss:$16 sps:$4 sm:$0xff]  }
 0x81d   : > { %2061 = vmatmul.mubr.bf16.vlgmr.msra.gmra.mxu1 %v1767_v56  ;;  %2102 = vmatmul.mubr.bf16.vlgmr.msra.gmra.mxu0 %v1769_v59  ;;  %v1485_v46 = vpack.c.bf16 %v1481_v40, %v1477_v42  ;;  %v1487_v47 = vpack.c.bf16 %v1483_v41, %v1479_v43  ;;  %v9001_v56 = vld [vmem:[%s11493_s4 + $0x128] ss:$16 sps:$4 sm:$0xff]   ;;  %v9006_v59 = vld [vmem:[%s11493_s4 + $0x104] ss:$16 sps:$4 sm:$0xff]   ;;  %v9047_v40 = vld [vmem:[%s11493_s4 + $0x1ec] ss:$16 sps:$4 sm:$0xff]  }
 0x81e   : > { %8164 = vmatpush3.bf16.msra.mxu1 %v8956_v51  ;;  %8186 = vmatpush3.bf16.msra.mxu0 %v8957_v53  ;;  %v8995_v51 = vld [vmem:[%s11493_s4 + $0x148] ss:$16 sps:$4 sm:$0xff]   ;;  %v9000_v53 = vld [vmem:[%s11493_s4 + $0x124] ss:$16 sps:$4 sm:$0xff]  }
 0x81f   : > { %2334 = vmatprep.mubr.bf16.mxu1 %v1486_v0  ;;  %2375 = vmatprep.mubr.bf16.mxu0 %v1488_v3  ;;  %v9007_v0 = vld [vmem:[%s11493_s4 + $0x108] ss:$16 sps:$4 sm:$0xff]   ;;  %v9039_v38 = vld [vmem:[%s11495_s6 + $0x2c0] sm:$0xff]  }
 0x820   : > { %8165 = vmatprep.subr.bf16.mxu1 %v8958_v60  ;;  %8187 = vmatprep.subr.bf16.mxu0 %v8959_v61  ;;  %v9009_v60 = vld [vmem:[%s11493_s4 + $0x10c] ss:$16 sps:$4 sm:$0xff]   ;;  %v9004_v61 = vld [vmem:[%s11493_s4 + $0x100] ss:$16 sps:$4 sm:$0xff]  }
 0x821   : > { %v9010_v3 = vld [vmem:[%s11495_s6 + $0x278] sm:$0xff]   ;;  %v9036_v36 = vld [vmem:[%s11495_s6 + $0x208] sm:$0xff]   ;;  %v9040_v39 = vld [vmem:[%s11495_s6 + $0x200] sm:$0xff]  }
 0x822   : > { %8166 = vmatpush3.bf16.msra.mxu1 %v8960_v4  ;;  %8188 = vmatpush3.bf16.msra.mxu0 %v8961_v9  ;;  %v9011_v4 = vld [vmem:[%s11495_s6 + $0x2f8] sm:$0xff]  }
 0x823   : > { %8167 = vmatprep.subr.bf16.mxu1 %v8962_v13  ;;  %8189 = vmatprep.subr.bf16.mxu0 %v8963_v14  ;;  %v9012_v9 = vld [vmem:[%s11495_s6 + $0x238] sm:$0xff]   ;;  %v9014_v14 = vld [vmem:[%s11495_s6 + $0x270] sm:$0xff]  }
 0x824   : > { %v9013_v13 = vld [vmem:[%s11495_s6 + $0x2b8] sm:$0xff]  }
 0x826   : > { %8168 = vmatpush3.bf16.msra.mxu1 %v8964_v15  ;;  %8190 = vmatpush3.bf16.msra.mxu0 %v8965_v16  ;;  %v9015_v15 = vld [vmem:[%s11495_s6 + $0x2f0] sm:$0xff]  }
 0x827   : > { %8169 = vmatprep.subr.bf16.mxu1 %v8966_v17  ;;  %8191 = vmatprep.subr.bf16.mxu0 %v8967_v52  ;;  %v9016_v16 = vld [vmem:[%s11495_s6 + $0x230] sm:$0xff]   ;;  %v9018_v52 = vld [vmem:[%s11495_s6 + $0x268] sm:$0xff]  }
 0x828   : > { %v9017_v17 = vld [vmem:[%s11495_s6 + $0x2b0] sm:$0xff]  }
 0x82a   : > { %8170 = vmatpush3.bf16.msra.mxu1 %v8968_v18  ;;  %8192 = vmatpush3.bf16.msra.mxu0 %v8969_v19  ;;  %v9019_v18 = vld [vmem:[%s11495_s6 + $0x2e8] sm:$0xff]  }
 0x82b   : > { %8171 = vmatprep.subr.bf16.mxu1 %v8970_v23  ;;  %8193 = vmatprep.subr.bf16.mxu0 %v8971_v24  ;;  %v9020_v19 = vld [vmem:[%s11495_s6 + $0x228] sm:$0xff]   ;;  %v9022_v24 = vld [vmem:[%s11495_s6 + $0x260] sm:$0xff]  }
 0x82c   : > { %v9021_v23 = vld [vmem:[%s11495_s6 + $0x2a8] sm:$0xff]  }
 0x82e   : > { %8172 = vmatpush3.bf16.msra.mxu1 %v8972_v25  ;;  %8194 = vmatpush3.bf16.msra.mxu0 %v8973_v26  ;;  %v9023_v25 = vld [vmem:[%s11495_s6 + $0x2e0] sm:$0xff]  }
 0x82f   : > { %8173 = vmatprep.subr.bf16.mxu1 %v8974_v27  ;;  %8195 = vmatprep.subr.bf16.mxu0 %v8975_v28  ;;  %v9024_v26 = vld [vmem:[%s11495_s6 + $0x220] sm:$0xff]   ;;  %v9026_v28 = vld [vmem:[%s11495_s6 + $0x258] sm:$0xff]  }
 0x830   : > { %v9025_v27 = vld [vmem:[%s11495_s6 + $0x2a0] sm:$0xff]  }
 0x832   : > { %8174 = vmatpush3.bf16.msra.mxu1 %v8976_v29  ;;  %8196 = vmatpush3.bf16.msra.mxu0 %v8977_v30  ;;  %v9027_v29 = vld [vmem:[%s11495_s6 + $0x2d8] sm:$0xff]  }
 0x833   : > { %8175 = vmatprep.subr.bf16.mxu1 %v8978_v31  ;;  %8197 = vmatprep.subr.bf16.mxu0 %v8979_v32  ;;  %v9028_v30 = vld [vmem:[%s11495_s6 + $0x218] sm:$0xff]   ;;  %v9030_v32 = vld [vmem:[%s11495_s6 + $0x250] sm:$0xff]  }
 0x834   : > { %v9029_v31 = vld [vmem:[%s11495_s6 + $0x298] sm:$0xff]  }
 0x836   : > { %8176 = vmatpush3.bf16.msra.mxu1 %v8980_v34  ;;  %8198 = vmatpush3.bf16.msra.mxu0 %v8981_v35  ;;  %v9033_v34 = vld [vmem:[%s11495_s6 + $0x290] sm:$0xff]   ;;  %v9034_v35 = vld [vmem:[%s11495_s6 + $0x248] sm:$0xff]  }
 0x837   : > { %8177 = vmatprep.subr.bf16.mxu1 %v8982_v22  ;;  %8199 = vmatprep.subr.bf16.mxu0 %v8983_v37  ;;  %v9037_v22 = vld [vmem:[%s11495_s6 + $0x288] sm:$0xff]   ;;  %v9038_v37 = vld [vmem:[%s11495_s6 + $0x240] sm:$0xff]  }
 0x83a   : > { %8178 = vmatpush3.bf16.msra.mxu1 %v8984_v62  ;;  %8200 = vmatpush3.bf16.msra.mxu0 %v8985_v63  ;;  %v9041_v62 = vld [vmem:[%s11495_s6 + $0x280] sm:$0xff]  }
 0x83b   : > { %2512 = vmatprep.subr.bf16.mxu1 %v8988_v57  ;;  %2555 = vmatprep.subr.bf16.mxu0 %v8991_v58  ;;  %v9044_v63 = vld [vmem:[%s11493_s4 + $0x1e4] ss:$16 sps:$4 sm:$0xff]  }
 0x83d   : > { %2335 = vmatmul.mubr.bf16.vlgmr.msra.gmra.mxu1 %v1485_v46  ;;  %2376 = vmatmul.mubr.bf16.vlgmr.msra.gmra.mxu0 %v1487_v47 }
 0x83e   : > { %2513 = vmatpush1.bf16.msra.mxu1 %v8986_v44  ;;  %2556 = vmatpush1.bf16.msra.mxu0 %v8989_v45 }
 0x83f   : > { %2514 = vmatprep.subr.bf16.mxu1 %v8994_v48  ;;  %2557 = vmatprep.subr.bf16.mxu0 %v8997_v49 }
 0x840   : > { %2536 = vmatprep.mubr.bf16.mxu1 %v9480_v1  ;;  %2579 = vmatprep.mubr.bf16.mxu0 %v9480_v1 }
 0x842   : > { %2515 = vmatpush1.bf16.msra.mxu1 %v8992_v50  ;;  %2558 = vmatpush1.bf16.msra.mxu0 %v8995_v51 }
 0x843   : > { %2516 = vmatprep.subr.bf16.mxu1 %v9000_v53  ;;  %2559 = vmatprep.subr.bf16.mxu0 %v9003_v54 }
 0x846   : > { %2517 = vmatpush1.bf16.msra.mxu1 %v8998_v55  ;;  %2560 = vmatpush1.bf16.msra.mxu0 %v9001_v56 }
 0x847   : > { %2518 = vmatprep.subr.bf16.mxu1 %v9006_v59  ;;  %2561 = vmatprep.subr.bf16.mxu0 %v9009_v60 }
 0x84a   : > { %2519 = vmatpush1.bf16.msra.mxu1 %v9004_v61  ;;  %2562 = vmatpush1.bf16.msra.mxu0 %v9007_v0 }
 0x84b   : > { %8207 = vmatprep.subr.bf16.mxu1 %v9010_v3  ;;  %8229 = vmatprep.subr.bf16.mxu0 %v9011_v4 }
 0x84d   : > { %7244 = vmatmul.mubr.msk.bf16.vlgmr.msra.gmra.mxu1 %vm427_vm1, %v9858_v10  ;;  %7245 = vmatmul.mubr.msk.bf16.vlgmr.msra.gmra.mxu0 %vm427_vm1, %v9858_v10 }
 0x84e   : > { %8208 = vmatpush3.bf16.msra.mxu1 %v9012_v9  ;;  %8230 = vmatpush3.bf16.msra.mxu0 %v9013_v13 }
 0x84f   : > { %8209 = vmatprep.subr.bf16.mxu1 %v9014_v14  ;;  %8231 = vmatprep.subr.bf16.mxu0 %v9015_v15 }
 0x852   : > { %8210 = vmatpush3.bf16.msra.mxu1 %v9016_v16  ;;  %8232 = vmatpush3.bf16.msra.mxu0 %v9017_v17 }
 0x853   : > { %8211 = vmatprep.subr.bf16.mxu1 %v9018_v52  ;;  %8233 = vmatprep.subr.bf16.mxu0 %v9019_v18  ;;  %v7227_v18 = vld [vmem:[%s11494_s5 + $0x8] sm:$0xf] }
 0x856   : > { %8212 = vmatpush3.bf16.msra.mxu1 %v9020_v19  ;;  %8234 = vmatpush3.bf16.msra.mxu0 %v9021_v23 }
 0x857   : > { %8213 = vmatprep.subr.bf16.mxu1 %v9022_v24  ;;  %8235 = vmatprep.subr.bf16.mxu0 %v9023_v25  ;;  %v2411_v24 = vrot.slane %v7227_v18, %v10016_v5  ;;  %v2419_v25 = vrot.slane %v7227_v18, %v10018_v8 }
 0x85a   : > { %8214 = vmatpush3.bf16.msra.mxu1 %v9024_v26  ;;  %8236 = vmatpush3.bf16.msra.mxu0 %v9025_v27  ;;  %v2407_v26 = vrot.slane %v7227_v18, %v10023_v11  ;;  %v2415_v27 = vrot.slane %v7227_v18, %v10025_v12  ;;  %v9072_v18 = vld [vmem:[%s11495_s6 + $0x330] sm:$0xff]  }
 0x85b   : > { %8215 = vmatprep.subr.bf16.mxu1 %v9026_v28  ;;  %8237 = vmatprep.subr.bf16.mxu0 %v9027_v29 }
 0x85e   : > { %8216 = vmatpush3.bf16.msra.mxu1 %v9028_v30  ;;  %8238 = vmatpush3.bf16.msra.mxu0 %v9029_v31 }
 0x85f   : > { %8217 = vmatprep.subr.bf16.mxu1 %v9030_v32  ;;  %8239 = vmatprep.subr.bf16.mxu0 %v9031_v33 }
 0x862   : > { %8218 = vmatpush3.bf16.msra.mxu1 %v9032_v20  ;;  %8240 = vmatpush3.bf16.msra.mxu0 %v9033_v34 }
 0x863   : > { %8219 = vmatprep.subr.bf16.mxu1 %v9034_v35  ;;  %8241 = vmatprep.subr.bf16.mxu0 %v9035_v21 }
 0x866   : > { %8220 = vmatpush3.bf16.msra.mxu1 %v9036_v36  ;;  %8242 = vmatpush3.bf16.msra.mxu0 %v9037_v22 }
 0x867   : > { %8221 = vmatprep.subr.bf16.mxu1 %v9038_v37  ;;  %8243 = vmatprep.subr.bf16.mxu0 %v9039_v38 }
 0x86a   : > { %8222 = vmatpush3.bf16.msra.mxu1 %v9040_v39  ;;  %8244 = vmatpush3.bf16.msra.mxu0 %v9041_v62 }
 0x86b   : > { %3071 = vmatprep.subr.bf16.mxu1 %v9044_v63  ;;  %3114 = vmatprep.subr.bf16.mxu0 %v9047_v40 }
 0x8dd   : > { %v8135_v41 = vpop.f32.mrf.mxu1  ;;  %v8157_v57 = vpop.f32.mrf.mxu0 }
 0x8df   : > { %v8136_v58 = vpop.f32.mrf.mxu1  ;;  %v8158_v42 = vpop.f32.mrf.mxu0 }
 0x8e0   : > { %v8137_v43 = vadd.f32 %v8136_v58, %v8135_v41  ;;  %v8159_v44 = vadd.f32 %v8158_v42, %v8157_v57 }
 0x8e1   : > { %v8138_v45 = vpop.f32.mrf.mxu1  ;;  %v8160_v46 = vpop.f32.mrf.mxu0 }
 0x8e2   : > { %v2104_v47 = vadd.f32 %v8159_v44, %v8137_v43 }
 0x8e3   : > { %v8139_v48 = vpop.f32.mrf.mxu1  ;;  %v8161_v49 = vpop.f32.mrf.mxu0 }
 0x8e4   : > { %v8140_v50 = vadd.f32 %v8139_v48, %v8138_v45  ;;  %v8162_v51 = vadd.f32 %v8161_v49, %v8160_v46  ;;  %v9042_v45 = vld [vmem:[%s11493_s4 + $0x1e0] ss:$16 sps:$4 sm:$0xff]   ;;  %v9045_v46 = vld [vmem:[%s11493_s4 + $0x1e8] ss:$16 sps:$4 sm:$0xff]   ;;  %v9050_v49 = vld [vmem:[%s11493_s4 + $0x1c4] ss:$16 sps:$4 sm:$0xff]  }
 0x8e6   : > { %v2107_v53 = vadd.f32 %v8162_v51, %v8140_v50  ;;  %v9053_v50 = vld [vmem:[%s11493_s4 + $0x1cc] ss:$16 sps:$4 sm:$0xff]   ;;  %v9048_v51 = vld [vmem:[%s11493_s4 + $0x1c0] ss:$16 sps:$4 sm:$0xff]  }
 0x8fd   : > { %v8179_v54 = vpop.f32.mrf.mxu1  ;;  %v8201_v55 = vpop.f32.mrf.mxu0 }
 0x8ff   : > { %v8180_v56 = vpop.f32.mrf.mxu1  ;;  %v8202_v59 = vpop.f32.mrf.mxu0 }
 0x900   : > { %v8181_v60 = vadd.f32 %v8180_v56, %v8179_v54  ;;  %v8203_v61 = vadd.f32 %v8202_v59, %v8201_v55  ;;  %v9056_v54 = vld [vmem:[%s11493_s4 + $0x1a4] ss:$16 sps:$4 sm:$0xff]   ;;  %v9059_v55 = vld [vmem:[%s11493_s4 + $0x1ac] ss:$16 sps:$4 sm:$0xff]   ;;  %v9054_v56 = vld [vmem:[%s11493_s4 + $0x1a0] ss:$16 sps:$4 sm:$0xff]  }
 0x901   : > { %v8182_v0 = vpop.f32.mrf.mxu1  ;;  %v8204_v3 = vpop.f32.mrf.mxu0  ;;  %v9057_v59 = vld [vmem:[%s11493_s4 + $0x1a8] ss:$16 sps:$4 sm:$0xff]  }
 0x902   : > { %v2337_v4 = vadd.f32 %v8181_v60, %v2104_v47  ;;  %v9062_v60 = vld [vmem:[%s11493_s4 + $0x184] ss:$16 sps:$4 sm:$0xff]  }
 0x903   : > { %v8183_v9 = vpop.f32.mrf.mxu1  ;;  %v8205_v13 = vpop.f32.mrf.mxu0 }
 0x904   : > { %v10294_v14 = vadd.f32 %v8203_v61, %v2337_v4  ;;  %v8184_v15 = vadd.f32 %v8183_v9, %v8182_v0  ;;  %v8206_v16 = vadd.f32 %v8205_v13, %v8204_v3  ;;  %v9065_v61 = vld [vmem:[%s11493_s4 + $0x18c] ss:$16 sps:$4 sm:$0xff]   ;;  %v9060_v0 = vld [vmem:[%s11493_s4 + $0x180] ss:$16 sps:$4 sm:$0xff]   ;;  %v9063_v3 = vld [vmem:[%s11493_s4 + $0x188] ss:$16 sps:$4 sm:$0xff]  }
 0x905   : > { %v9066_v4 = vld [vmem:[%s11495_s6 + $0x378] sm:$0xff]  }
 0x906   : > { %v2340_v17 = vadd.f32 %v8184_v15, %v2107_v53  ;;  %v9051_v53 = vld [vmem:[%s11493_s4 + $0x1c8] ss:$16 sps:$4 sm:$0xff]  }
 0x907   : > { %v9067_v9 = vld [vmem:[%s11495_s6 + $0x3f8] sm:$0xff]  }
 0x908   : > { %v10296_v52 = vadd.f32 %v8206_v16, %v2340_v17  ;;  %v9068_v13 = vld [vmem:[%s11495_s6 + $0x338] sm:$0xff]   ;;  %v9070_v16 = vld [vmem:[%s11495_s6 + $0x370] sm:$0xff]  }
 0x909   : > { %v9069_v15 = vld [vmem:[%s11495_s6 + $0x3b8] sm:$0xff]   ;;  %v9071_v17 = vld [vmem:[%s11495_s6 + $0x3f0] sm:$0xff]  }
 0x90d   : > { %v2538_v19 = vpop.f32.mrf.mxu1  ;;  %v2581_v23 = vpop.f32.mrf.mxu0 }
 0x90e   : > { %v2539_v35 = vadd.f32 %v2538_v19, %v2407_v26  ;;  %v2582_v21 = vadd.f32 %v2581_v23, %v2415_v27  ;;  %v9073_v19 = vld [vmem:[%s11495_s6 + $0x3b0] sm:$0xff]   ;;  %v9075_v23 = vld [vmem:[%s11495_s6 + $0x3e8] sm:$0xff]  }
 0x90f   : > { %v2540_v28 = vpop.f32.mrf.mxu1  ;;  %v2583_v29 = vpop.f32.mrf.mxu0 }
 0x910   : > { %v2541_v32 = vadd.f32 %v2540_v28, %v2411_v24  ;;  %v2584_v33 = vadd.f32 %v2583_v29, %v2419_v25  ;;  %v2590_v58 = vmax.f32 %v2539_v35, 0.0  ;;  %v2592_v42 = vmax.f32 %v2582_v21, 0.0  ;;  %v9080_v28 = vld [vmem:[%s11495_s6 + $0x320] sm:$0xff]   ;;  %v9088_v35 = vld [vmem:[%s11495_s6 + $0x310] sm:$0xff]  }
 0x911   : > { %v2542_v30 = vpop.f32.mrf.mxu1  ;;  %v2585_v31 = vpop.f32.mrf.mxu0  ;;  %v9081_v29 = vld [vmem:[%s11495_s6 + $0x3a0] sm:$0xff]   ;;  %v9089_v21 = vld [vmem:[%s11495_s6 + $0x390] sm:$0xff]  }
 0x912   : > { %v2543_v20 = vadd.f32 %v2542_v30, %v2407_v26  ;;  %v2586_v34 = vadd.f32 %v2585_v31, %v2415_v27  ;;  %v2591_v63 = vmax.f32 %v2541_v32, 0.0  ;;  %v2593_v40 = vmax.f32 %v2584_v33, 0.0  ;;  %v9078_v26 = vld [vmem:[%s11495_s6 + $0x360] sm:$0xff]   ;;  %v9082_v30 = vld [vmem:[%s11495_s6 + $0x358] sm:$0xff]  }
 0x913   : > { %v2544_v36 = vpop.f32.mrf.mxu1  ;;  %v2587_v22 = vpop.f32.mrf.mxu0  ;;  %v9079_v27 = vld [vmem:[%s11495_s6 + $0x3e0] sm:$0xff]   ;;  %v9083_v31 = vld [vmem:[%s11495_s6 + $0x3d8] sm:$0xff]  }
 0x914   : > { %v2545_v37 = vadd.f32 %v2544_v36, %v2411_v24  ;;  %v2588_v38 = vadd.f32 %v2587_v22, %v2419_v25  ;;  %v2594_v39 = vmax.f32 %v2543_v20, 0.0  ;;  %v2596_v62 = vmax.f32 %v2586_v34, 0.0  ;;  %v9076_v24 = vld [vmem:[%s11495_s6 + $0x328] sm:$0xff]   ;;  %v9084_v32 = vld [vmem:[%s11495_s6 + $0x318] sm:$0xff]   ;;  %v9086_v20 = vld [vmem:[%s11495_s6 + $0x350] sm:$0xff]  }
 0x915   : > { %v9077_v25 = vld [vmem:[%s11495_s6 + $0x3a8] sm:$0xff]   ;;  %v9085_v33 = vld [vmem:[%s11495_s6 + $0x398] sm:$0xff]   ;;  %v9087_v34 = vld [vmem:[%s11495_s6 + $0x3d0] sm:$0xff]  }
 0x916   : > { %v2595_v41 = vmax.f32 %v2545_v37, 0.0  ;;  %v2597_v57 = vmax.f32 %v2588_v38, 0.0  ;;  %v2598_v47 = vpack.c.bf16 %v2594_v39, %v2590_v58  ;;  %v2600_v48 = vpack.c.bf16 %v2596_v62, %v2592_v42  ;;  %v9090_v36 = vld [vmem:[%s11495_s6 + $0x348] sm:$0xff]   ;;  %v9094_v39 = vld [vmem:[%s11495_s6 + $0x340] sm:$0xff]  }
 0x917   : > { %v9091_v22 = vld [vmem:[%s11495_s6 + $0x3c8] sm:$0xff]   ;;  %v9095_v62 = vld [vmem:[%s11495_s6 + $0x3c0] sm:$0xff]  }
 0x918   : > { %v2599_v43 = vpack.c.bf16 %v2595_v41, %v2591_v63  ;;  %v2601_v44 = vpack.c.bf16 %v2597_v57, %v2593_v40  ;;  %v9092_v37 = vld [vmem:[%s11495_s6 + $0x308] sm:$0xff]   ;;  %v9096_v63 = vld [vmem:[%s11495_s6 + $0x300] sm:$0xff]  }
 0x919   : > { %v9093_v38 = vld [vmem:[%s11495_s6 + $0x388] sm:$0xff]   ;;  %v9097_v40 = vld [vmem:[%s11495_s6 + $0x380] sm:$0xff]  }
 0x91a   : > { %2891 = vmatprep.mubr.bf16.mxu1 %v2599_v43  ;;  %2932 = vmatprep.mubr.bf16.mxu0 %v2601_v44 }
 0x91b   : > { %2892 = vmatmul.mubr.bf16.vlgmr.msra.gmra.mxu1 %v2598_v47  ;;  %2933 = vmatmul.mubr.bf16.vlgmr.msra.gmra.mxu0 %v2600_v48 }
 0x91c   : > { %3072 = vmatpush1.bf16.msra.mxu1 %v9042_v45  ;;  %3115 = vmatpush1.bf16.msra.mxu0 %v9045_v46 }
 0x91d   : > { %3073 = vmatprep.subr.bf16.mxu1 %v9050_v49  ;;  %3116 = vmatprep.subr.bf16.mxu0 %v9053_v50 }
 0x91e   : > { %3095 = vmatprep.mubr.bf16.mxu1 %v9480_v1  ;;  %3138 = vmatprep.mubr.bf16.mxu0 %v9480_v1 }
 0x920   : > { %3074 = vmatpush1.bf16.msra.mxu1 %v9048_v51  ;;  %3117 = vmatpush1.bf16.msra.mxu0 %v9051_v53 }
 0x921   : > { %3075 = vmatprep.subr.bf16.mxu1 %v9056_v54  ;;  %3118 = vmatprep.subr.bf16.mxu0 %v9059_v55 }
 0x924   : > { %3076 = vmatpush1.bf16.msra.mxu1 %v9054_v56  ;;  %3119 = vmatpush1.bf16.msra.mxu0 %v9057_v59  ;;  %v7358_v56 = vld [vmem:[%s11494_s5 + $0xc] sm:$0xf] }
 0x925   : > { %3077 = vmatprep.subr.bf16.mxu1 %v9062_v60  ;;  %3120 = vmatprep.subr.bf16.mxu0 %v9065_v61  ;;  %v2970_v61 = vrot.slane %v7358_v56, %v10016_v5 }
 0x928   : > { %3078 = vmatpush1.bf16.msra.mxu1 %v9060_v0  ;;  %3121 = vmatpush1.bf16.msra.mxu0 %v9063_v3  ;;  %v2978_v0 = vrot.slane %v7358_v56, %v10018_v8  ;;  %v2966_v3 = vrot.slane %v7358_v56, %v10023_v11 }
 0x929   : > { %8251 = vmatprep.subr.bf16.mxu1 %v9066_v4  ;;  %8273 = vmatprep.subr.bf16.mxu0 %v9067_v9  ;;  %v2974_v4 = vrot.slane %v7358_v56, %v10025_v12 }
 0x92b   : > { %7375 = vmatmul.mubr.msk.bf16.vlgmr.msra.gmra.mxu1 %vm427_vm1, %v9858_v10  ;;  %7376 = vmatmul.mubr.msk.bf16.vlgmr.msra.gmra.mxu0 %vm427_vm1, %v9858_v10  ;;  %v9074_v10 = vld [vmem:[%s11495_s6 + $0x368] sm:$0xff]  }
 0x92c   : > { %8252 = vmatpush3.bf16.msra.mxu1 %v9068_v13  ;;  %8274 = vmatpush3.bf16.msra.mxu0 %v9069_v15 }
 0x92d   : > { %8253 = vmatprep.subr.bf16.mxu1 %v9070_v16  ;;  %8275 = vmatprep.subr.bf16.mxu0 %v9071_v17 }
 0x930   : > { %8254 = vmatpush3.bf16.msra.mxu1 %v9072_v18  ;;  %8276 = vmatpush3.bf16.msra.mxu0 %v9073_v19 }
 0x931   : > { %8255 = vmatprep.subr.bf16.mxu1 %v9074_v10  ;;  %8277 = vmatprep.subr.bf16.mxu0 %v9075_v23 }
 0x934   : > { %8256 = vmatpush3.bf16.msra.mxu1 %v9076_v24  ;;  %8278 = vmatpush3.bf16.msra.mxu0 %v9077_v25 }
 0x935   : > { %8257 = vmatprep.subr.bf16.mxu1 %v9078_v26  ;;  %8279 = vmatprep.subr.bf16.mxu0 %v9079_v27 }
 0x938   : > { %8258 = vmatpush3.bf16.msra.mxu1 %v9080_v28  ;;  %8280 = vmatpush3.bf16.msra.mxu0 %v9081_v29 }
 0x939   : > { %8259 = vmatprep.subr.bf16.mxu1 %v9082_v30  ;;  %8281 = vmatprep.subr.bf16.mxu0 %v9083_v31 }
 0x93c   : > { %8260 = vmatpush3.bf16.msra.mxu1 %v9084_v32  ;;  %8282 = vmatpush3.bf16.msra.mxu0 %v9085_v33 }
 0x93d   : > { %8261 = vmatprep.subr.bf16.mxu1 %v9086_v20  ;;  %8283 = vmatprep.subr.bf16.mxu0 %v9087_v34 }
 0x940   : > { %8262 = vmatpush3.bf16.msra.mxu1 %v9088_v35  ;;  %8284 = vmatpush3.bf16.msra.mxu0 %v9089_v21 }
 0x941   : > { %8263 = vmatprep.subr.bf16.mxu1 %v9090_v36  ;;  %8285 = vmatprep.subr.bf16.mxu0 %v9091_v22 }
 0x944   : > { %8264 = vmatpush3.bf16.msra.mxu1 %v9092_v37  ;;  %8286 = vmatpush3.bf16.msra.mxu0 %v9093_v38 }
 0x945   : > { %8265 = vmatprep.subr.bf16.mxu1 %v9094_v39  ;;  %8287 = vmatprep.subr.bf16.mxu0 %v9095_v62 }
 0x948   : > { %8266 = vmatpush3.bf16.msra.mxu1 %v9096_v63  ;;  %8288 = vmatpush3.bf16.msra.mxu0 %v9097_v40 }
 0x949   : > { %8629 = vmatprep.subr.bf16.mxu1 %v9481_v2  ;;  %8641 = vmatprep.subr.bf16.mxu0 %v9481_v2 }
 0x9db   : > { %v8223_v41 = vpop.f32.mrf.mxu1  ;;  %v8245_v57 = vpop.f32.mrf.mxu0 }
 0x9dd   : > { %v8224_v58 = vpop.f32.mrf.mxu1  ;;  %v8246_v42 = vpop.f32.mrf.mxu0 }
 0x9de   : > { %v8225_v43 = vadd.f32 %v8224_v58, %v8223_v41  ;;  %v8247_v44 = vadd.f32 %v8246_v42, %v8245_v57 }
 0x9df   : > { %v8226_v45 = vpop.f32.mrf.mxu1  ;;  %v8248_v46 = vpop.f32.mrf.mxu0 }
 0x9e0   : > { %v2935_v47 = vadd.f32 %v8247_v44, %v8225_v43  ;;  %v7473_v43 = vld [vmem:[%s11492_s3 + $0x6] ss:$0 sm:$0xff] }
 0x9e1   : > { %v8227_v48 = vpop.f32.mrf.mxu1  ;;  %v8249_v49 = vpop.f32.mrf.mxu0 }
 0x9e2   : > { %v2941_v50 = vadd.f32 %v2935_v47, %v10294_v14  ;;  %v8228_v51 = vadd.f32 %v8227_v48, %v8226_v45  ;;  %v8250_v53 = vadd.f32 %v8249_v49, %v8248_v46 }
 0x9e4   : > { %v2938_v54 = vadd.f32 %v8250_v53, %v8228_v51 }
 0x9e6   : > { %v2942_v55 = vadd.f32 %v2938_v54, %v10296_v52 }
 0x9eb   : > { %v3097_v59 = vpop.f32.mrf.mxu1  ;;  %v3140_v60 = vpop.f32.mrf.mxu0 }
 0x9ec   : > { %v3098_v19 = vadd.f32 %v3097_v59, %v2966_v3  ;;  %v3141_v10 = vadd.f32 %v3140_v60, %v2974_v4 }
 0x9ed   : > { %v3099_v14 = vpop.f32.mrf.mxu1  ;;  %v3142_v9 = vpop.f32.mrf.mxu0 }
 0x9ee   : > { %v3100_v16 = vadd.f32 %v3099_v14, %v2970_v61  ;;  %v3143_v52 = vadd.f32 %v3142_v9, %v2978_v0  ;;  %v3149_v33 = vmax.f32 %v3098_v19, 0.0  ;;  %v3151_v20 = vmax.f32 %v3141_v10, 0.0  ;;  %v9105_v19 = vld [vmem:[%s11491_s2 + $0xa0] sm:$0xff]  }
 0x9ef   : > { %v3101_v13 = vpop.f32.mrf.mxu1  ;;  %v3144_v15 = vpop.f32.mrf.mxu0 }
 0x9f0   : > { %v3102_v17 = vadd.f32 %v3101_v13, %v2966_v3  ;;  %v3145_v18 = vadd.f32 %v3144_v15, %v2974_v4  ;;  %v3150_v29 = vmax.f32 %v3100_v16, 0.0  ;;  %v3152_v30 = vmax.f32 %v3143_v52, 0.0  ;;  %v9099_v13 = vld [vmem:[%s11491_s2 + $0xb8] sm:$0xff]   ;;  %v9100_v15 = vld [vmem:[%s11491_s2 + $0x90] sm:$0xff]   ;;  %v9102_v52 = vld [vmem:[%s11491_s2 + $0x88] sm:$0xff]  }
 0x9f1   : > { %v3103_v23 = vpop.f32.mrf.mxu1  ;;  %v3146_v24 = vpop.f32.mrf.mxu0  ;;  %v9101_v16 = vld [vmem:[%s11491_s2 + $0xb0] sm:$0xff]  }
 0x9f2   : > { %v3104_v25 = vadd.f32 %v3103_v23, %v2970_v61  ;;  %v3147_v26 = vadd.f32 %v3146_v24, %v2978_v0  ;;  %v3153_v27 = vmax.f32 %v3102_v17, 0.0  ;;  %v3155_v28 = vmax.f32 %v3145_v18, 0.0  ;;  %v9103_v17 = vld [vmem:[%s11491_s2 + $0xa8] sm:$0xff]   ;;  %v9104_v18 = vld [vmem:[%s11491_s2 + $0x80] sm:$0xff]  }
 0x9f4   : > { %v3154_v31 = vmax.f32 %v3104_v25, 0.0  ;;  %v3156_v32 = vmax.f32 %v3147_v26, 0.0  ;;  %v3157_v21 = vpack.c.bf16 %v3153_v27, %v3149_v33  ;;  %v3159_v36 = vpack.c.bf16 %v3155_v28, %v3151_v20  ;;  %v7475_v20 = vld [vmem:[%s11492_s3 + $0x8] ss:$0 sm:$0xff] }
 0x9f6   : > { %v3158_v34 = vpack.c.bf16 %v3154_v31, %v3150_v29  ;;  %v3160_v35 = vpack.c.bf16 %v3156_v32, %v3152_v30  ;;  %v7474_v30 = vld [vmem:[%s11492_s3 + $0x7] ss:$0 sm:$0xff] }
 0x9f8   : > { %3450 = vmatprep.mubr.bf16.mxu1 %v3158_v34  ;;  %3491 = vmatprep.mubr.bf16.mxu0 %v3160_v35 }
 0x9f9   : > { %3451 = vmatmul.mubr.bf16.vlgmr.msra.gmra.mxu1 %v3157_v21  ;;  %3492 = vmatmul.mubr.bf16.vlgmr.msra.gmra.mxu0 %v3159_v36  ;;  %v9106_v36 = vld [vmem:[%s11491_s2 + $0xd8] sm:$0xff]  }
 0x9fa   : > { %8637 = vmatprep.mubr.msk.bf16.mxu1 %vm9482_vm0, %v9481_v2  ;;  %8649 = vmatprep.mubr.msk.bf16.mxu0 %vm9482_vm0, %v9481_v2 }
 0x9fb   : > { %8642 = vmatpush3.bf16.msra.mxu0 %v9099_v13 }
 0x9fc   : > { %8643 = vmatprep.subr.bf16.mxu0 %v9481_v2 }
 0x9ff   : > { %8644 = vmatpush3.bf16.msra.mxu0 %v9101_v16 }
 0xa00   : > { %8645 = vmatprep.subr.bf16.mxu0 %v9481_v2 }
 0xa03   : > { %8646 = vmatpush3.bf16.msra.mxu0 %v9103_v17 }
 0xa04   : > { %8647 = vmatprep.subr.bf16.mxu0 %v9481_v2 }
 0xa07   : > { %8648 = vmatpush3.bf16.msra.mxu0 %v9105_v19 }
 0xa08   : > { %8665 = vmatprep.subr.bf16.mxu0 %v9481_v2 }
 0xab9   : > { %v8267_v22 = vpop.f32.mrf.mxu1  ;;  %v8289_v37 = vpop.f32.mrf.mxu0 }
 0xabb   : > { %v8268_v38 = vpop.f32.mrf.mxu1  ;;  %v8290_v39 = vpop.f32.mrf.mxu0 }
 0xabc   : > { %v8269_v62 = vadd.f32 %v8268_v38, %v8267_v22  ;;  %v8291_v63 = vadd.f32 %v8290_v39, %v8289_v37  ;;  %v9107_v37 = vld [vmem:[%s11491_s2 + $0xd0] sm:$0xff]   ;;  %v9108_v38 = vld [vmem:[%s11491_s2 + $0xc8] sm:$0xff]   ;;  %v9109_v39 = vld [vmem:[%s11491_s2 + $0xc0] sm:$0xff]  }
 0xabd   : > { %v8270_v40 = vpop.f32.mrf.mxu1  ;;  %v8292_v41 = vpop.f32.mrf.mxu0 }
 0xabe   : > { %v3494_v57 = vadd.f32 %v8291_v63, %v8269_v62  ;;  %v7493_v62 = vld [vmem:[%s11492_s3 + $0x10] ss:$0 sm:$0xff] }
 0xabf   : > { %v8271_v58 = vpop.f32.mrf.mxu1  ;;  %v8293_v42 = vpop.f32.mrf.mxu0 }
 0xac0   : > { %v3500_v44 = vadd.f32 %v3494_v57, %v2941_v50  ;;  %v8272_v45 = vadd.f32 %v8271_v58, %v8270_v40  ;;  %v8294_v46 = vadd.f32 %v8293_v42, %v8292_v41  ;;  %v7507_v41 = vld [vmem:[%s11492_s3 + $0x11] ss:$0 sm:$0xff] }
 0xac2   : > { %v3497_v47 = vadd.f32 %v8294_v46, %v8272_v45  ;;  %v3506_v48 = vadd.f32 %v7473_v43, %v3500_v44 }
 0xac4   : > { %v3501_v49 = vadd.f32 %v3497_v47, %v2942_v55  ;;  %v3508_v51 = vadd.f32 %v3506_v48, %v9846_v6 }
 0xac6   : > { %v3510_v53 = vsel %vm427_vm1, %v3508_v51, 0.0  ;;  %v3507_v54 = vadd.f32 %v7473_v43, %v3501_v49 }
 0xac7   : > { %3511 = vadd.xlane.f32.xlu1 %v3510_v53 }
 0xac8   : > { %v3509_v56 = vadd.f32 %v3507_v54, %v9848_v7  ;;  %v9098_v7 = vld [vmem:[%s11491_s2 + $0x98] sm:$0xff]  }
 0xac9   : > { %8630 = vmatpush3.bf16.msra.mxu1 %v9098_v7 }
 0xaca   : > { %v3513_v59 = vsel %vm427_vm1, %v3509_v56, 0.0  ;;  %8631 = vmatprep.subr.bf16.mxu1 %v9481_v2 }
 0xacb   : > { %3514 = vadd.xlane.f32.xlu0 %v3513_v59 }
 0xacd   : > { %8632 = vmatpush3.bf16.msra.mxu1 %v9100_v15 }
 0xace   : > { %8633 = vmatprep.subr.bf16.mxu1 %v9481_v2 }
 0xad1   : > { %8634 = vmatpush3.bf16.msra.mxu1 %v9102_v52 }
 0xad2   : > { %8635 = vmatprep.subr.bf16.mxu1 %v9481_v2 }
 0xad5   : > { %8636 = vmatpush3.bf16.msra.mxu1 %v9104_v18 }
 0xad6   : > { %8653 = vmatprep.subr.bf16.mxu1 %v9481_v2 }
 0xb50   : > { %v3512_v60 = vpop.xlane.xlu1 %3511 }
 0xb51   : > { %v3516_v61 = vmul.f32 0.015625, %v3512_v60 }
 0xb53   : > { %v3518_v0 = vsub.f32 %v3508_v51, %v3516_v61  ;;  %v7521_v61 = vld [vmem:[%s11492_s3 + $0x12] ss:$0 sm:$0xff] }
 0xb54   : > { %v3515_v50 = vpop.xlane.xlu0 %3514 }
 0xb55   : > { %v3517_v3 = vmul.f32 0.015625, %v3515_v50  ;;  %v3520_v4 = vmul.f32 %v3518_v0, %v3518_v0 }
 0xb57   : > { %v3519_v14 = vsub.f32 %v3509_v56, %v3517_v3  ;;  %v3522_v55 = vsel %vm427_vm1, %v3520_v4, 0.0 }
 0xb58   : > { %3523 = vadd.xlane.f32.xlu1 %v3522_v55 }
 0xb59   : > { %v3521_v6 = vmul.f32 %v3519_v14, %v3519_v14 }
 0xb5b   : > { %v3525_v9 = vsel %vm427_vm1, %v3521_v6, 0.0 }
 0xb5c   : > { %3526 = vadd.xlane.f32.xlu0 %v3525_v9 }
 0xbe1   : > { %v3524_v10 = vpop.xlane.xlu1 %3523 }
 0xbe2   : > { %v3528_v23 = vmul.f32 0.015625, %v3524_v10 }
 0xbe4   : > { %v3530_v24 = vadd.f32 1e-05, %v3528_v23 }
 0xbe5   : > { %v3527_v25 = vpop.xlane.xlu0 %3526 }
 0xbe6   : > { %9374 = vrsqrt.f32 %v3530_v24  ;;  %v3529_v26 = vmul.f32 0.015625, %v3527_v25 }
 0xbe8   : > { %v3531_v27 = vadd.f32 1e-05, %v3529_v26 }
 0xbea   : > { %9376 = vrsqrt.f32 %v3531_v27 }
 0xbf3   : > { %v9375_v28 = vpop.eup %9374 }
 0xbf4   : > { %v3534_v29 = vmul.f32 %v9375_v28, %v3518_v0 }
 0xbf6   : > { %v3540_v33 = vmul.f32 %v7474_v30, %v3534_v29 }
 0xbf7   : > { %v9377_v31 = vpop.eup %9376 }
 0xbf8   : > { %v3535_v32 = vmul.f32 %v9377_v31, %v3519_v14  ;;  %v10511_v35 = vadd.f32 %v7475_v20, %v3540_v33 }
 0xbfa   : > { %v3541_v34 = vmul.f32 %v7474_v30, %v3535_v32 }
 0xbfc   : > { %v10513_v21 = vadd.f32 %v7475_v20, %v3541_v34 }
 0xbfe   : > { %v3558_v22 = vpack.c.bf16 %v10513_v21, %v10511_v35 }
 0xc00   : > { %8638 = vmatmul.mubr.msk.bf16.vlgmr.msra.gmra.mxu1 %vm427_vm1, %v3558_v22  ;;  %8650 = vmatmul.mubr.msk.bf16.vlgmr.msra.gmra.mxu0 %vm427_vm1, %v3558_v22 }
 0xc01   : > { %8654 = vmatpush3.bf16.msra.mxu1 %v9106_v36  ;;  %8661 = vmatprep.mubr.msk.bf16.mxu1 %vm9482_vm0, %v9481_v2 }
 0xc02   : > { %8655 = vmatprep.subr.bf16.mxu1 %v9481_v2  ;;  %8667 = vmatprep.mubr.msk.bf16.mxu0 %vm9482_vm0, %v9481_v2 }
 0xc05   : > { %8656 = vmatpush3.bf16.msra.mxu1 %v9107_v37 }
 0xc06   : > { %8657 = vmatprep.subr.bf16.mxu1 %v9481_v2 }
 0xc09   : > { %8658 = vmatpush3.bf16.msra.mxu1 %v9108_v38 }
 0xc0a   : > { %8659 = vmatprep.subr.bf16.mxu1 %v9481_v2 }
 0xc0d   : > { %8660 = vmatpush3.bf16.msra.mxu1 %v9109_v39 }
 0xc0e   : > { %8671 = vmatprep.subr.bf16.mxu1 %v9481_v2 }
 0xc10   : > { %8662 = vmatmul.mubr.msk.bf16.vlgmr.msra.gmra.mxu1 %vm427_vm1, %v3558_v22 }
 0xc11   : > { %8673 = vmatprep.mubr.msk.bf16.mxu1 %vm9482_vm0, %v9481_v2 }
 0xcc0   : > { %v3633_v63 = vpop.f32.mrf.mxu1  ;;  %v3713_v40 = vpop.f32.mrf.mxu0 }
 0xcc1   : > { %v3634_v42 = vadd.f32 %v7493_v62, %v3633_v63  ;;  %v3714_v45 = vadd.f32 %v7507_v41, %v3713_v40 }
 0xcc2   : > { %v8639_v57 = vpop.f32.mrf.mxu1  ;;  %v8651_v58 = vpop.f32.mrf.mxu0 }
 0xcc3   : > { %v3640_v51 = vmul.f32 0.25, %v3634_v42 }
 0xcc4   : > { %v3636_v43 = vpop.f32.mrf.mxu1  ;;  %v3716_v44 = vpop.f32.mrf.mxu0 }
 0xcc5   : > { %v3637_v46 = vadd.f32 %v7493_v62, %v3636_v43  ;;  %v3717_v47 = vadd.f32 %v7507_v41, %v3716_v44 }
 0xcc6   : > { %v8640_v48 = vpop.f32.mrf.mxu1  ;;  %v8652_v49 = vpop.f32.mrf.mxu0 }
 0xcc7   : > { %v3641_v53 = vmul.f32 0.25, %v3637_v46  ;;  %v3799_v54 = vpack.c.bf16 %v3717_v47, %v3714_v45 }
 0xcc9   : > { %v3798_v56 = vpack.c.bf16 %v3641_v53, %v3640_v51  ;;  %3919 = vrot.lane.b32.xlu1 %v3799_v54, %s9484_s12  ;;  %v3805_v59 = vsel %vm633_vm2, %v3799_v54, 0 }
 0xcca   : > { %8666 = vmatpush3.bf16.xpose.msra.mxu0 %v3805_v59 }
 0xccb   : > { %3916 = vrot.lane.b32.xlu0 %v3798_v56, %s9484_s12  ;;  %8677 = vmatprep.subr.bf16.mxu0 %v9481_v2 }
 0xccd   : > { %4041 = vrot.lane.b32.xlu1 %v3799_v54, %s11509_s30 }
 0xccf   : > { %4162 = vrot.lane.b32.xlu0 %v3799_v54, %s11510_s20 }
 0xcd0   : > { %v3791_v60 = vpop.f32.mrf.mxu1 }
 0xcd1   : > { %4039 = vrot.lane.b32.xlu1 %v3798_v56, %s11509_s30  ;;  %8668 = vmatmul.mubr.msk.bf16.vlgmr.msra.gmra.mxu0 %vm633_vm2, %v3798_v56  ;;  %v3792_v3 = vadd.f32 %v7521_v61, %v3791_v60 }
 0xcd2   : > { %v8663_v0 = vpop.f32.mrf.mxu1  ;;  %8679 = vmatprep.mubr.msk.bf16.mxu0 %vm9482_vm0, %v9481_v2 }
 0xcd4   : > { %v3794_v50 = vpop.f32.mrf.mxu1 }
 0xcd5   : > { %v3795_v4 = vadd.f32 %v7521_v61, %v3794_v50  ;;  %4160 = vrot.lane.b32.xlu1 %v3798_v56, %s11510_s20 }
 0xcd6   : > { %v8664_v14 = vpop.f32.mrf.mxu1 }
 0xcd7   : > { %v10562_v55 = vpack.c.bf16 %v3795_v4, %v3792_v3 }
 0xcd9   : > { %8672 = vmatpush3.bf16.msra.mxu1 %v10562_v55 }
 0xcda   : > { %8683 = vmatprep.subr.bf16.mxu1 %v9481_v2 }
 0xd3b   : > { %v3920_v6 = vpop.permute.xlu1 %3919 }
 0xd3c   : > { %v3925_v9 = vsel %vm633_vm2, %v3920_v6, 0 }
 0xd3d   : > { %8678 = vmatpush3.bf16.xpose.msra.mxu0 %v3925_v9  ;;  %v3917_v13 = vpop.permute.xlu0 %3916 }
 0xd3e   : > { %8689 = vmatprep.subr.bf16.mxu0 %v9481_v2 }
 0xd3f   : > { %v4042_v7 = vpop.permute.xlu1 %4041 }
 0xd40   : > { %v4047_v15 = vsel %vm633_vm2, %v4042_v7, 0 }
 0xd41   : > { %v4163_v16 = vpop.permute.xlu0 %4162 }
 0xd42   : > { %v4168_v17 = vsel %vm633_vm2, %v4163_v16, 0 }
 0xd43   : > { %v4040_v52 = vpop.permute.xlu1 %4039 }
 0xd44   : > { %8680 = vmatmul.mubr.msk.bf16.vlgmr.msra.gmra.mxu0 %vm633_vm2, %v3917_v13 }
 0xd45   : > { %8690 = vmatpush3.bf16.xpose.msra.mxu0 %v4047_v15  ;;  %8691 = vmatprep.mubr.msk.bf16.mxu0 %vm9482_vm0, %v9481_v2 }
 0xd46   : > { %8701 = vmatprep.subr.bf16.mxu0 %v9481_v2 }
 0xd47   : > { %v4161_v18 = vpop.permute.xlu1 %4160 }
 0xd4c   : > { %8692 = vmatmul.mubr.msk.bf16.vlgmr.msra.gmra.mxu0 %vm633_vm2, %v4040_v52 }
 0xd4d   : > { %8702 = vmatpush3.bf16.xpose.msra.mxu0 %v4168_v17  ;;  %8703 = vmatprep.mubr.msk.bf16.mxu0 %vm9482_vm0, %v9481_v2 }
 0xd4e   : > { %8713 = vmatprep.subr.bf16.mxu0 %v9481_v2 }
 0xd54   : > { %8704 = vmatmul.mubr.msk.bf16.vlgmr.msra.gmra.mxu0 %vm633_vm2, %v4161_v18 }
 0xd55   : > { %8721 = vmatprep.mubr.msk.bf16.mxu0 %vm9482_vm0, %v9481_v2 }
 0xd91   : > { %v3841_v19 = vpop.f32.mrf.mxu0 }
 0xd92   : > { %v3848_v10 = vsel %vm633_vm2, %v3841_v19, -inf }
 0xd93   : > { %3849 = vmax.xlane.f32.xlu0 %v3848_v10  ;;  %v8669_v23 = vpop.f32.mrf.mxu0 }
 0xd95   : > { %v3844_v24 = vpop.f32.mrf.mxu0 }
 0xd96   : > { %v3851_v25 = vsel %vm633_vm2, %v3844_v24, -inf }
 0xd97   : > { %3852 = vmax.xlane.f32.xlu1 %v3851_v25  ;;  %v8670_v26 = vpop.f32.mrf.mxu0 }
 0xe04   : > { %v3961_v27 = vpop.f32.mrf.mxu0 }
 0xe05   : > { %v3968_v28 = vsel %vm633_vm2, %v3961_v27, -inf }
 0xe06   : > { %3969 = vmax.xlane.f32.xlu0 %v3968_v28  ;;  %v8681_v29 = vpop.f32.mrf.mxu0 }
 0xe08   : > { %v3964_v30 = vpop.f32.mrf.mxu0 }
 0xe09   : > { %v3971_v31 = vsel %vm633_vm2, %v3964_v30, -inf }
 0xe0a   : > { %3972 = vmax.xlane.f32.xlu0 %v3971_v31  ;;  %v8682_v32 = vpop.f32.mrf.mxu0 }
 0xe0c   : > { %v4083_v33 = vpop.f32.mrf.mxu0 }
 0xe0d   : > { %v4090_v20 = vsel %vm633_vm2, %v4083_v33, -inf }
 0xe0e   : > { %4091 = vmax.xlane.f32.xlu1 %v4090_v20  ;;  %v8693_v34 = vpop.f32.mrf.mxu0 }
 0xe10   : > { %v4086_v36 = vpop.f32.mrf.mxu0 }
 0xe11   : > { %v4093_v22 = vsel %vm633_vm2, %v4086_v36, -inf }
 0xe12   : > { %4094 = vmax.xlane.f32.xlu0 %v4093_v22  ;;  %v8694_v37 = vpop.f32.mrf.mxu0 }
 0xe14   : > { %v4204_v38 = vpop.f32.mrf.mxu0 }
 0xe15   : > { %v4211_v39 = vsel %vm633_vm2, %v4204_v38, -inf }
 0xe16   : > { %4212 = vmax.xlane.f32.xlu1 %v4211_v39  ;;  %v8705_v62 = vpop.f32.mrf.mxu0 }
 0xe18   : > { %v4207_v63 = vpop.f32.mrf.mxu0 }
 0xe19   : > { %v4214_v40 = vsel %vm633_vm2, %v4207_v63, -inf }
 0xe1a   : > { %4215 = vmax.xlane.f32.xlu0 %v4214_v40  ;;  %v8706_v41 = vpop.f32.mrf.mxu0 }
 0xe1c   : > { %v3850_v57 = vpop.xlane.xlu0 %3849 }
 0xe1d   : > { %v3854_v58 = vsub.f32 %v3841_v19, %v3850_v57 }
 0xe1f   : > { %v3856_v42 = vmul.f32 1.442695, %v3854_v58 }
 0xe20   : > { %v3853_v43 = vpop.xlane.xlu1 %3852 }
 0xe21   : > { %9378 = vpow2.f32 %v3856_v42  ;;  %v3855_v44 = vsub.f32 %v3844_v24, %v3853_v43 }
 0xe23   : > { %v3858_v45 = vmul.f32 1.442695, %v3855_v44 }
 0xe25   : > { %9380 = vpow2.f32 %v3858_v45 }
 0xe2e   : > { %v9379_v46 = vpop.eup %9378 }
 0xe2f   : > { %v3860_v47 = vsel %vm633_vm2, %v9379_v46, 0.0 }
 0xe30   : > { %3861 = vadd.xlane.f32.xlu1 %v3860_v47 }
 0xe32   : > { %v9381_v48 = vpop.eup %9380 }
 0xe33   : > { %v3863_v49 = vsel %vm633_vm2, %v9381_v48, 0.0 }
 0xe34   : > { %3864 = vadd.xlane.f32.xlu0 %v3863_v49 }
 0xe41   : > { %3992 = vrot.lane.b32.xlu1 %v10562_v55, %s9484_s12 }
 0xe8f   : > { %v3970_v51 = vpop.xlane.xlu0 %3969 }
 0xe90   : > { %v3974_v53 = vsub.f32 %v3961_v27, %v3970_v51 }
 0xe92   : > { %v3976_v54 = vmul.f32 1.442695, %v3974_v53 }
 0xe93   : > { %v3973_v56 = vpop.xlane.xlu0 %3972 }
 0xe94   : > { %9382 = vpow2.f32 %v3976_v54  ;;  %v3975_v59 = vsub.f32 %v3964_v30, %v3973_v56 }
 0xe96   : > { %v3978_v60 = vmul.f32 1.442695, %v3975_v59 }
 0xe97   : > { %v4092_v61 = vpop.xlane.xlu1 %4091 }
 0xe98   : > { %9384 = vpow2.f32 %v3978_v60  ;;  %v4096_v0 = vsub.f32 %v4083_v33, %v4092_v61 }
 0xe9a   : > { %v4098_v50 = vmul.f32 1.442695, %v4096_v0 }
 0xe9b   : > { %v4095_v3 = vpop.xlane.xlu0 %4094 }
 0xe9c   : > { %9386 = vpow2.f32 %v4098_v50  ;;  %v4097_v4 = vsub.f32 %v4086_v36, %v4095_v3  ;;  %v9110_v3 = vld [vmem:[%s11491_s2 + $0xf8] sm:$0xff]  }
 0xe9d   : > { %8714 = vmatpush3.bf16.msra.mxu0 %v9110_v3  ;;  %v9114_v3 = vld [vmem:[%s11493_s4 + $0x260] ss:$16 sps:$4 sm:$0xff]  }
 0xe9e   : > { %v4100_v14 = vmul.f32 1.442695, %v4097_v4  ;;  %8715 = vmatprep.subr.bf16.mxu0 %v9481_v2 }
 0xe9f   : > { %v4213_v6 = vpop.xlane.xlu1 %4212 }
 0xea0   : > { %9388 = vpow2.f32 %v4100_v14  ;;  %v4217_v9 = vsub.f32 %v4204_v38, %v4213_v6  ;;  %v9111_v6 = vld [vmem:[%s11491_s2 + $0xf0] sm:$0xff]  }
 0xea1   : > { %v9383_v7 = vpop.eup %9382  ;;  %8716 = vmatpush3.bf16.msra.mxu0 %v9111_v6  ;;  %v9125_v6 = vld [vmem:[%s11493_s4 + $0x24c] ss:$16 sps:$4 sm:$0xff]  }
 0xea2   : > { %v4219_v13 = vmul.f32 1.442695, %v4217_v9  ;;  %v3980_v15 = vsel %vm633_vm2, %v9383_v7, 0.0  ;;  %8717 = vmatprep.subr.bf16.mxu0 %v9481_v2 }
 0xea3   : > { %v4216_v16 = vpop.xlane.xlu0 %4215  ;;  %3981 = vadd.xlane.f32.xlu1 %v3980_v15 }
 0xea4   : > { %9390 = vpow2.f32 %v4219_v13  ;;  %v4218_v52 = vsub.f32 %v4207_v63, %v4216_v16  ;;  %v9112_v13 = vld [vmem:[%s11491_s2 + $0xe8] sm:$0xff]  }
 0xea5   : > { %v9385_v17 = vpop.eup %9384  ;;  %8718 = vmatpush3.bf16.msra.mxu0 %v9112_v13  ;;  %v9128_v13 = vld [vmem:[%s11493_s4 + $0x224] ss:$16 sps:$4 sm:$0xff]  }
 0xea6   : > { %v4221_v18 = vmul.f32 1.442695, %v4218_v52  ;;  %v3983_v19 = vsel %vm633_vm2, %v9385_v17, 0.0  ;;  %8719 = vmatprep.subr.bf16.mxu0 %v9481_v2 }
 0xea7   : > { %3984 = vadd.xlane.f32.xlu0 %v3983_v19 }
 0xea8   : > { %9392 = vpow2.f32 %v4221_v18 }
 0xea9   : > { %v9387_v10 = vpop.eup %9386 }
 0xeaa   : > { %v4102_v23 = vsel %vm633_vm2, %v9387_v10, 0.0 }
 0xeab   : > { %4103 = vadd.xlane.f32.xlu1 %v4102_v23 }
 0xead   : > { %v9389_v24 = vpop.eup %9388 }
 0xeae   : > { %v4105_v25 = vsel %vm633_vm2, %v9389_v24, 0.0 }
 0xeaf   : > { %4106 = vadd.xlane.f32.xlu0 %v4105_v25 }
 0xeb1   : > { %v9391_v26 = vpop.eup %9390 }
 0xeb2   : > { %v4223_v27 = vsel %vm633_vm2, %v9391_v26, 0.0 }
 0xeb3   : > { %4224 = vadd.xlane.f32.xlu1 %v4223_v27 }
 0xeb5   : > { %v9393_v28 = vpop.eup %9392 }
 0xeb6   : > { %v4226_v29 = vsel %vm633_vm2, %v9393_v28, 0.0 }
 0xeb7   : > { %4227 = vadd.xlane.f32.xlu0 %v4226_v29 }
 0xeb9   : > { %v3862_v30 = vpop.xlane.xlu1 %3861 }
 0xeba   : > { %9394 = vrcp.f32 %v3862_v30 }
 0xebd   : > { %v3865_v31 = vpop.xlane.xlu0 %3864  ;;  %v3993_v22 = vpop.permute.xlu1 %3992 }
 0xebe   : > { %9396 = vrcp.f32 %v3865_v31 }
 0xec4   : > { %4234 = vrot.lane.b32.xlu1 %v10562_v55, %s11510_s20 }
 0xec7   : > { %v9395_v32 = vpop.eup %9394 }
 0xec8   : > { %v3868_v20 = vmul.f32 %v9395_v32, %v9379_v46 }
 0xecb   : > { %v9397_v33 = vpop.eup %9396 }
 0xecc   : > { %v3869_v34 = vmul.f32 %v9397_v33, %v9381_v48 }
 0xecd   : > { %4113 = vrot.lane.b32.xlu0 %v10562_v55, %s11509_s30  ;;  %s351_s30 = scalar_lea.vmem [#allocation2], %s350_s18 }
 0xece   : > { %v3870_v36 = vpack.c.bf16 %v3869_v34, %v3868_v20  ;;  %s6910_s20 = sshll.u32 %s351_s30, 4  ;;  %s6911_s20 = int_to_ptr.vmem [resolvable:$true] %s6910_s20 }
 0xecf   : > { %s9418_s27 = scalar_lea.vmem %s6911_s20, 16 }
 0xed0   : > { %8674 = vmatmul.mubr.msk.bf16.vlgmr.msra.gmra.mxu1 %vm633_vm2, %v3870_v36  ;;  %p9419_p11 = scmp.ne.s32.totalorder %s6911_s20, %s9418_s27 }
 0xed1   : > { %8684 = vmatpush3.bf16.msra.mxu1 %v3993_v22  ;;  %8685 = vmatprep.mubr.msk.bf16.mxu1 %vm9482_vm0, %v9481_v2 }
 0xed2   : > { %8695 = vmatprep.subr.bf16.mxu1 %v9481_v2  ;;  %p9420_p12 = pnand %p9419_p11, %p9583_p5 }
 0xed4   : > { %p9421_p13 = pneg %p9420_p12 }
 0xf2c   : > { %v3982_v37 = vpop.xlane.xlu1 %3981 }
 0xf2d   : > { %9398 = vrcp.f32 %v3982_v37 }
 0xf30   : > { %v3985_v38 = vpop.xlane.xlu0 %3984 }
 0xf31   : > { %9400 = vrcp.f32 %v3985_v38 }
 0xf34   : > { %v4104_v39 = vpop.xlane.xlu1 %4103 }
 0xf35   : > { %9402 = vrcp.f32 %v4104_v39 }
 0xf38   : > { %v4107_v62 = vpop.xlane.xlu0 %4106 }
 0xf39   : > { %9404 = vrcp.f32 %v4107_v62 }
 0xf3a   : > { %v9399_v63 = vpop.eup %9398 }
 0xf3b   : > { %v3988_v41 = vmul.f32 %v9399_v63, %v9383_v7 }
 0xf3c   : > { %v4225_v55 = vpop.xlane.xlu1 %4224 }
 0xf3d   : > { %9406 = vrcp.f32 %v4225_v55 }
 0xf3e   : > { %v9401_v40 = vpop.eup %9400 }
 0xf3f   : > { %v3989_v57 = vmul.f32 %v9401_v40, %v9385_v17  ;;  %v9113_v17 = vld [vmem:[%s11491_s2 + $0xe0] sm:$0xff]   ;;  %v7543_v40 = vld [vmem:[%s11492_s3 + $0x13] ss:$0 sm:$0xff] }
 0xf40   : > { %v4228_v58 = vpop.xlane.xlu0 %4227  ;;  %v4235_v49 = vpop.permute.xlu1 %4234  ;;  %8720 = vmatpush3.bf16.msra.mxu0 %v9113_v17  ;;  %v9134_v17 = vld [vmem:[%s11493_s4 + $0x204] ss:$16 sps:$4 sm:$0xff]  }
 0xf41   : > { %9408 = vrcp.f32 %v4228_v58  ;;  %v3990_v42 = vpack.c.bf16 %v3989_v57, %v3988_v41 }
 0xf42   : > { %v9403_v43 = vpop.eup %9402 }
 0xf43   : > { %8686 = vmatmul.mubr.msk.bf16.vlgmr.msra.gmra.mxu1 %vm633_vm2, %v3990_v42  ;;  %v4110_v46 = vmul.f32 %v9403_v43, %v9387_v10 }
 0xf44   : > { %v4114_v44 = vpop.permute.xlu0 %4113  ;;  %8697 = vmatprep.mubr.msk.bf16.mxu1 %vm9482_vm0, %v9481_v2 }
 0xf45   : > { %8696 = vmatpush3.bf16.msra.mxu1 %v4114_v44 }
 0xf46   : > { %v9405_v45 = vpop.eup %9404  ;;  %8707 = vmatprep.subr.bf16.mxu1 %v9481_v2 }
 0xf47   : > { %v4111_v47 = vmul.f32 %v9405_v45, %v9389_v24 }
 0xf49   : > { %v4112_v48 = vpack.c.bf16 %v4111_v47, %v4110_v46 }
 0xf4a   : > { %v9407_v51 = vpop.eup %9406 }
 0xf4b   : > { %8698 = vmatmul.mubr.msk.bf16.vlgmr.msra.gmra.mxu1 %vm633_vm2, %v4112_v48  ;;  %v4231_v54 = vmul.f32 %v9407_v51, %v9391_v26 }
 0xf4c   : > { %8708 = vmatpush3.bf16.msra.mxu1 %v4235_v49  ;;  %8709 = vmatprep.mubr.msk.bf16.mxu1 %vm9482_vm0, %v9481_v2 }
 0xf4e   : > { %v9409_v53 = vpop.eup %9408 }
 0xf4f   : > { %v4232_v56 = vmul.f32 %v9409_v53, %v9393_v28 }
 0xf51   : > { %v4233_v59 = vpack.c.bf16 %v4232_v56, %v4231_v54 }
 0xf53   : > { %8710 = vmatmul.mubr.msk.bf16.vlgmr.msra.gmra.mxu1 %vm633_vm2, %v4233_v59 }
 0xf54   : > { %4589 = vmatprep.mubr.bf16.mxu1 %v9480_v1 }
 0xf90   : > { %v3908_v60 = vpop.f32.mrf.mxu1 }
 0xf92   : > { %v8675_v61 = vpop.f32.mrf.mxu1 }
 0xf94   : > { %v3911_v0 = vpop.f32.mrf.mxu1 }
 0xf96   : > { %v8676_v50 = vpop.f32.mrf.mxu1 }
 0xf97   : > { %v9119_v50 = vld [vmem:[%s11493_s4 + $0x26c] ss:$16 sps:$4 sm:$0xff]  }
 0xf98   : > { %4608 = vmatprep.subr.bf16.mxu0 %v9119_v50  ;;  %v9172_v50 = vld [vmem:[%s11495_s6 + $0x528] sm:$0xff]  }
0x1003   : > { %v4032_v4 = vpop.f32.mrf.mxu1 }
0x1005   : > { %v8687_v14 = vpop.f32.mrf.mxu1 }
0x1006   : > { %v9122_v14 = vld [vmem:[%s11493_s4 + $0x244] ss:$16 sps:$4 sm:$0xff]  }
0x1007   : > { %v4035_v9 = vpop.f32.mrf.mxu1 }
0x1008   : > { %v8843_v7 = vpack.i.bf16 %v4035_v9, %v4032_v4  ;;  %v9117_v4 = vld [vmem:[%s11493_s4 + $0x268] ss:$16 sps:$4 sm:$0xff]   ;;  %v9120_v9 = vld [vmem:[%s11493_s4 + $0x240] ss:$16 sps:$4 sm:$0xff]  }
0x1009   : > { %v8688_v15 = vpop.f32.mrf.mxu1 }
0x100a   : > { %8844 = vrot.lane.b32.xlu1 %v8843_v7, %s11511_s21  ;;  %v9123_v7 = vld [vmem:[%s11493_s4 + $0x248] ss:$16 sps:$4 sm:$0xff]   ;;  %v9131_v15 = vld [vmem:[%s11493_s4 + $0x22c] ss:$16 sps:$4 sm:$0xff]   ;;  %s8079_s21 = sshll.u32 %s9566_s17, 4  ;;  %s9489_s17 = smov [#allocation2]  }
0x100b   : > { %v4153_v16 = vpop.f32.mrf.mxu1  ;;  %s11454_s12 = scalar_lea.hbm %s11499_s10, %s8079_s21  ;;  %s9422_s26 = sshll.u32 %s9489_s17, 4  ;;  %s9423_s26 = int_to_ptr.vmem [resolvable:$false] %s9422_s26 }
0x100c   : > { %s9424_s11 = scalar_lea.vmem %s9423_s26, 32  ;;  %p9425_p0 = scmp.lt.s32.totalorder %s6911_s20, %s9423_s26 }
0x100d   : > { %v8699_v52 = vpop.f32.mrf.mxu1  ;;  %p9426_p1 = scmp.lt.s32.totalorder %s9424_s11, %s9418_s27 }
0x100e   : > { %v9129_v52 = vld [vmem:[%s11493_s4 + $0x228] ss:$16 sps:$4 sm:$0xff]  }
0x100f   : > { %v4156_v18 = vpop.f32.mrf.mxu1  ;;  %p9427_p2 = por %p9426_p1, %p9425_p0 }
0x1010   : > { %v8848_v19 = vpack.i.bf16 %v4156_v18, %v4153_v16  ;;  %v9126_v16 = vld [vmem:[%s11493_s4 + $0x220] ss:$16 sps:$4 sm:$0xff]   ;;  %v9137_v18 = vld [vmem:[%s11493_s4 + $0x20c] ss:$16 sps:$4 sm:$0xff]  }
0x1011   : > { %v8700_v10 = vpop.f32.mrf.mxu1  ;;  %p9428_p3 = pnand %p9427_p2, %p9421_p13 }
0x1012   : > { %8849 = vrot.lane.b32.xlu0 %v8848_v19, %s11512_s25  ;;  %v9132_v19 = vld [vmem:[%s11493_s4 + $0x200] ss:$16 sps:$4 sm:$0xff]   ;;  %v9135_v10 = vld [vmem:[%s11493_s4 + $0x208] ss:$16 sps:$4 sm:$0xff]  }
0x1013   : > { %v4274_v23 = vpop.f32.mrf.mxu1 }
0x1015   : > { %v8711_v24 = vpop.f32.mrf.mxu1 }
0x1016   : > { %v9143_v24 = vld [vmem:[%s11493_s4 + $0x2ec] ss:$16 sps:$4 sm:$0xff]  }
0x1017   : > { %v4277_v25 = vpop.f32.mrf.mxu1 }
0x1018   : > { %v8853_v26 = vpack.i.bf16 %v4277_v25, %v4274_v23  ;;  %v9140_v23 = vld [vmem:[%s11493_s4 + $0x2e4] ss:$16 sps:$4 sm:$0xff]  }
0x1019   : > { %v8712_v27 = vpop.f32.mrf.mxu1 }
0x101a   : > { %8854 = vrot.lane.b32.xlu1 %v8853_v26, %s11513_s29 }
0x107c   : > { %v8845_v28 = vpop.permute.xlu1 %8844 }
0x107d   : > { %v8847_v30 = vunpack.i.h.bf16 %v8845_v28  ;;  %v8846_v31 = vunpack.i.l.bf16 %v8845_v28 }
0x107f   : > { %v4306_v34 = vsel %vm633_vm2, %v3911_v0, %v8847_v30  ;;  %v4305_v36 = vsel %vm633_vm2, %v3908_v60, %v8846_v31 }
0x1084   : > { %v8850_v29 = vpop.permute.xlu0 %8849 }
0x1085   : > { %v8852_v32 = vunpack.i.h.bf16 %v8850_v29  ;;  %v8851_v33 = vunpack.i.l.bf16 %v8850_v29 }
0x1087   : > { %v4308_v38 = vsel %vm1140_vm3, %v4306_v34, %v8852_v32  ;;  %v4307_v39 = vsel %vm1140_vm3, %v4305_v36, %v8851_v33  ;;  %v7549_v33 = vld [vmem:[%s11492_s3 + $0x14] ss:$0 sm:$0xff] }
0x108c   : > { %v8855_v20 = vpop.permute.xlu1 %8854 }
0x108d   : > { %v8857_v22 = vunpack.i.h.bf16 %v8855_v20  ;;  %v8856_v37 = vunpack.i.l.bf16 %v8855_v20 }
0x108f   : > { %v4310_v62 = vsel %vm1143_vm4, %v4308_v38, %v8857_v22  ;;  %v4309_v63 = vsel %vm1143_vm4, %v4307_v39, %v8856_v37  ;;  %v7550_v22 = vld [vmem:[%s11492_s3 + $0x15] ss:$0 sm:$0xff] }
0x1090   : > { %v4311_v55 = vpack.c.bf16 %v4310_v62, %v4309_v63  ;;  %v9138_v62 = vld [vmem:[%s11493_s4 + $0x2e0] ss:$16 sps:$4 sm:$0xff]   ;;  %v9141_v63 = vld [vmem:[%s11493_s4 + $0x2e8] ss:$16 sps:$4 sm:$0xff]  }
0x1092   : > { %8722 = vmatmul.mubr.msk.bf16.vlgmr.msra.gmra.mxu0 %vm427_vm1, %v4311_v55 }
0x1093   : > { %4632 = vmatprep.mubr.bf16.mxu0 %v9480_v1  ;;  %4609 = vmatpush1.bf16.msra.mxu0 %v9117_v4  ;;  %v9174_v4 = vld [vmem:[%s11495_s6 + $0x560] sm:$0xff]  }
0x1094   : > { %4610 = vmatprep.subr.bf16.mxu0 %v9125_v6  ;;  %v9176_v6 = vld [vmem:[%s11495_s6 + $0x520] sm:$0xff]  }
0x1097   : > { %4611 = vmatpush1.bf16.msra.mxu0 %v9123_v7  ;;  %v9178_v7 = vld [vmem:[%s11495_s6 + $0x558] sm:$0xff]  }
0x1098   : > { %4612 = vmatprep.subr.bf16.mxu0 %v9131_v15  ;;  %v9180_v15 = vld [vmem:[%s11495_s6 + $0x518] sm:$0xff]  }
0x109b   : > { %4613 = vmatpush1.bf16.msra.mxu0 %v9129_v52  ;;  %v9182_v52 = vld [vmem:[%s11495_s6 + $0x550] sm:$0xff]  }
0x109c   : > { %4614 = vmatprep.subr.bf16.mxu0 %v9137_v18  ;;  %v9184_v18 = vld [vmem:[%s11495_s6 + $0x510] sm:$0xff]  }
0x109f   : > { %4615 = vmatpush1.bf16.msra.mxu0 %v9135_v10  ;;  %v9186_v10 = vld [vmem:[%s11495_s6 + $0x548] sm:$0xff]  }
0x10a0   : > { %4891 = vmatprep.subr.bf16.mxu0 %v9143_v24  ;;  %v9188_v24 = vld [vmem:[%s11495_s6 + $0x508] sm:$0xff]  }
0x1152   : > { %v4386_v41 = vpop.f32.mrf.mxu0 }
0x1153   : > { %v4387_v57 = vadd.f32 %v7543_v40, %v4386_v41  ;;  %v9149_v41 = vld [vmem:[%s11493_s4 + $0x2cc] ss:$16 sps:$4 sm:$0xff]  }
0x1154   : > { %v8723_v58 = vpop.f32.mrf.mxu0 }
0x1155   : > { %v4393_v42 = vadd.f32 %v4387_v57, %v10511_v35  ;;  %v9144_v57 = vld [vmem:[%s11493_s4 + $0x2c0] ss:$16 sps:$4 sm:$0xff]   ;;  %v9147_v58 = vld [vmem:[%s11493_s4 + $0x2c8] ss:$16 sps:$4 sm:$0xff]  }
0x1156   : > { %v4389_v43 = vpop.f32.mrf.mxu0 }
0x1157   : > { %v4390_v44 = vadd.f32 %v7543_v40, %v4389_v43  ;;  %v4395_v45 = vsel %vm427_vm1, %v4393_v42, 0.0  ;;  %v9146_v40 = vld [vmem:[%s11493_s4 + $0x2c4] ss:$16 sps:$4 sm:$0xff]   ;;  %v9155_v43 = vld [vmem:[%s11493_s4 + $0x2ac] ss:$16 sps:$4 sm:$0xff]  }
0x1158   : > { %4396 = vadd.xlane.f32.xlu0 %v4395_v45  ;;  %v8724_v46 = vpop.f32.mrf.mxu0  ;;  %v9153_v45 = vld [vmem:[%s11493_s4 + $0x2a8] ss:$16 sps:$4 sm:$0xff]  }
0x1159   : > { %v4394_v47 = vadd.f32 %v4390_v44, %v10513_v21  ;;  %v9116_v21 = vld [vmem:[%s11493_s4 + $0x264] ss:$16 sps:$4 sm:$0xff]   ;;  %v9150_v44 = vld [vmem:[%s11493_s4 + $0x2a0] ss:$16 sps:$4 sm:$0xff]  }
0x115a   : > { %4565 = vmatprep.subr.bf16.mxu1 %v9116_v21  ;;  %v9158_v46 = vld [vmem:[%s11493_s4 + $0x284] ss:$16 sps:$4 sm:$0xff]   ;;  %v9171_v21 = vld [vmem:[%s11495_s6 + $0x5e8] sm:$0xff]  }
0x115b   : > { %v4398_v48 = vsel %vm427_vm1, %v4394_v47, 0.0  ;;  %4566 = vmatpush1.bf16.msra.mxu1 %v9114_v3  ;;  %v9173_v3 = vld [vmem:[%s11495_s6 + $0x5a8] sm:$0xff]  }
0x115c   : > { %4399 = vadd.xlane.f32.xlu1 %v4398_v48  ;;  %4567 = vmatprep.subr.bf16.mxu1 %v9122_v14  ;;  %v9156_v48 = vld [vmem:[%s11493_s4 + $0x280] ss:$16 sps:$4 sm:$0xff]  }
0x115d   : > { %v9175_v14 = vld [vmem:[%s11495_s6 + $0x5e0] sm:$0xff]  }
0x115f   : > { %4568 = vmatpush1.bf16.msra.mxu1 %v9120_v9  ;;  %v9177_v9 = vld [vmem:[%s11495_s6 + $0x5a0] sm:$0xff]  }
0x1160   : > { %4569 = vmatprep.subr.bf16.mxu1 %v9128_v13  ;;  %v9179_v13 = vld [vmem:[%s11495_s6 + $0x5d8] sm:$0xff]  }
0x1163   : > { %4570 = vmatpush1.bf16.msra.mxu1 %v9126_v16  ;;  %v9181_v16 = vld [vmem:[%s11495_s6 + $0x598] sm:$0xff]  }
0x1164   : > { %4571 = vmatprep.subr.bf16.mxu1 %v9134_v17  ;;  %v9183_v17 = vld [vmem:[%s11495_s6 + $0x5d0] sm:$0xff]  }
0x1167   : > { %4572 = vmatpush1.bf16.msra.mxu1 %v9132_v19  ;;  %v9185_v19 = vld [vmem:[%s11495_s6 + $0x590] sm:$0xff]  }
0x1168   : > { %4848 = vmatprep.subr.bf16.mxu1 %v9140_v23  ;;  %v9187_v23 = vld [vmem:[%s11495_s6 + $0x5c8] sm:$0xff]  }
0x11e1   : > { %v4397_v49 = vpop.xlane.xlu0 %4396 }
0x11e2   : > { %v4401_v51 = vmul.f32 0.015625, %v4397_v49  ;;  %v9159_v49 = vld [vmem:[%s11493_s4 + $0x288] ss:$16 sps:$4 sm:$0xff]  }
0x11e4   : > { %v4403_v53 = vsub.f32 %v4393_v42, %v4401_v51  ;;  %v9152_v42 = vld [vmem:[%s11493_s4 + $0x2a4] ss:$16 sps:$4 sm:$0xff]   ;;  %v9162_v51 = vld [vmem:[%s11495_s6 + $0x578] sm:$0xff]  }
0x11e5   : > { %v4400_v54 = vpop.xlane.xlu1 %4399 }
0x11e6   : > { %v4402_v56 = vmul.f32 0.015625, %v4400_v54  ;;  %v4405_v59 = vmul.f32 %v4403_v53, %v4403_v53  ;;  %v9164_v54 = vld [vmem:[%s11495_s6 + $0x538] sm:$0xff]  }
0x11e8   : > { %v4404_v60 = vsub.f32 %v4394_v47, %v4402_v56  ;;  %v4407_v35 = vsel %vm427_vm1, %v4405_v59, 0.0  ;;  %v9161_v47 = vld [vmem:[%s11493_s4 + $0x28c] ss:$16 sps:$4 sm:$0xff]   ;;  %v9166_v59 = vld [vmem:[%s11495_s6 + $0x570] sm:$0xff]  }
0x11e9   : > { %4408 = vadd.xlane.f32.xlu0 %v4407_v35  ;;  %v9165_v56 = vld [vmem:[%s11495_s6 + $0x5b8] sm:$0xff]   ;;  %v9168_v35 = vld [vmem:[%s11495_s6 + $0x530] sm:$0xff]  }
0x11ea   : > { %v4406_v61 = vmul.f32 %v4404_v60, %v4404_v60 }
0x11ec   : > { %v4410_v0 = vsel %vm427_vm1, %v4406_v61, 0.0  ;;  %v9169_v61 = vld [vmem:[%s11495_s6 + $0x5b0] sm:$0xff]  }
0x11ed   : > { %4411 = vadd.xlane.f32.xlu0 %v4410_v0  ;;  %v9170_v0 = vld [vmem:[%s11495_s6 + $0x568] sm:$0xff]  }
0x1272   : > { %v4409_v25 = vpop.xlane.xlu0 %4408 }
0x1273   : > { %v4413_v26 = vmul.f32 0.015625, %v4409_v25  ;;  %v9189_v25 = vld [vmem:[%s11495_s6 + $0x588] sm:$0xff]  }
0x1275   : > { %v4415_v27 = vadd.f32 1e-05, %v4413_v26  ;;  %v9190_v26 = vld [vmem:[%s11495_s6 + $0x540] sm:$0xff]  }
0x1276   : > { %v4412_v28 = vpop.xlane.xlu0 %4411 }
0x1277   : > { %9410 = vrsqrt.f32 %v4415_v27  ;;  %v4414_v29 = vmul.f32 0.015625, %v4412_v28  ;;  %v9191_v27 = vld [vmem:[%s11495_s6 + $0x5c0] sm:$0xff]  }
0x1278   : > { %v9192_v28 = vld [vmem:[%s11495_s6 + $0x500] sm:$0xff]  }
0x1279   : > { %v4416_v30 = vadd.f32 1e-05, %v4414_v29  ;;  %v9193_v29 = vld [vmem:[%s11495_s6 + $0x580] sm:$0xff]  }
0x127b   : > { %9412 = vrsqrt.f32 %v4416_v30  ;;  %v9194_v30 = vld [vmem:[%s11495_s6 + $0x478] sm:$0xff]  }
0x1284   : > { %v9411_v31 = vpop.eup %9410 }
0x1285   : > { %v4419_v32 = vmul.f32 %v9411_v31, %v4403_v53  ;;  %v9163_v53 = vld [vmem:[%s11495_s6 + $0x5f8] sm:$0xff]  }
0x1286   : > { %v9195_v31 = vld [vmem:[%s11495_s6 + $0x4f8] sm:$0xff]  }
0x1287   : > { %v4425_v34 = vmul.f32 %v7549_v33, %v4419_v32 }
0x1288   : > { %v9413_v20 = vpop.eup %9412 }
0x1289   : > { %v4420_v36 = vmul.f32 %v9413_v20, %v4404_v60  ;;  %v10711_v38 = vadd.f32 %v7550_v22, %v4425_v34  ;;  %v9167_v60 = vld [vmem:[%s11495_s6 + $0x5f0] sm:$0xff]  }
0x128b   : > { %v4426_v37 = vmul.f32 %v7549_v33, %v4420_v36 }
0x128d   : > { %v10713_v39 = vadd.f32 %v7550_v22, %v4426_v37 }
0x128f   : > { %v10723_v55 = vpack.c.bf16 %v10713_v39, %v10711_v38 }
0x1291   : > { %7584 = vmatmul.mubr.msk.bf16.vlgmr.msra.gmra.mxu1 %vm427_vm1, %v10723_v55  ;;  %7585 = vmatmul.mubr.msk.bf16.vlgmr.msra.gmra.mxu0 %vm427_vm1, %v10723_v55 }
0x1292   : > { %4849 = vmatpush1.bf16.msra.mxu1 %v9138_v62  ;;  %4892 = vmatpush1.bf16.msra.mxu0 %v9141_v63  ;;  %v7666_v63 = vld [vmem:[%s11494_s5 + $0x14] sm:$0xf] }
0x1293   : > { %4850 = vmatprep.subr.bf16.mxu1 %v9146_v40  ;;  %4893 = vmatprep.subr.bf16.mxu0 %v9149_v41 }
0x1294   : > { %4872 = vmatprep.mubr.bf16.mxu1 %v9480_v1  ;;  %4915 = vmatprep.mubr.bf16.mxu0 %v9480_v1 }
0x1296   : > { %4851 = vmatpush1.bf16.msra.mxu1 %v9144_v57  ;;  %4894 = vmatpush1.bf16.msra.mxu0 %v9147_v58  ;;  %v4747_v57 = vrot.slane %v7666_v63, %v10016_v5  ;;  %v4755_v58 = vrot.slane %v7666_v63, %v10018_v8 }
0x1297   : > { %4852 = vmatprep.subr.bf16.mxu1 %v9152_v42  ;;  %4895 = vmatprep.subr.bf16.mxu0 %v9155_v43  ;;  %v4743_v42 = vrot.slane %v7666_v63, %v10023_v11  ;;  %v4751_v43 = vrot.slane %v7666_v63, %v10025_v12  ;;  %v9201_v63 = vld [vmem:[%s11495_s6 + $0x4b0] sm:$0xff]  }
0x129a   : > { %4853 = vmatpush1.bf16.msra.mxu1 %v9150_v44  ;;  %4896 = vmatpush1.bf16.msra.mxu0 %v9153_v45 }
0x129b   : > { %4854 = vmatprep.subr.bf16.mxu1 %v9158_v46  ;;  %4897 = vmatprep.subr.bf16.mxu0 %v9161_v47  ;;  %v10891_v46 = vld [vmem:[%s11494_s5 + $0x10] sm:$0xf] }
0x129c   : > { %v4461_v47 = vrot.slane %v10891_v46, %v10016_v5 }
0x129e   : > { %4855 = vmatpush1.bf16.msra.mxu1 %v9156_v48  ;;  %4898 = vmatpush1.bf16.msra.mxu0 %v9159_v49  ;;  %v4469_v48 = vrot.slane %v10891_v46, %v10018_v8 }
0x129f   : > { %8331 = vmatprep.subr.bf16.mxu1 %v9162_v51  ;;  %8353 = vmatprep.subr.bf16.mxu0 %v9163_v53 }
0x12a1   : > { %7683 = vmatmul.mubr.msk.bf16.vlgmr.msra.gmra.mxu1 %vm427_vm1, %v10723_v55  ;;  %7684 = vmatmul.mubr.msk.bf16.vlgmr.msra.gmra.mxu0 %vm427_vm1, %v10723_v55 }
0x12a2   : > { %8332 = vmatpush3.bf16.msra.mxu1 %v9164_v54  ;;  %8354 = vmatpush3.bf16.msra.mxu0 %v9165_v56 }
0x12a3   : > { %8333 = vmatprep.subr.bf16.mxu1 %v9166_v59  ;;  %8355 = vmatprep.subr.bf16.mxu0 %v9167_v60 }
0x12a6   : > { %8334 = vmatpush3.bf16.msra.mxu1 %v9168_v35  ;;  %8356 = vmatpush3.bf16.msra.mxu0 %v9169_v61 }
0x12a7   : > { %8335 = vmatprep.subr.bf16.mxu1 %v9170_v0  ;;  %8357 = vmatprep.subr.bf16.mxu0 %v9171_v21 }
0x12aa   : > { %8336 = vmatpush3.bf16.msra.mxu1 %v9172_v50  ;;  %8358 = vmatpush3.bf16.msra.mxu0 %v9173_v3 }
0x12ab   : > { %8337 = vmatprep.subr.bf16.mxu1 %v9174_v4  ;;  %8359 = vmatprep.subr.bf16.mxu0 %v9175_v14 }
0x12ae   : > { %8338 = vmatpush3.bf16.msra.mxu1 %v9176_v6  ;;  %8360 = vmatpush3.bf16.msra.mxu0 %v9177_v9 }
0x12af   : > { %8339 = vmatprep.subr.bf16.mxu1 %v9178_v7  ;;  %8361 = vmatprep.subr.bf16.mxu0 %v9179_v13 }
0x12b2   : > { %8340 = vmatpush3.bf16.msra.mxu1 %v9180_v15  ;;  %8362 = vmatpush3.bf16.msra.mxu0 %v9181_v16 }
0x12b3   : > { %8341 = vmatprep.subr.bf16.mxu1 %v9182_v52  ;;  %8363 = vmatprep.subr.bf16.mxu0 %v9183_v17 }
0x12b6   : > { %8342 = vmatpush3.bf16.msra.mxu1 %v9184_v18  ;;  %8364 = vmatpush3.bf16.msra.mxu0 %v9185_v19 }
0x12b7   : > { %8343 = vmatprep.subr.bf16.mxu1 %v9186_v10  ;;  %8365 = vmatprep.subr.bf16.mxu0 %v9187_v23 }
0x12ba   : > { %8344 = vmatpush3.bf16.msra.mxu1 %v9188_v24  ;;  %8366 = vmatpush3.bf16.msra.mxu0 %v9189_v25  ;;  %v9196_v25 = vld [vmem:[%s11495_s6 + $0x438] sm:$0xff]  }
0x12bb   : > { %8345 = vmatprep.subr.bf16.mxu1 %v9190_v26  ;;  %8367 = vmatprep.subr.bf16.mxu0 %v9191_v27  ;;  %v9197_v26 = vld [vmem:[%s11495_s6 + $0x4b8] sm:$0xff]  }
0x12be   : > { %8346 = vmatpush3.bf16.msra.mxu1 %v9192_v28  ;;  %8368 = vmatpush3.bf16.msra.mxu0 %v9193_v29 }
0x12bf   : > { %8375 = vmatprep.subr.bf16.mxu1 %v9194_v30  ;;  %8397 = vmatprep.subr.bf16.mxu0 %v9195_v31  ;;  %v9198_v31 = vld [vmem:[%s11495_s6 + $0x470] sm:$0xff]  }
0x1351   : > { %v10873_v32 = vpop.f32.mrf.mxu1  ;;  %v10875_v33 = vpop.f32.mrf.mxu0 }
0x1353   : > { %v4593_v20 = vpop.f32.mrf.mxu1  ;;  %v4636_v34 = vpop.f32.mrf.mxu0 }
0x1354   : > { %v4594_v14 = vadd.f32 %v4593_v20, %v4461_v47  ;;  %v4637_v6 = vadd.f32 %v4636_v34, %v4469_v48  ;;  %v9199_v20 = vld [vmem:[%s11495_s6 + $0x4f0] sm:$0xff]  }
0x1355   : > { %v10877_v36 = vpop.f32.mrf.mxu1  ;;  %v10879_v22 = vpop.f32.mrf.mxu0 }
0x1356   : > { %v4644_v27 = vmax.f32 %v4594_v14, 0.0  ;;  %v4646_v28 = vmax.f32 %v4637_v6, 0.0  ;;  %v9223_v14 = vld [vmem:[%s11495_s6 + $0x4c0] sm:$0xff]  }
0x1357   : > { %v4597_v37 = vpop.f32.mrf.mxu1  ;;  %v4640_v62 = vpop.f32.mrf.mxu0 }
0x1358   : > { %v4598_v60 = vadd.f32 %v4597_v37, %v4461_v47  ;;  %v4641_v35 = vadd.f32 %v4640_v62, %v4469_v48  ;;  %v9200_v62 = vld [vmem:[%s11495_s6 + $0x430] sm:$0xff]   ;;  %v9210_v47 = vld [vmem:[%s11495_s6 + $0x458] sm:$0xff]  }
0x1359   : > { %v9211_v48 = vld [vmem:[%s11495_s6 + $0x4d8] sm:$0xff]  }
0x135a   : > { %v4648_v17 = vmax.f32 %v4598_v60, 0.0  ;;  %v4650_v18 = vmax.f32 %v4641_v35, 0.0  ;;  %v9218_v60 = vld [vmem:[%s11495_s6 + $0x448] sm:$0xff]  }
0x135b   : > { %v9219_v35 = vld [vmem:[%s11495_s6 + $0x4c8] sm:$0xff]  }
0x135c   : > { %v4652_v34 = vpack.c.bf16 %v4648_v17, %v4644_v27  ;;  %v4654_v37 = vpack.c.bf16 %v4650_v18, %v4646_v28  ;;  %v9229_v17 = vld [vmem:[%s11493_s4 + $0x368] ss:$16 sps:$4 sm:$0xff]   ;;  %v9243_v27 = vld [vmem:[%s11493_s4 + $0x32c] ss:$16 sps:$4 sm:$0xff]   ;;  %v9238_v28 = vld [vmem:[%s11493_s4 + $0x320] ss:$16 sps:$4 sm:$0xff]  }
0x1361   : > { %v4874_v40 = vpop.f32.mrf.mxu1  ;;  %v4917_v41 = vpop.f32.mrf.mxu0 }
0x1362   : > { %v4875_v61 = vadd.f32 %v4874_v40, %v4743_v42  ;;  %v4918_v0 = vadd.f32 %v4917_v41, %v4751_v43  ;;  %v9202_v40 = vld [vmem:[%s11495_s6 + $0x468] sm:$0xff]  }
0x1363   : > { %v4876_v44 = vpop.f32.mrf.mxu1  ;;  %v4919_v45 = vpop.f32.mrf.mxu0  ;;  %v9203_v41 = vld [vmem:[%s11495_s6 + $0x4e8] sm:$0xff]  }
0x1364   : > { %v4877_v53 = vadd.f32 %v4876_v44, %v4747_v57  ;;  %v4920_v54 = vadd.f32 %v4919_v45, %v4755_v58  ;;  %v4926_v19 = vmax.f32 %v4875_v61, 0.0  ;;  %v4928_v10 = vmax.f32 %v4918_v0, 0.0  ;;  %v9208_v44 = vld [vmem:[%s11495_s6 + $0x420] sm:$0xff]  }
0x1365   : > { %v4878_v49 = vpop.f32.mrf.mxu1  ;;  %v4921_v51 = vpop.f32.mrf.mxu0  ;;  %v9209_v45 = vld [vmem:[%s11495_s6 + $0x4a0] sm:$0xff]   ;;  %v4457_v61 = vrot.slane %v10891_v46, %v10023_v11  ;;  %v4465_v0 = vrot.slane %v10891_v46, %v10025_v12 }
0x1366   : > { %v4879_v56 = vadd.f32 %v4878_v49, %v4743_v42  ;;  %v4922_v59 = vadd.f32 %v4921_v51, %v4751_v43  ;;  %v4927_v13 = vmax.f32 %v4877_v53, 0.0  ;;  %v4929_v15 = vmax.f32 %v4920_v54, 0.0  ;;  %v9206_v42 = vld [vmem:[%s11495_s6 + $0x460] sm:$0xff]   ;;  %v9212_v49 = vld [vmem:[%s11495_s6 + $0x418] sm:$0xff]   ;;  %v9214_v53 = vld [vmem:[%s11495_s6 + $0x450] sm:$0xff]  }
0x1367   : > { %v4880_v21 = vpop.f32.mrf.mxu1  ;;  %v4923_v50 = vpop.f32.mrf.mxu0  ;;  %v9207_v43 = vld [vmem:[%s11495_s6 + $0x4e0] sm:$0xff]   ;;  %v9213_v51 = vld [vmem:[%s11495_s6 + $0x498] sm:$0xff]   ;;  %v9215_v54 = vld [vmem:[%s11495_s6 + $0x4d0] sm:$0xff]   ;;  %v4592_v6 = vadd.f32 %v10873_v32, %v4457_v61 }
0x1368   : > { %v4881_v3 = vadd.f32 %v4880_v21, %v4747_v57  ;;  %v4924_v4 = vadd.f32 %v4923_v50, %v4755_v58  ;;  %v4930_v9 = vmax.f32 %v4879_v56, 0.0  ;;  %v4932_v7 = vmax.f32 %v4922_v59, 0.0  ;;  %v9204_v57 = vld [vmem:[%s11495_s6 + $0x428] sm:$0xff]   ;;  %v9216_v56 = vld [vmem:[%s11495_s6 + $0x410] sm:$0xff]   ;;  %v9222_v46 = vld [vmem:[%s11495_s6 + $0x440] sm:$0xff]  }
0x1369   : > { %v9205_v58 = vld [vmem:[%s11495_s6 + $0x4a8] sm:$0xff]   ;;  %v9217_v59 = vld [vmem:[%s11495_s6 + $0x490] sm:$0xff]  }
0x136a   : > { %v4931_v16 = vmax.f32 %v4881_v3, 0.0  ;;  %v4933_v52 = vmax.f32 %v4924_v4, 0.0  ;;  %v4934_v29 = vpack.c.bf16 %v4930_v9, %v4926_v19  ;;  %v4936_v30 = vpack.c.bf16 %v4932_v7, %v4928_v10  ;;  %v9220_v21 = vld [vmem:[%s11495_s6 + $0x408] sm:$0xff]   ;;  %v9228_v32 = vld [vmem:[%s11493_s4 + $0x364] ss:$16 sps:$4 sm:$0xff]  }
0x136b   : > { %v9221_v50 = vld [vmem:[%s11495_s6 + $0x488] sm:$0xff]   ;;  %v4596_v3 = vadd.f32 %v10877_v36, %v4457_v61  ;;  %v4639_v4 = vadd.f32 %v10879_v22, %v4465_v0  ;;  %v4635_v9 = vadd.f32 %v10875_v33, %v4465_v0  ;;  %v9224_v36 = vld [vmem:[%s11495_s6 + $0x400] sm:$0xff]   ;;  %v9271_v61 = vld [vmem:[%s11495_s6 + $0x6d0] sm:$0xff]  }
0x136c   : > { %v4935_v23 = vpack.c.bf16 %v4931_v16, %v4927_v13  ;;  %v4937_v24 = vpack.c.bf16 %v4933_v52, %v4929_v15  ;;  %v9225_v22 = vld [vmem:[%s11495_s6 + $0x480] sm:$0xff]   ;;  %v9231_v33 = vld [vmem:[%s11493_s4 + $0x36c] ss:$16 sps:$4 sm:$0xff]   ;;  %v4643_v15 = vmax.f32 %v4592_v6, 0.0  ;;  %v9272_v0 = vld [vmem:[%s11495_s6 + $0x610] sm:$0xff]  }
0x136d   : > { %v4647_v7 = vmax.f32 %v4596_v3, 0.0  ;;  %v4649_v13 = vmax.f32 %v4639_v4, 0.0  ;;  %v4645_v16 = vmax.f32 %v4635_v9, 0.0  ;;  %v9226_v52 = vld [vmem:[%s11493_s4 + $0x360] ss:$16 sps:$4 sm:$0xff]   ;;  %v9275_v3 = vld [vmem:[%s11495_s6 + $0x6c8] sm:$0xff]  }
0x136e   : > { %5227 = vmatprep.mubr.bf16.mxu1 %v4935_v23  ;;  %5268 = vmatprep.mubr.bf16.mxu0 %v4937_v24  ;;  %v9234_v10 = vld [vmem:[%s11493_s4 + $0x344] ss:$16 sps:$4 sm:$0xff]   ;;  %v9237_v23 = vld [vmem:[%s11493_s4 + $0x34c] ss:$16 sps:$4 sm:$0xff]   ;;  %v9232_v24 = vld [vmem:[%s11493_s4 + $0x340] ss:$16 sps:$4 sm:$0xff]  }
0x136f   : > { %5228 = vmatmul.mubr.bf16.vlgmr.msra.gmra.mxu1 %v4934_v29  ;;  %5269 = vmatmul.mubr.bf16.vlgmr.msra.gmra.mxu0 %v4936_v30  ;;  %v4651_v18 = vpack.c.bf16 %v4647_v7, %v4643_v15  ;;  %v4653_v19 = vpack.c.bf16 %v4649_v13, %v4645_v16  ;;  %v9241_v29 = vld [vmem:[%s11493_s4 + $0x328] ss:$16 sps:$4 sm:$0xff]   ;;  %v9246_v30 = vld [vmem:[%s11493_s4 + $0x304] ss:$16 sps:$4 sm:$0xff]   ;;  %v9287_v7 = vld [vmem:[%s11493_s4 + $0x3ec] ss:$16 sps:$4 sm:$0xff]  }
0x1370   : > { %8376 = vmatpush3.bf16.msra.mxu1 %v9196_v25  ;;  %8398 = vmatpush3.bf16.msra.mxu0 %v9197_v26  ;;  %v9235_v25 = vld [vmem:[%s11493_s4 + $0x348] ss:$16 sps:$4 sm:$0xff]   ;;  %v9240_v26 = vld [vmem:[%s11493_s4 + $0x324] ss:$16 sps:$4 sm:$0xff]  }
0x1371   : > { %5501 = vmatprep.mubr.bf16.mxu1 %v4652_v34  ;;  %5542 = vmatprep.mubr.bf16.mxu0 %v4654_v37  ;;  %v9247_v34 = vld [vmem:[%s11493_s4 + $0x308] ss:$16 sps:$4 sm:$0xff]   ;;  %v9279_v6 = vld [vmem:[%s11495_s6 + $0x6c0] sm:$0xff]  }
0x1372   : > { %8377 = vmatprep.subr.bf16.mxu1 %v9198_v31  ;;  %8399 = vmatprep.subr.bf16.mxu0 %v9199_v20  ;;  %v9249_v31 = vld [vmem:[%s11493_s4 + $0x30c] ss:$16 sps:$4 sm:$0xff]   ;;  %v9244_v20 = vld [vmem:[%s11493_s4 + $0x300] ss:$16 sps:$4 sm:$0xff]  }
0x1373   : > { %v9250_v37 = vld [vmem:[%s11495_s6 + $0x678] sm:$0xff]   ;;  %v9276_v4 = vld [vmem:[%s11495_s6 + $0x608] sm:$0xff]   ;;  %v9280_v9 = vld [vmem:[%s11495_s6 + $0x600] sm:$0xff]  }
0x1374   : > { %8378 = vmatpush3.bf16.msra.mxu1 %v9200_v62  ;;  %8400 = vmatpush3.bf16.msra.mxu0 %v9201_v63  ;;  %v9251_v62 = vld [vmem:[%s11495_s6 + $0x6f8] sm:$0xff]  }
0x1375   : > { %8379 = vmatprep.subr.bf16.mxu1 %v9202_v40  ;;  %8401 = vmatprep.subr.bf16.mxu0 %v9203_v41  ;;  %v9252_v63 = vld [vmem:[%s11495_s6 + $0x638] sm:$0xff]   ;;  %v9254_v41 = vld [vmem:[%s11495_s6 + $0x670] sm:$0xff]  }
0x1376   : > { %v9253_v40 = vld [vmem:[%s11495_s6 + $0x6b8] sm:$0xff]  }
0x1378   : > { %8380 = vmatpush3.bf16.msra.mxu1 %v9204_v57  ;;  %8402 = vmatpush3.bf16.msra.mxu0 %v9205_v58  ;;  %v9255_v57 = vld [vmem:[%s11495_s6 + $0x6f0] sm:$0xff]  }
0x1379   : > { %8381 = vmatprep.subr.bf16.mxu1 %v9206_v42  ;;  %8403 = vmatprep.subr.bf16.mxu0 %v9207_v43  ;;  %v9256_v58 = vld [vmem:[%s11495_s6 + $0x630] sm:$0xff]   ;;  %v9258_v43 = vld [vmem:[%s11495_s6 + $0x668] sm:$0xff]  }
0x137a   : > { %v9257_v42 = vld [vmem:[%s11495_s6 + $0x6b0] sm:$0xff]  }
0x137c   : > { %8382 = vmatpush3.bf16.msra.mxu1 %v9208_v44  ;;  %8404 = vmatpush3.bf16.msra.mxu0 %v9209_v45  ;;  %v9259_v44 = vld [vmem:[%s11495_s6 + $0x6e8] sm:$0xff]  }
0x137d   : > { %8383 = vmatprep.subr.bf16.mxu1 %v9210_v47  ;;  %8405 = vmatprep.subr.bf16.mxu0 %v9211_v48  ;;  %v9260_v45 = vld [vmem:[%s11495_s6 + $0x628] sm:$0xff]   ;;  %v9262_v48 = vld [vmem:[%s11495_s6 + $0x660] sm:$0xff]  }
0x137e   : > { %v9261_v47 = vld [vmem:[%s11495_s6 + $0x6a8] sm:$0xff]  }
0x1380   : > { %8384 = vmatpush3.bf16.msra.mxu1 %v9212_v49  ;;  %8406 = vmatpush3.bf16.msra.mxu0 %v9213_v51  ;;  %v9263_v49 = vld [vmem:[%s11495_s6 + $0x6e0] sm:$0xff]  }
0x1381   : > { %8385 = vmatprep.subr.bf16.mxu1 %v9214_v53  ;;  %8407 = vmatprep.subr.bf16.mxu0 %v9215_v54  ;;  %v9264_v51 = vld [vmem:[%s11495_s6 + $0x620] sm:$0xff]   ;;  %v9266_v54 = vld [vmem:[%s11495_s6 + $0x658] sm:$0xff]  }
0x1382   : > { %v9265_v53 = vld [vmem:[%s11495_s6 + $0x6a0] sm:$0xff]  }
0x1384   : > { %8386 = vmatpush3.bf16.msra.mxu1 %v9216_v56  ;;  %8408 = vmatpush3.bf16.msra.mxu0 %v9217_v59  ;;  %v9267_v56 = vld [vmem:[%s11495_s6 + $0x6d8] sm:$0xff]  }
0x1385   : > { %8387 = vmatprep.subr.bf16.mxu1 %v9218_v60  ;;  %8409 = vmatprep.subr.bf16.mxu0 %v9219_v35  ;;  %v9268_v59 = vld [vmem:[%s11495_s6 + $0x618] sm:$0xff]   ;;  %v9270_v35 = vld [vmem:[%s11495_s6 + $0x650] sm:$0xff]  }
0x1386   : > { %v9269_v60 = vld [vmem:[%s11495_s6 + $0x698] sm:$0xff]  }
0x1388   : > { %8388 = vmatpush3.bf16.msra.mxu1 %v9220_v21  ;;  %8410 = vmatpush3.bf16.msra.mxu0 %v9221_v50  ;;  %v9273_v21 = vld [vmem:[%s11495_s6 + $0x690] sm:$0xff]   ;;  %v9274_v50 = vld [vmem:[%s11495_s6 + $0x648] sm:$0xff]  }
0x1389   : > { %8389 = vmatprep.subr.bf16.mxu1 %v9222_v46  ;;  %8411 = vmatprep.subr.bf16.mxu0 %v9223_v14  ;;  %v9277_v46 = vld [vmem:[%s11495_s6 + $0x688] sm:$0xff]   ;;  %v9278_v14 = vld [vmem:[%s11495_s6 + $0x640] sm:$0xff]  }
0x138c   : > { %8390 = vmatpush3.bf16.msra.mxu1 %v9224_v36  ;;  %8412 = vmatpush3.bf16.msra.mxu0 %v9225_v22  ;;  %v9281_v36 = vld [vmem:[%s11495_s6 + $0x680] sm:$0xff]  }
0x138d   : > { %5679 = vmatprep.subr.bf16.mxu1 %v9228_v32  ;;  %5722 = vmatprep.subr.bf16.mxu0 %v9231_v33  ;;  %v9284_v22 = vld [vmem:[%s11493_s4 + $0x3e4] ss:$16 sps:$4 sm:$0xff]  }
0x138f   : > { %5502 = vmatmul.mubr.bf16.vlgmr.msra.gmra.mxu1 %v4651_v18  ;;  %5543 = vmatmul.mubr.bf16.vlgmr.msra.gmra.mxu0 %v4653_v19 }
0x1390   : > { %5680 = vmatpush1.bf16.msra.mxu1 %v9226_v52  ;;  %5723 = vmatpush1.bf16.msra.mxu0 %v9229_v17 }
0x1391   : > { %5681 = vmatprep.subr.bf16.mxu1 %v9234_v10  ;;  %5724 = vmatprep.subr.bf16.mxu0 %v9237_v23 }
0x1392   : > { %5703 = vmatprep.mubr.bf16.mxu1 %v9480_v1  ;;  %5746 = vmatprep.mubr.bf16.mxu0 %v9480_v1 }
0x1394   : > { %5682 = vmatpush1.bf16.msra.mxu1 %v9232_v24  ;;  %5725 = vmatpush1.bf16.msra.mxu0 %v9235_v25 }
0x1395   : > { %5683 = vmatprep.subr.bf16.mxu1 %v9240_v26  ;;  %5726 = vmatprep.subr.bf16.mxu0 %v9243_v27 }
0x1398   : > { %5684 = vmatpush1.bf16.msra.mxu1 %v9238_v28  ;;  %5727 = vmatpush1.bf16.msra.mxu0 %v9241_v29 }
0x1399   : > { %5685 = vmatprep.subr.bf16.mxu1 %v9246_v30  ;;  %5728 = vmatprep.subr.bf16.mxu0 %v9249_v31 }
0x139c   : > { %5686 = vmatpush1.bf16.msra.mxu1 %v9244_v20  ;;  %5729 = vmatpush1.bf16.msra.mxu0 %v9247_v34 }
0x139d   : > { %8419 = vmatprep.subr.bf16.mxu1 %v9250_v37  ;;  %8441 = vmatprep.subr.bf16.mxu0 %v9251_v62 }
0x139f   : > { %7846 = vmatmul.mubr.msk.bf16.vlgmr.msra.gmra.mxu1 %vm427_vm1, %v10723_v55  ;;  %7847 = vmatmul.mubr.msk.bf16.vlgmr.msra.gmra.mxu0 %vm427_vm1, %v10723_v55 }
0x13a0   : > { %8420 = vmatpush3.bf16.msra.mxu1 %v9252_v63  ;;  %8442 = vmatpush3.bf16.msra.mxu0 %v9253_v40 }
0x13a1   : > { %8421 = vmatprep.subr.bf16.mxu1 %v9254_v41  ;;  %8443 = vmatprep.subr.bf16.mxu0 %v9255_v57 }
0x13a4   : > { %8422 = vmatpush3.bf16.msra.mxu1 %v9256_v58  ;;  %8444 = vmatpush3.bf16.msra.mxu0 %v9257_v42 }
0x13a5   : > { %8423 = vmatprep.subr.bf16.mxu1 %v9258_v43  ;;  %8445 = vmatprep.subr.bf16.mxu0 %v9259_v44  ;;  %v7829_v44 = vld [vmem:[%s11494_s5 + $0x18] sm:$0xf] }
0x13a8   : > { %8424 = vmatpush3.bf16.msra.mxu1 %v9260_v45  ;;  %8446 = vmatpush3.bf16.msra.mxu0 %v9261_v47 }
0x13a9   : > { %8425 = vmatprep.subr.bf16.mxu1 %v9262_v48  ;;  %8447 = vmatprep.subr.bf16.mxu0 %v9263_v49  ;;  %v5578_v48 = vrot.slane %v7829_v44, %v10016_v5  ;;  %v5586_v49 = vrot.slane %v7829_v44, %v10018_v8 }
0x13ac   : > { %8426 = vmatpush3.bf16.msra.mxu1 %v9264_v51  ;;  %8448 = vmatpush3.bf16.msra.mxu0 %v9265_v53  ;;  %v5574_v51 = vrot.slane %v7829_v44, %v10023_v11  ;;  %v5582_v53 = vrot.slane %v7829_v44, %v10025_v12  ;;  %v9313_v44 = vld [vmem:[%s11495_s6 + $0x7b0] sm:$0xff]  }
0x13ad   : > { %8427 = vmatprep.subr.bf16.mxu1 %v9266_v54  ;;  %8449 = vmatprep.subr.bf16.mxu0 %v9267_v56 }
0x13b0   : > { %8428 = vmatpush3.bf16.msra.mxu1 %v9268_v59  ;;  %8450 = vmatpush3.bf16.msra.mxu0 %v9269_v60 }
0x13b1   : > { %8429 = vmatprep.subr.bf16.mxu1 %v9270_v35  ;;  %8451 = vmatprep.subr.bf16.mxu0 %v9271_v61 }
0x13b4   : > { %8430 = vmatpush3.bf16.msra.mxu1 %v9272_v0  ;;  %8452 = vmatpush3.bf16.msra.mxu0 %v9273_v21 }
0x13b5   : > { %8431 = vmatprep.subr.bf16.mxu1 %v9274_v50  ;;  %8453 = vmatprep.subr.bf16.mxu0 %v9275_v3 }
0x13b8   : > { %8432 = vmatpush3.bf16.msra.mxu1 %v9276_v4  ;;  %8454 = vmatpush3.bf16.msra.mxu0 %v9277_v46 }
0x13b9   : > { %8433 = vmatprep.subr.bf16.mxu1 %v9278_v14  ;;  %8455 = vmatprep.subr.bf16.mxu0 %v9279_v6 }
0x13bc   : > { %8434 = vmatpush3.bf16.msra.mxu1 %v9280_v9  ;;  %8456 = vmatpush3.bf16.msra.mxu0 %v9281_v36 }
0x13bd   : > { %6238 = vmatprep.subr.bf16.mxu1 %v9284_v22  ;;  %6281 = vmatprep.subr.bf16.mxu0 %v9287_v7 }
0x142f   : > { %v8347_v13 = vpop.f32.mrf.mxu1  ;;  %v8369_v32 = vpop.f32.mrf.mxu0 }
0x1431   : > { %v8348_v33 = vpop.f32.mrf.mxu1  ;;  %v8370_v15 = vpop.f32.mrf.mxu0 }
0x1432   : > { %v8349_v16 = vadd.f32 %v8348_v33, %v8347_v13  ;;  %v8371_v52 = vadd.f32 %v8370_v15, %v8369_v32 }
0x1433   : > { %v8350_v17 = vpop.f32.mrf.mxu1  ;;  %v8372_v18 = vpop.f32.mrf.mxu0 }
0x1434   : > { %v5271_v19 = vadd.f32 %v8371_v52, %v8349_v16 }
0x1435   : > { %v8351_v10 = vpop.f32.mrf.mxu1  ;;  %v8373_v23 = vpop.f32.mrf.mxu0 }
0x1436   : > { %v8352_v24 = vadd.f32 %v8351_v10, %v8350_v17  ;;  %v8374_v25 = vadd.f32 %v8373_v23, %v8372_v18  ;;  %v9282_v17 = vld [vmem:[%s11493_s4 + $0x3e0] ss:$16 sps:$4 sm:$0xff]   ;;  %v9285_v18 = vld [vmem:[%s11493_s4 + $0x3e8] ss:$16 sps:$4 sm:$0xff]   ;;  %v9290_v23 = vld [vmem:[%s11493_s4 + $0x3c4] ss:$16 sps:$4 sm:$0xff]  }
0x1438   : > { %v5274_v26 = vadd.f32 %v8374_v25, %v8352_v24  ;;  %v9293_v24 = vld [vmem:[%s11493_s4 + $0x3cc] ss:$16 sps:$4 sm:$0xff]   ;;  %v9288_v25 = vld [vmem:[%s11493_s4 + $0x3c0] ss:$16 sps:$4 sm:$0xff]  }
0x144f   : > { %v8391_v27 = vpop.f32.mrf.mxu1  ;;  %v8413_v28 = vpop.f32.mrf.mxu0 }
0x1451   : > { %v8392_v29 = vpop.f32.mrf.mxu1  ;;  %v8414_v30 = vpop.f32.mrf.mxu0 }
0x1452   : > { %v8393_v31 = vadd.f32 %v8392_v29, %v8391_v27  ;;  %v8415_v20 = vadd.f32 %v8414_v30, %v8413_v28  ;;  %v9296_v27 = vld [vmem:[%s11493_s4 + $0x3a4] ss:$16 sps:$4 sm:$0xff]   ;;  %v9299_v28 = vld [vmem:[%s11493_s4 + $0x3ac] ss:$16 sps:$4 sm:$0xff]   ;;  %v9294_v29 = vld [vmem:[%s11493_s4 + $0x3a0] ss:$16 sps:$4 sm:$0xff]  }
0x1453   : > { %v8394_v34 = vpop.f32.mrf.mxu1  ;;  %v8416_v37 = vpop.f32.mrf.mxu0  ;;  %v9297_v30 = vld [vmem:[%s11493_s4 + $0x3a8] ss:$16 sps:$4 sm:$0xff]  }
0x1454   : > { %v5504_v62 = vadd.f32 %v8393_v31, %v5271_v19  ;;  %v9302_v31 = vld [vmem:[%s11493_s4 + $0x384] ss:$16 sps:$4 sm:$0xff]  }
0x1455   : > { %v8395_v63 = vpop.f32.mrf.mxu1  ;;  %v8417_v40 = vpop.f32.mrf.mxu0 }
0x1456   : > { %v11151_v41 = vadd.f32 %v8415_v20, %v5504_v62  ;;  %v8396_v57 = vadd.f32 %v8395_v63, %v8394_v34  ;;  %v8418_v58 = vadd.f32 %v8417_v40, %v8416_v37  ;;  %v9300_v20 = vld [vmem:[%s11493_s4 + $0x380] ss:$16 sps:$4 sm:$0xff]   ;;  %v9303_v34 = vld [vmem:[%s11493_s4 + $0x388] ss:$16 sps:$4 sm:$0xff]  }
0x1457   : > { %v9306_v37 = vld [vmem:[%s11495_s6 + $0x778] sm:$0xff]  }
0x1458   : > { %v5507_v42 = vadd.f32 %v8396_v57, %v5274_v26  ;;  %v9291_v26 = vld [vmem:[%s11493_s4 + $0x3c8] ss:$16 sps:$4 sm:$0xff]   ;;  %v9310_v57 = vld [vmem:[%s11495_s6 + $0x770] sm:$0xff]  }
0x1459   : > { %v9307_v62 = vld [vmem:[%s11495_s6 + $0x7f8] sm:$0xff]  }
0x145a   : > { %v11153_v43 = vadd.f32 %v8418_v58, %v5507_v42  ;;  %v9308_v63 = vld [vmem:[%s11495_s6 + $0x738] sm:$0xff]   ;;  %v9311_v58 = vld [vmem:[%s11495_s6 + $0x7f0] sm:$0xff]  }
0x145b   : > { %v9309_v40 = vld [vmem:[%s11495_s6 + $0x7b8] sm:$0xff]   ;;  %v9312_v42 = vld [vmem:[%s11495_s6 + $0x730] sm:$0xff]  }
0x145f   : > { %v5705_v45 = vpop.f32.mrf.mxu1  ;;  %v5748_v47 = vpop.f32.mrf.mxu0 }
0x1460   : > { %v5706_v50 = vadd.f32 %v5705_v45, %v5574_v51  ;;  %v5749_v3 = vadd.f32 %v5748_v47, %v5582_v53  ;;  %v9315_v45 = vld [vmem:[%s11495_s6 + $0x7e8] sm:$0xff]  }
0x1461   : > { %v5707_v54 = vpop.f32.mrf.mxu1  ;;  %v5750_v56 = vpop.f32.mrf.mxu0  ;;  %v9316_v47 = vld [vmem:[%s11495_s6 + $0x728] sm:$0xff]  }
0x1462   : > { %v5708_v35 = vadd.f32 %v5707_v54, %v5578_v48  ;;  %v5751_v61 = vadd.f32 %v5750_v56, %v5586_v49  ;;  %v5757_v33 = vmax.f32 %v5706_v50, 0.0  ;;  %v5759_v15 = vmax.f32 %v5749_v3, 0.0  ;;  %v9321_v54 = vld [vmem:[%s11495_s6 + $0x7a0] sm:$0xff]   ;;  %v9322_v56 = vld [vmem:[%s11495_s6 + $0x758] sm:$0xff]   ;;  %v9329_v50 = vld [vmem:[%s11495_s6 + $0x790] sm:$0xff]  }
0x1463   : > { %v5709_v59 = vpop.f32.mrf.mxu1  ;;  %v5752_v60 = vpop.f32.mrf.mxu0  ;;  %v9330_v3 = vld [vmem:[%s11495_s6 + $0x748] sm:$0xff]  }
0x1464   : > { %v5710_v0 = vadd.f32 %v5709_v59, %v5574_v51  ;;  %v5753_v21 = vadd.f32 %v5752_v60, %v5582_v53  ;;  %v5758_v22 = vmax.f32 %v5708_v35, 0.0  ;;  %v5760_v7 = vmax.f32 %v5751_v61, 0.0  ;;  %v9319_v51 = vld [vmem:[%s11495_s6 + $0x7e0] sm:$0xff]   ;;  %v9323_v59 = vld [vmem:[%s11495_s6 + $0x7d8] sm:$0xff]   ;;  %v9326_v61 = vld [vmem:[%s11495_s6 + $0x750] sm:$0xff]  }
0x1465   : > { %v5711_v4 = vpop.f32.mrf.mxu1  ;;  %v5754_v46 = vpop.f32.mrf.mxu0  ;;  %v9320_v53 = vld [vmem:[%s11495_s6 + $0x720] sm:$0xff]   ;;  %v9324_v60 = vld [vmem:[%s11495_s6 + $0x718] sm:$0xff]  }
0x1466   : > { %v5712_v14 = vadd.f32 %v5711_v4, %v5578_v48  ;;  %v5755_v6 = vadd.f32 %v5754_v46, %v5586_v49  ;;  %v5761_v9 = vmax.f32 %v5710_v0, 0.0  ;;  %v5763_v36 = vmax.f32 %v5753_v21, 0.0  ;;  %v9317_v48 = vld [vmem:[%s11495_s6 + $0x7a8] sm:$0xff]   ;;  %v9318_v49 = vld [vmem:[%s11495_s6 + $0x760] sm:$0xff]   ;;  %v9325_v35 = vld [vmem:[%s11495_s6 + $0x798] sm:$0xff]  }
0x1467   : > { %v9327_v0 = vld [vmem:[%s11495_s6 + $0x7d0] sm:$0xff]   ;;  %v9331_v4 = vld [vmem:[%s11495_s6 + $0x7c8] sm:$0xff]  }
0x1468   : > { %v5762_v13 = vmax.f32 %v5712_v14, 0.0  ;;  %v5764_v32 = vmax.f32 %v5755_v6, 0.0  ;;  %v5765_v19 = vpack.c.bf16 %v5761_v9, %v5757_v33  ;;  %v5767_v10 = vpack.c.bf16 %v5763_v36, %v5759_v15  ;;  %v9328_v21 = vld [vmem:[%s11495_s6 + $0x710] sm:$0xff]   ;;  %v9332_v46 = vld [vmem:[%s11495_s6 + $0x708] sm:$0xff]   ;;  %v9334_v6 = vld [vmem:[%s11495_s6 + $0x740] sm:$0xff]  }
0x1469   : > { %v9333_v14 = vld [vmem:[%s11495_s6 + $0x788] sm:$0xff]   ;;  %v9335_v9 = vld [vmem:[%s11495_s6 + $0x7c0] sm:$0xff]  }
0x146a   : > { %v5766_v16 = vpack.c.bf16 %v5762_v13, %v5758_v22  ;;  %v5768_v52 = vpack.c.bf16 %v5764_v32, %v5760_v7  ;;  %v9336_v36 = vld [vmem:[%s11495_s6 + $0x700] sm:$0xff]  }
0x146b   : > { %v9337_v22 = vld [vmem:[%s11495_s6 + $0x780] sm:$0xff]  }
0x146c   : > { %6058 = vmatprep.mubr.bf16.mxu1 %v5766_v16  ;;  %6099 = vmatprep.mubr.bf16.mxu0 %v5768_v52 }
0x146d   : > { %6059 = vmatmul.mubr.bf16.vlgmr.msra.gmra.mxu1 %v5765_v19  ;;  %6100 = vmatmul.mubr.bf16.vlgmr.msra.gmra.mxu0 %v5767_v10 }
0x146e   : > { %6239 = vmatpush1.bf16.msra.mxu1 %v9282_v17  ;;  %6282 = vmatpush1.bf16.msra.mxu0 %v9285_v18 }
0x146f   : > { %6240 = vmatprep.subr.bf16.mxu1 %v9290_v23  ;;  %6283 = vmatprep.subr.bf16.mxu0 %v9293_v24 }
0x1470   : > { %6262 = vmatprep.mubr.bf16.mxu1 %v9480_v1  ;;  %6305 = vmatprep.mubr.bf16.mxu0 %v9480_v1  ;;  %v9305_v1 = vld [vmem:[%s11493_s4 + $0x38c] ss:$16 sps:$4 sm:$0xff]  }
0x1472   : > { %6241 = vmatpush1.bf16.msra.mxu1 %v9288_v25  ;;  %6284 = vmatpush1.bf16.msra.mxu0 %v9291_v26 }
0x1473   : > { %6242 = vmatprep.subr.bf16.mxu1 %v9296_v27  ;;  %6285 = vmatprep.subr.bf16.mxu0 %v9299_v28  ;;  %v7960_v28 = vld [vmem:[%s11494_s5 + $0x1c] sm:$0xf] }
0x1476   : > { %6243 = vmatpush1.bf16.msra.mxu1 %v9294_v29  ;;  %6286 = vmatpush1.bf16.msra.mxu0 %v9297_v30 }
0x1477   : > { %6244 = vmatprep.subr.bf16.mxu1 %v9302_v31  ;;  %6287 = vmatprep.subr.bf16.mxu0 %v9305_v1  ;;  %v6137_v31 = vrot.slane %v7960_v28, %v10016_v5  ;;  %v6145_v1 = vrot.slane %v7960_v28, %v10018_v8 }
0x147a   : > { %6245 = vmatpush1.bf16.msra.mxu1 %v9300_v20  ;;  %6288 = vmatpush1.bf16.msra.mxu0 %v9303_v34  ;;  %v6133_v20 = vrot.slane %v7960_v28, %v10023_v11  ;;  %v6141_v34 = vrot.slane %v7960_v28, %v10025_v12 }
0x147b   : > { %8463 = vmatprep.subr.bf16.mxu1 %v9306_v37  ;;  %8485 = vmatprep.subr.bf16.mxu0 %v9307_v62 }
0x147d   : > { %7977 = vmatmul.mubr.msk.bf16.vlgmr.msra.gmra.mxu1 %vm427_vm1, %v10723_v55  ;;  %7978 = vmatmul.mubr.msk.bf16.vlgmr.msra.gmra.mxu0 %vm427_vm1, %v10723_v55  ;;  %v9314_v55 = vld [vmem:[%s11495_s6 + $0x768] sm:$0xff]  }
0x147e   : > { %8464 = vmatpush3.bf16.msra.mxu1 %v9308_v63  ;;  %8486 = vmatpush3.bf16.msra.mxu0 %v9309_v40 }
0x147f   : > { %8465 = vmatprep.subr.bf16.mxu1 %v9310_v57  ;;  %8487 = vmatprep.subr.bf16.mxu0 %v9311_v58 }
0x1482   : > { %8466 = vmatpush3.bf16.msra.mxu1 %v9312_v42  ;;  %8488 = vmatpush3.bf16.msra.mxu0 %v9313_v44 }
0x1483   : > { %8467 = vmatprep.subr.bf16.mxu1 %v9314_v55  ;;  %8489 = vmatprep.subr.bf16.mxu0 %v9315_v45 }
0x1486   : > { %8468 = vmatpush3.bf16.msra.mxu1 %v9316_v47  ;;  %8490 = vmatpush3.bf16.msra.mxu0 %v9317_v48 }
0x1487   : > { %8469 = vmatprep.subr.bf16.mxu1 %v9318_v49  ;;  %8491 = vmatprep.subr.bf16.mxu0 %v9319_v51 }
0x148a   : > { %8470 = vmatpush3.bf16.msra.mxu1 %v9320_v53  ;;  %8492 = vmatpush3.bf16.msra.mxu0 %v9321_v54 }
0x148b   : > { %8471 = vmatprep.subr.bf16.mxu1 %v9322_v56  ;;  %8493 = vmatprep.subr.bf16.mxu0 %v9323_v59 }
0x148e   : > { %8472 = vmatpush3.bf16.msra.mxu1 %v9324_v60  ;;  %8494 = vmatpush3.bf16.msra.mxu0 %v9325_v35 }
0x148f   : > { %8473 = vmatprep.subr.bf16.mxu1 %v9326_v61  ;;  %8495 = vmatprep.subr.bf16.mxu0 %v9327_v0 }
0x1492   : > { %8474 = vmatpush3.bf16.msra.mxu1 %v9328_v21  ;;  %8496 = vmatpush3.bf16.msra.mxu0 %v9329_v50 }
0x1493   : > { %8475 = vmatprep.subr.bf16.mxu1 %v9330_v3  ;;  %8497 = vmatprep.subr.bf16.mxu0 %v9331_v4 }
0x1496   : > { %8476 = vmatpush3.bf16.msra.mxu1 %v9332_v46  ;;  %8498 = vmatpush3.bf16.msra.mxu0 %v9333_v14 }
0x1497   : > { %8477 = vmatprep.subr.bf16.mxu1 %v9334_v6  ;;  %8499 = vmatprep.subr.bf16.mxu0 %v9335_v9 }
0x149a   : > { %8478 = vmatpush3.bf16.msra.mxu1 %v9336_v36  ;;  %8500 = vmatpush3.bf16.msra.mxu0 %v9337_v22  ;;  %v8075_v22 = vld [vmem:[%s11492_s3 + $0x16] ss:$0 sm:$0xff] }
0x149b   : > { %8725 = vmatprep.subr.mxu1 %v9481_v2  ;;  %8744 = vmatprep.subr.mxu0 %v9481_v2 }
0x152d   : > { %v8435_v7 = vpop.f32.mrf.mxu1  ;;  %v8457_v13 = vpop.f32.mrf.mxu0 }
0x152f   : > { %v8436_v32 = vpop.f32.mrf.mxu1  ;;  %v8458_v33 = vpop.f32.mrf.mxu0 }
0x1530   : > { %v8437_v15 = vadd.f32 %v8436_v32, %v8435_v7  ;;  %v8459_v16 = vadd.f32 %v8458_v33, %v8457_v13 }
0x1531   : > { %v8438_v52 = vpop.f32.mrf.mxu1  ;;  %v8460_v17 = vpop.f32.mrf.mxu0 }
0x1532   : > { %v6102_v18 = vadd.f32 %v8459_v16, %v8437_v15 }
0x1533   : > { %v8439_v19 = vpop.f32.mrf.mxu1  ;;  %v8461_v10 = vpop.f32.mrf.mxu0 }
0x1534   : > { %v6108_v23 = vadd.f32 %v6102_v18, %v11151_v41  ;;  %v8440_v24 = vadd.f32 %v8439_v19, %v8438_v52  ;;  %v8462_v25 = vadd.f32 %v8461_v10, %v8460_v17 }
0x1536   : > { %v6105_v26 = vadd.f32 %v8462_v25, %v8440_v24 }
0x1538   : > { %v6109_v27 = vadd.f32 %v6105_v26, %v11153_v43 }
0x153d   : > { %v6264_v29 = vpop.f32.mrf.mxu1  ;;  %v6307_v30 = vpop.f32.mrf.mxu0 }
0x153e   : > { %v6265_v42 = vadd.f32 %v6264_v29, %v6133_v20  ;;  %v6308_v44 = vadd.f32 %v6307_v30, %v6141_v34 }
0x153f   : > { %v6266_v41 = vpop.f32.mrf.mxu1  ;;  %v6309_v37 = vpop.f32.mrf.mxu0 }
0x1540   : > { %v6267_v40 = vadd.f32 %v6266_v41, %v6137_v31  ;;  %v6310_v43 = vadd.f32 %v6309_v37, %v6145_v1  ;;  %v6316_v53 = vmax.f32 %v6265_v42, 0.0  ;;  %v6318_v54 = vmax.f32 %v6308_v44, 0.0  ;;  %v6728_v41 = vld [vmem:[%s11496_s7 + $0x18] sm:$0xff]  ;;  %v6727_v37 = vld [vmem:[%s11496_s7 + $0x10] sm:$0xff] }
0x1541   : > { %v6268_v62 = vpop.f32.mrf.mxu1  ;;  %v6311_v63 = vpop.f32.mrf.mxu0  ;;  %v6819_v42 = vld [vmem:[%s11497_s8 + $0x58] sm:$0xff]  ;;  %v6818_v44 = vld [vmem:[%s11497_s8 + $0x50] sm:$0xff] }
0x1542   : > { %v6269_v57 = vadd.f32 %v6268_v62, %v6133_v20  ;;  %v6312_v58 = vadd.f32 %v6311_v63, %v6141_v34  ;;  %v6317_v49 = vmax.f32 %v6267_v40, 0.0  ;;  %v6319_v11 = vmax.f32 %v6310_v43, 0.0  ;;  %v6730_v20 = vld [vmem:[%s11496_s7 + $0x28] sm:$0xff]  ;;  %v6729_v34 = vld [vmem:[%s11496_s7 + $0x20] sm:$0xff]  ;;  %v6823_v40 = vld [vmem:[%s11497_s8 + $0x78] sm:$0xff] }
0x1543   : > { %v6270_v55 = vpop.f32.mrf.mxu1  ;;  %v6313_v45 = vpop.f32.mrf.mxu0  ;;  %v6726_v62 = vld [vmem:[%s11496_s7 + $0x8] sm:$0xff]  ;;  %v6725_v63 = vld [vmem:[%s11496_s7] sm:$0xff]  ;;  %v6822_v43 = vld [vmem:[%s11497_s8 + $0x70] sm:$0xff] }
0x1544   : > { %v6271_v47 = vadd.f32 %v6270_v55, %v6137_v31  ;;  %v6314_v5 = vadd.f32 %v6313_v45, %v6145_v1  ;;  %v6320_v48 = vmax.f32 %v6269_v57, 0.0  ;;  %v6322_v8 = vmax.f32 %v6312_v58, 0.0  ;;  %v6732_v31 = vld [vmem:[%s11496_s7 + $0x38] sm:$0xff]  ;;  %v6731_v1 = vld [vmem:[%s11496_s7 + $0x30] sm:$0xff]  ;;  %v6821_v57 = vld [vmem:[%s11497_s8 + $0x68] sm:$0xff] }
0x1545   : > { %v6820_v58 = vld [vmem:[%s11497_s8 + $0x60] sm:$0xff]  ;;  %v6817_v55 = vld [vmem:[%s11497_s8 + $0x48] sm:$0xff] }
0x1546   : > { %v6321_v51 = vmax.f32 %v6271_v47, 0.0  ;;  %v6323_v12 = vmax.f32 %v6314_v5, 0.0  ;;  %v6324_v60 = vpack.c.bf16 %v6320_v48, %v6316_v53  ;;  %v6326_v35 = vpack.c.bf16 %v6322_v8, %v6318_v54  ;;  %v6816_v45 = vld [vmem:[%s11497_s8 + $0x40] sm:$0xff]  ;;  %v6815_v47 = vld [vmem:[%s11497_s8 + $0x38] sm:$0xff]  ;;  %v6814_v5 = vld [vmem:[%s11497_s8 + $0x30] sm:$0xff] }
0x1547   : > { %v6813_v48 = vld [vmem:[%s11497_s8 + $0x28] sm:$0xff]  ;;  %v6812_v8 = vld [vmem:[%s11497_s8 + $0x20] sm:$0xff] }
0x1548   : > { %v6325_v56 = vpack.c.bf16 %v6321_v51, %v6317_v49  ;;  %v6327_v59 = vpack.c.bf16 %v6323_v12, %v6319_v11  ;;  %v6811_v49 = vld [vmem:[%s11497_s8 + $0x18] sm:$0xff] }
0x154a   : > { %6617 = vmatprep.mubr.bf16.mxu1 %v6325_v56  ;;  %6658 = vmatprep.mubr.bf16.mxu0 %v6327_v59 }
0x154b   : > { %6618 = vmatmul.mubr.bf16.vlgmr.msra.gmra.mxu1 %v6324_v60  ;;  %6659 = vmatmul.mubr.bf16.vlgmr.msra.gmra.mxu0 %v6326_v35  ;;  %v8076_v60 = vld [vmem:[%s11492_s3 + $0x17] ss:$0 sm:$0xff] }
0x154c   : > { %8741 = vmatprep.mubr.msk.f32.mxu1 %vm9482_vm0, %v9481_v2  ;;  %8776 = vmatprep.mubr.msk.f32.mxu0 %vm9482_vm0, %v9481_v2 }
0x154d   : > { %8726 = vmatpush3.msra.mxu1 %v6732_v31  ;;  %8745 = vmatpush3.msra.mxu0 %v6823_v40 }
0x154e   : > { %8727 = vmatprep.subr.mxu1 %v9481_v2  ;;  %8746 = vmatprep.subr.mxu0 %v9481_v2 }
0x154f   : > { %8728 = vmatpush3.msra.mxu1 %v6731_v1  ;;  %8747 = vmatpush3.msra.mxu0 %v6822_v43 }
0x1550   : > { %8729 = vmatprep.subr.mxu1 %v9481_v2  ;;  %8748 = vmatprep.subr.mxu0 %v9481_v2 }
0x1551   : > { %8730 = vmatpush3.msra.mxu1 %v6730_v20  ;;  %8749 = vmatpush3.msra.mxu0 %v6821_v57 }
0x1552   : > { %8731 = vmatprep.subr.mxu1 %v9481_v2  ;;  %8750 = vmatprep.subr.mxu0 %v9481_v2 }
0x1553   : > { %8732 = vmatpush3.msra.mxu1 %v6729_v34  ;;  %8751 = vmatpush3.msra.mxu0 %v6820_v58 }
0x1554   : > { %8733 = vmatprep.subr.mxu1 %v9481_v2  ;;  %8752 = vmatprep.subr.mxu0 %v9481_v2 }
0x1555   : > { %8734 = vmatpush3.msra.mxu1 %v6728_v41  ;;  %8753 = vmatpush3.msra.mxu0 %v6819_v42 }
0x1556   : > { %8735 = vmatprep.subr.mxu1 %v9481_v2  ;;  %8754 = vmatprep.subr.mxu0 %v9481_v2 }
0x1557   : > { %8736 = vmatpush3.msra.mxu1 %v6727_v37  ;;  %8755 = vmatpush3.msra.mxu0 %v6818_v44 }
0x1558   : > { %8737 = vmatprep.subr.mxu1 %v9481_v2  ;;  %8756 = vmatprep.subr.mxu0 %v9481_v2 }
0x1559   : > { %8738 = vmatpush3.msra.mxu1 %v6726_v62  ;;  %8757 = vmatpush3.msra.mxu0 %v6817_v55 }
0x155a   : > { %8739 = vmatprep.subr.mxu1 %v9481_v2  ;;  %8758 = vmatprep.subr.mxu0 %v9481_v2 }
0x155b   : > { %8740 = vmatpush3.msra.mxu1 %v6725_v63  ;;  %8759 = vmatpush3.msra.mxu0 %v6816_v45 }
0x155c   : > { %8760 = vmatprep.subr.mxu0 %v9481_v2 }
0x155d   : > { %8761 = vmatpush3.msra.mxu0 %v6815_v47 }
0x155e   : > { %8762 = vmatprep.subr.mxu0 %v9481_v2 }
0x155f   : > { %8763 = vmatpush3.msra.mxu0 %v6814_v5 }
0x1560   : > { %8764 = vmatprep.subr.mxu0 %v9481_v2 }
0x1561   : > { %8765 = vmatpush3.msra.mxu0 %v6813_v48 }
0x1562   : > { %8766 = vmatprep.subr.mxu0 %v9481_v2 }
0x1563   : > { %8767 = vmatpush3.msra.mxu0 %v6812_v8 }
0x1564   : > { %8768 = vmatprep.subr.mxu0 %v9481_v2 }
0x1565   : > { %8769 = vmatpush3.msra.mxu0 %v6811_v49 }
0x1566   : > { %8770 = vmatprep.subr.mxu0 %v9481_v2 }
0x160b   : > { %v8479_v61 = vpop.f32.mrf.mxu1  ;;  %v8501_v0 = vpop.f32.mrf.mxu0 }
0x160d   : > { %v8480_v21 = vpop.f32.mrf.mxu1  ;;  %v8502_v50 = vpop.f32.mrf.mxu0 }
0x160e   : > { %v8481_v3 = vadd.f32 %v8480_v21, %v8479_v61  ;;  %v8503_v4 = vadd.f32 %v8502_v50, %v8501_v0  ;;  %v8077_v21 = vld [vmem:[%s11492_s3 + $0x18] ss:$0 sm:$0xff] }
0x160f   : > { %v8482_v46 = vpop.f32.mrf.mxu1  ;;  %v8504_v14 = vpop.f32.mrf.mxu0 }
0x1610   : > { %v6661_v6 = vadd.f32 %v8503_v4, %v8481_v3 }
0x1611   : > { %v8483_v9 = vpop.f32.mrf.mxu1  ;;  %v8505_v36 = vpop.f32.mrf.mxu0 }
0x1612   : > { %v6667_v7 = vadd.f32 %v6661_v6, %v6108_v23  ;;  %v8484_v13 = vadd.f32 %v8483_v9, %v8482_v46  ;;  %v8506_v32 = vadd.f32 %v8505_v36, %v8504_v14 }
0x1614   : > { %v6664_v33 = vadd.f32 %v8506_v32, %v8484_v13  ;;  %v6673_v15 = vadd.f32 %v8075_v22, %v6667_v7 }
0x1616   : > { %v6668_v16 = vadd.f32 %v6664_v33, %v6109_v27  ;;  %v6675_v52 = vadd.f32 %v6673_v15, %v10711_v38 }
0x1618   : > { %v6677_v17 = vsel %vm427_vm1, %v6675_v52, 0.0  ;;  %v6674_v18 = vadd.f32 %v8075_v22, %v6668_v16  ;;  %v6810_v16 = vld [vmem:[%s11497_s8 + $0x10] sm:$0xff] }
0x1619   : > { %6678 = vadd.xlane.f32.xlu1 %v6677_v17  ;;  %8771 = vmatpush3.msra.mxu0 %v6810_v16  ;;  %v6808_v17 = vld [vmem:[%s11497_s8] sm:$0xff] }
0x161a   : > { %v6676_v19 = vadd.f32 %v6674_v18, %v10713_v39  ;;  %8772 = vmatprep.subr.mxu0 %v9481_v2  ;;  %v6733_v18 = vld [vmem:[%s11498_s9 + $0x1] sm:$0x1] }
0x161c   : > { %v6680_v10 = vsel %vm427_vm1, %v6676_v19, 0.0 }
0x161d   : > { %6681 = vadd.xlane.f32.xlu0 %v6680_v10 }
0x16a2   : > { %v6679_v24 = vpop.xlane.xlu1 %6678 }
0x16a3   : > { %v6683_v25 = vmul.f32 0.015625, %v6679_v24 }
0x16a5   : > { %v11328_v26 = vsub.f32 %v6675_v52, %v6683_v25  ;;  %v6809_v52 = vld [vmem:[%s11497_s8 + $0x8] sm:$0xff] }
0x16a6   : > { %v6682_v23 = vpop.xlane.xlu0 %6681  ;;  %8773 = vmatpush3.msra.mxu0 %v6809_v52 }
0x16a7   : > { %v6684_v28 = vmul.f32 0.015625, %v6682_v23  ;;  %v6687_v27 = vmul.f32 %v11328_v26, %v11328_v26  ;;  %8774 = vmatprep.subr.mxu0 %v9481_v2  ;;  %v6824_v2 = vld [vmem:[%s11498_s9 + $0x2] sm:$0x1] }
0x16a8   : > { %8775 = vmatpush3.msra.mxu0 %v6808_v17 }
0x16a9   : > { %v11332_v29 = vsub.f32 %v6676_v19, %v6684_v28  ;;  %v6689_v38 = vsel %vm427_vm1, %v6687_v27, 0.0 }
0x16aa   : > { %6690 = vadd.xlane.f32.xlu1 %v6689_v38 }
0x16ab   : > { %v6688_v39 = vmul.f32 %v11332_v29, %v11332_v29 }
0x16ad   : > { %v6692_v30 = vsel %vm427_vm1, %v6688_v39, 0.0 }
0x16ae   : > { %6693 = vadd.xlane.f32.xlu0 %v6692_v30 }
0x1733   : > { %v6691_v11 = vpop.xlane.xlu1 %6690 }
0x1734   : > { %v6695_v51 = vmul.f32 0.015625, %v6691_v11 }
0x1736   : > { %v6697_v12 = vadd.f32 1e-05, %v6695_v51 }
0x1737   : > { %v6694_v53 = vpop.xlane.xlu0 %6693 }
0x1738   : > { %9414 = vrsqrt.f32 %v6697_v12  ;;  %v6696_v54 = vmul.f32 0.015625, %v6694_v53 }
0x173a   : > { %v6698_v56 = vadd.f32 1e-05, %v6696_v54 }
0x173c   : > { %9416 = vrsqrt.f32 %v6698_v56 }
0x1745   : > { %v9415_v59 = vpop.eup %9414 }
0x1746   : > { %v6701_v35 = vmul.f32 %v9415_v59, %v11328_v26 }
0x1748   : > { %v6707_v61 = vmul.f32 %v8076_v60, %v6701_v35 }
0x1749   : > { %v9417_v0 = vpop.eup %9416 }
0x174a   : > { %v6702_v50 = vmul.f32 %v9417_v0, %v11332_v29  ;;  %v6713_v3 = vadd.f32 %v8077_v21, %v6707_v61 }
0x174c   : > { %v6708_v4 = vmul.f32 %v8076_v60, %v6702_v50  ;;  %v6715_v14 = vsel %vm427_vm1, %v6713_v3, 0.0 }
0x174e   : > { %v6714_v46 = vadd.f32 %v8077_v21, %v6708_v4 }
0x1750   : > { %v6716_v6 = vsel %vm427_vm1, %v6714_v46, 0.0 }
0x1751   : > { %v6717_v9 = vadd.f32 %v6716_v6, %v6715_v14 }
0x1753   : > { %v6718_v36 = vrot.slane %v6717_v9, 4 }
0x1755   : > { %v6719_v22 = vadd.f32 %v6718_v36, %v6717_v9 }
0x1757   : > { %v6720_v7 = vrot.slane %v6719_v22, 2 }
0x1759   : > { %v6721_v13 = vadd.f32 %v6720_v7, %v6719_v22 }
0x175b   : > { %v6722_v32 = vrot.slane %v6721_v13, 1 }
0x175d   : > { %v6723_v33 = vadd.f32 %v6722_v32, %v6721_v13 }
0x175f   : > { %v6724_v15 = vmul.f32 0.0625, %v6723_v33 }
0x1761   : > { %8742 = vmatmul.mubr.msk.f32.vlgmr.msra.gmra.mxu1 %vm427_vm1, %v6724_v15 }
0x1821   : > { %v6803_v19 = vpop.f32.mrf.mxu1 }
0x1822   : > { %v6804_v10 = vadd.f32 %v6803_v19, %v6733_v18 }
0x1823   : > { %v8743_v24 = vpop.f32.mrf.mxu1 }
0x1824   : > { %v6807_v25 = vmax.f32 %v6804_v10, 0.0 }
0x1826   : > { %8777 = vmatmul.mubr.f32.vlgmr.msra.gmra.mxu0 %v6807_v25 }
0x18e6   : > { %v6891_v26 = vpop.f32.mrf.mxu0 }
0x18e7   : > { %v6892_v23 = vadd.f32 %v6891_v26, %v6824_v2 }
0x18e8   : > { %v8778_v28 = vpop.f32.mrf.mxu0 }
0x18e9   : > { %6896 = vst.msk [vmem:[%s351_s30] sm:$0x1] %vm6895_vm5, %v6892_v23 }
0x18ea   : > { %9431 = shalt.err (!%p9428_p3)
}
0x18eb   : > { %s9432_s21 = scalar_lea.hbm %s11454_s12, 16  ;;  %s9436_s25 = scalar_lea.hbm %s11499_s10, 32 }
0x18ec   : > { %p9433_p4 = scmp.ne.s32.totalorder %s11454_s12, %s9432_s21  ;;  %p9437_p9 = scmp.lt.s32.totalorder %s11454_s12, %s11499_s10 }
0x18ed   : > { %p9438_p10 = scmp.lt.s32.totalorder %s9436_s25, %s9432_s21 }
0x18ee   : > { %p9434_p7 = pnand %p9433_p4, %p9583_p5 }
0x18ef   : > { %p9439_p11 = por %p9438_p10, %p9437_p9 }
0x18f0   : > { %p9435_p8 = pneg %p9434_p7 }
0x18f2   : > { %p9440_p12 = pnand %p9439_p11, %p9435_p8 }
0x18f4   : > { %9443 = shalt.err (!%p9440_p12)
}
0x18f5   : > { %8779 = dma.vmem_to_hbm [thread:$0]  (%p9583_p5), %s6911_s20, 16, %s11454_s12, %s6898_s28  }
0x18f6 PF: > { %p8785_p13 = scmp.ge.s32.totalorder %s9478_s16, 2  ;;  %s6922_s27 = sand.u32 1, %s9466_s13  }
0x18f7   : > { %s6923_s26 = scalar_lea.sflag [#allocation3], %s6922_s27 }
0x18f8   : > { %p8782_p0 = pnand %p8785_p13, %p9587_p6 }
0x18fa   : > { %p8783_p1 = pneg %p8782_p0 }
0x18fc   : > { %9461 = dma.done.wait (%p8783_p1), %s6923_s26, 16  }
0x18fd   : > { %9463 = vsyncadd (%p8783_p1), %s6923_s26, 4294967280  ;;  %p20_p2 = scmp.ge.s32.totalorder %s9570_s19, 4   ;;  %s11514_s13 = smov %s9470_s14 }
0x18fe   : > { %s11515_s14 = smov %s9474_s15  ;;  %s11516_s15 = smov %s9581_s22 }
0x18ff   : > { %s11517_s16 = smov %s9570_s19  ;;  %22 = sbr.rel (!%p20_p2) target bundleno = 3 (0x3), region = 124 }
0x1904   :  { %6927 = vsyncpa [#allocation3], 1 }
0x1905   :  { %6929 = vsyncpa [#allocation3 + $0x1], 1 }

</bundles_post_ra>
